<compile_context>
chip_gen: v5e
topology: v5e:2x2
jax: 0.10.0
libtpu: 0.0.40
codegen_flags: <defaults>
</compile_context>

<pallas_src>
import functools

import jax
import jax.numpy as jnp
import numpy as np
from jax import lax
from jax.experimental import pallas as pl
from jax.experimental.pallas import tpu as pltpu

EPS = 1e-12  # F.normalize default eps


# --------------------------------------------------------------------------- #
# Kernels
# --------------------------------------------------------------------------- #
def _encoder_kernel(
    # inputs
    x_ref,                     # (TB, TN) bf16 item-chunk of the input
    we1_ref,                   # (TN, dfac) bf16 item-chunk of encoder-1 weight
    be1_ref,                   # (1, dfac) f32
    we2_ref, be2_ref,          # (dfac, 2*dfac) bf16 / (1, 2*dfac) f32  (mu | lnvar fused)
    wdp1_ref, bdp1_ref,        # (dfac, dfac+ph) bf16 / (1, dfac+ph) f32 (dec-1 | proj-1 fused)
    wp2_ref, bp2_ref,          # (ph, ph) bf16 / (1, ph) f32
    # outputs
    d_ref,                     # (TB, dfac) bf16: tanh(z @ w_d1 + b_d1), fed to the decoder call
    zproj_ref,                 # (TB, ph) f32
    kl_ref,                    # (TB, 1) f32 per-row KL
    # scratch (persist across the inner item-chunk axis)
    acc_sc,                    # (TB, dfac) f32 running x @ w_e1
    ssq_sc,                    # (TB, 1) f32 running sum(x^2)
    *, dfac,
):
    k = pl.program_id(1)

    @pl.when(k == 0)
    def _init():
        acc_sc[...] = jnp.zeros_like(acc_sc)
        ssq_sc[...] = jnp.zeros_like(ssq_sc)

    x = x_ref[...]                                        # bf16
    xf = x.astype(jnp.float32)
    ssq_sc[...] += jnp.sum(xf * xf, axis=1, keepdims=True)
    acc_sc[...] += jnp.dot(x, we1_ref[...], preferred_element_type=jnp.float32)

    @pl.when(k == pl.num_programs(1) - 1)
    def _finalize():
        # h = F.normalize(x, dim=1); dropout is identity in eval mode.
        # (x / ||x||) @ W == (x @ W) * (1/||x||) since ||x|| is a per-row scalar.
        inv_xn = lax.rsqrt(jnp.maximum(ssq_sc[...], EPS * EPS))
        h1 = jnp.tanh(acc_sc[...] * inv_xn + be1_ref[...]).astype(jnp.bfloat16)

        # Encoder-2: single fused (dfac, 2*dfac) matmul; slice at the lane-aligned
        # column dfac into the mu / lnvar halves.
        h2 = jnp.dot(h1, we2_ref[...], preferred_element_type=jnp.float32) + be2_ref[...]
        mu_raw = h2[:, :dfac]
        lnvar = -h2[:, dfac:]                             # lnvarq_sub_lnvar0

        # mu = F.normalize(mu_raw, dim=1); z = mu (no reparameterization noise in eval).
        inv_mn = lax.rsqrt(jnp.maximum(
            jnp.sum(mu_raw * mu_raw, axis=1, keepdims=True), EPS * EPS))
        zb = (mu_raw * inv_mn).astype(jnp.bfloat16)

        # Per-row KL; the batch mean is taken in the wrapper (no (1,1) accumulator races).
        kl_ref[...] = 0.5 * jnp.sum(-lnvar + jnp.exp(lnvar) - 1.0, axis=1, keepdims=True)

        # Fused decoder-1 | proj-1 matmul on z; slice at the lane-aligned column dfac.
        dp = jnp.dot(zb, wdp1_ref[...], preferred_element_type=jnp.float32) + bdp1_ref[...]
        d_ref[...] = jnp.tanh(dp[:, :dfac]).astype(jnp.bfloat16)
        p = jnp.maximum(dp[:, dfac:], 0.0).astype(jnp.bfloat16)
        zproj_ref[...] = (jnp.dot(p, wp2_ref[...], preferred_element_type=jnp.float32)
                          + bp2_ref[...])


def _decoder_kernel(
    d_ref,                      # (TB, dfac) bf16: tanh(z @ w_d1 + b_d1)
    y_ref,                      # (TB, TN) bf16 target item-chunk
    wd2_ref, bd2_ref,           # (dfac, TN) bf16 / (1, TN) f32 item-chunks
    probs_ref,                  # (TB, TN) output chunk (bf16 by default)
    recon_ref,                  # (TB, 1) f32 per-row recon loss
    m_sc, s_sc, py_sc, sy_sc,   # (TB, 1) f32 online-logsumexp / dot-product state
):
    k = pl.program_id(1)

    @pl.when(k == 0)
    def _init():
        m_sc[...] = jnp.full_like(m_sc, -jnp.inf)
        s_sc[...] = jnp.zeros_like(s_sc)
        py_sc[...] = jnp.zeros_like(py_sc)
        sy_sc[...] = jnp.zeros_like(sy_sc)

    probs = jnp.dot(d_ref[...], wd2_ref[...],
                    preferred_element_type=jnp.float32) + bd2_ref[...]
    probs_ref[...] = probs.astype(probs_ref.dtype)

    # Online logsumexp + running sums for the multinomial log-likelihood.
    y = y_ref[...].astype(jnp.float32)
    m_new = jnp.maximum(m_sc[...], jnp.max(probs, axis=1, keepdims=True))
    s_sc[...] = (s_sc[...] * jnp.exp(m_sc[...] - m_new)
                 + jnp.sum(jnp.exp(probs - m_new), axis=1, keepdims=True))
    m_sc[...] = m_new
    py_sc[...] += jnp.sum(probs * y, axis=1, keepdims=True)
    sy_sc[...] += jnp.sum(y, axis=1, keepdims=True)

    @pl.when(k == pl.num_programs(1) - 1)
    def _finalize():
        lse = m_sc[...] + jnp.log(s_sc[...])
        # sum_j -(probs_j - lse) * y_j  ==  lse * sum(y) - sum(probs * y)
        recon_ref[...] = lse * sy_sc[...] - py_sc[...]


# --------------------------------------------------------------------------- #
# Wrapper
# --------------------------------------------------------------------------- #
def _pick_batch_tile(batch, want):
    for t in (256, 128, 64, 32, 16):
        if t <= want and batch % t == 0:
            return t
    raise ValueError(f"batch={batch} must be divisible by a multiple of 16 <= {want}")


def _pick_item_tile(n_items, want):
    if n_items <= want:
        return n_items
    t = (want // 128) * 128
    while t >= 128:
        if n_items % t == 0:
            return t
        t -= 128
    return n_items  # fall back to a single whole-row block


def _vmem_limit_bytes(needed_bytes):
    """Generation-aware scoped-VMEM limit (never above ~85% of physical per-core VMEM)."""
    try:
        cap = int(pltpu.get_tpu_info().vmem_capacity_bytes)
    except Exception:
        cap = 64 << 20  # conservative default: v7x per-TensorCore VMEM
    cap = int(0.85 * cap)
    return min(cap, max(32 << 20, int(1.5 * needed_bytes)))


def multvae_forward(x, y, params, *, tile_batch=256, item_tile=2048,
                    probs_dtype=jnp.bfloat16):
    """Eval-mode MultVAE forward: returns (probs, recon_loss, kl, z_proj)."""
    B, n_items = x.shape
    dfac = params["w_e1"].shape[1]
    proj_hid = params["w_p1"].shape[1]

    tb = _pick_batch_tile(B, tile_batch)
    tn = _pick_item_tile(n_items, item_tile)
    nb, kc = B // tb, n_items // tn

    # bf16 inputs / weights: halves HBM traffic and feeds the MXU bf16 path.
    # (0/1 implicit-feedback matrices are exact in bf16.)
    xb = x.astype(jnp.bfloat16)
    yb = y.astype(jnp.bfloat16)
    we1 = params["w_e1"].astype(jnp.bfloat16)                           # (n_items, dfac)
    we2 = params["w_e2"].astype(jnp.bfloat16)                           # (dfac, 2*dfac) fused
    wdp1 = jnp.concatenate([params["w_d1"], params["w_p1"]],
                           axis=1).astype(jnp.bfloat16)                 # (dfac, dfac+ph) fused
    bdp1 = jnp.concatenate([params["b_d1"], params["b_p1"]], axis=1).astype(jnp.float32)
    wp2 = params["w_p2"].astype(jnp.bfloat16)
    wd2 = params["w_d2"].astype(jnp.bfloat16)                           # (dfac, n_items)

    # VMEM working-set estimate (bytes): double-buffered streamed bf16 blocks
    # (x/y/probs + w_e1/w_d2 chunks), resident small weights/biases, small outputs,
    # scratch and live f32 temporaries.
    needed = (
        2 * 2 * (3 * tb * tn + 2 * tn * dfac)
        + 2 * 2 * (2 * dfac * dfac + dfac * (dfac + proj_hid) + proj_hid * proj_hid)
        + 2 * 4 * (3 * dfac + 2 * proj_hid + tn)
        + 2 * (2 * tb * dfac + 4 * tb * proj_hid + 2 * 4 * tb * 128)
        + 4 * tb * (dfac + 5 * 128)
        + 6 * 4 * tb * max(tn, 2 * dfac, dfac + proj_hid)
    )
    compiler_params = pltpu.CompilerParams(
        dimension_semantics=("parallel", "arbitrary"),   # batch axis is megacore-shardable
        vmem_limit_bytes=_vmem_limit_bytes(needed),
    )

    # -------- encoder + proj head: streams x and w_e1 over item chunks ------------
    d, zproj, kl_rows = pl.pallas_call(
        functools.partial(_encoder_kernel, dfac=dfac),
        out_shape=(
            jax.ShapeDtypeStruct((B, dfac), jnp.bfloat16),      # d = tanh(z@w_d1+b_d1)
            jax.ShapeDtypeStruct((B, proj_hid), jnp.float32),   # z_proj
            jax.ShapeDtypeStruct((B, 1), jnp.float32),          # per-row KL
        ),
        grid_spec=pltpu.PrefetchScalarGridSpec(
            num_scalar_prefetch=0,
            grid=(nb, kc),
            in_specs=[
                pl.BlockSpec((tb, tn), lambda i, k: (i, k)),                 # x chunk
                pl.BlockSpec((tn, dfac), lambda i, k: (k, 0)),               # w_e1 chunk
                pl.BlockSpec((1, dfac), lambda i, k: (0, 0)),                # b_e1
                pl.BlockSpec((dfac, 2 * dfac), lambda i, k: (0, 0)),         # w_e2 fused
                pl.BlockSpec((1, 2 * dfac), lambda i, k: (0, 0)),            # b_e2
                pl.BlockSpec((dfac, dfac + proj_hid), lambda i, k: (0, 0)),  # w_d1|w_p1
                pl.BlockSpec((1, dfac + proj_hid), lambda i, k: (0, 0)),     # b_d1|b_p1
                pl.BlockSpec((proj_hid, proj_hid), lambda i, k: (0, 0)),     # w_p2
                pl.BlockSpec((1, proj_hid), lambda i, k: (0, 0)),            # b_p2
            ],
            out_specs=(
                pl.BlockSpec((tb, dfac), lambda i, k: (i, 0)),
                pl.BlockSpec((tb, proj_hid), lambda i, k: (i, 0)),
                pl.BlockSpec((tb, 1), lambda i, k: (i, 0)),
            ),
            scratch_shapes=[
                pltpu.VMEM((tb, dfac), jnp.float32),
                pltpu.VMEM((tb, 1), jnp.float32),
            ],
        ),
        compiler_params=compiler_params,
    )(xb, we1, params["b_e1"], we2, params["b_e2"], wdp1, bdp1, wp2, params["b_p2"])

    # -------- decoder: streams w_d2 / y / probs over item chunks ------------------
    # Note: w_e1 / w_d2 chunks are re-streamed once per batch tile; at these shapes
    # x/y/probs traffic dominates, so streaming beats resident-scratch weights.
    probs, recon_rows = pl.pallas_call(
        _decoder_kernel,
        out_shape=(
            jax.ShapeDtypeStruct((B, n_items), probs_dtype),
            jax.ShapeDtypeStruct((B, 1), jnp.float32),
        ),
        grid_spec=pltpu.PrefetchScalarGridSpec(
            num_scalar_prefetch=0,
            grid=(nb, kc),
            in_specs=[
                pl.BlockSpec((tb, dfac), lambda i, k: (i, 0)),   # d (resident across chunks)
                pl.BlockSpec((tb, tn), lambda i, k: (i, k)),     # y chunk
                pl.BlockSpec((dfac, tn), lambda i, k: (0, k)),   # w_d2 chunk
                pl.BlockSpec((1, tn), lambda i, k: (0, k)),      # b_d2 chunk
            ],
            out_specs=(
                pl.BlockSpec((tb, tn), lambda i, k: (i, k)),     # probs chunk
                pl.BlockSpec((tb, 1), lambda i, k: (i, 0)),      # per-row recon
            ),
            scratch_shapes=[pltpu.VMEM((tb, 1), jnp.float32) for _ in range(4)],
        ),
        compiler_params=compiler_params,
    )(d, yb, wd2, params["b_d2"])

    recon_loss = jnp.sum(recon_rows) / B
    kl = jnp.sum(kl_rows) / B
    return probs, recon_loss, kl, zproj


# --------------------------------------------------------------------------- #
# Parameters / reference
# --------------------------------------------------------------------------- #
def init_params(key, n_items, dfac, proj_hid):
    ks = jax.random.split(key, 10)

    def xavier(k, fan_in, fan_out):
        bound = float(np.sqrt(6.0 / (fan_in + fan_out)))
        return jax.random.uniform(k, (fan_in, fan_out), jnp.float32, -bound, bound)

    return dict(
        w_e1=xavier(ks[0], n_items, dfac),
        b_e1=(jax.random.normal(ks[1], (1, dfac)) * 1e-3).astype(jnp.float32),
        w_e2=xavier(ks[2], dfac, 2 * dfac),
        b_e2=(jax.random.normal(ks[3], (1, 2 * dfac)) * 1e-3).astype(jnp.float32),
        w_d1=xavier(ks[4], dfac, dfac),
        b_d1=(jax.random.normal(ks[5], (1, dfac)) * 1e-3).astype(jnp.float32),
        w_d2=xavier(ks[6], dfac, n_items),
        b_d2=(jax.random.normal(ks[7], (1, n_items)) * 1e-3).astype(jnp.float32),
        w_p1=xavier(ks[8], dfac, proj_hid),
        b_p1=jnp.zeros((1, proj_hid), jnp.float32),
        w_p2=xavier(ks[9], proj_hid, proj_hid),
        b_p2=jnp.zeros((1, proj_hid), jnp.float32),
    )


def ref_forward(x, y, p):
    """Pure-JAX f32 reference mirroring the PyTorch forward (eval mode)."""
    dfac = p["w_e1"].shape[1]
    h = x / jnp.maximum(jnp.linalg.norm(x, axis=1, keepdims=True), EPS)
    h = jnp.tanh(h @ p["w_e1"] + p["b_e1"])
    h = h @ p["w_e2"] + p["b_e2"]
    mu_raw = h[:, :dfac]
    lnvar = -h[:, dfac:]
    mu = mu_raw / jnp.maximum(jnp.linalg.norm(mu_raw, axis=1, keepdims=True), EPS)
    kl = 0.5 * jnp.mean(jnp.sum(-lnvar + jnp.exp(lnvar) - 1.0, axis=1))
    z = mu
    d = jnp.tanh(z @ p["w_d1"] + p["b_d1"])
    probs = d @ p["w_d2"] + p["b_d2"]
    logits = jax.nn.log_softmax(probs, axis=1)
    recon = jnp.mean(jnp.sum(-logits * y, axis=-1))
    pr = jnp.maximum(z @ p["w_p1"] + p["b_p1"], 0.0)
    zproj = pr @ p["w_p2"] + p["b_p2"]
    return probs, recon, kl, zproj


# TODO(synk): training-mode dropout and the reparameterization noise (torch.randn) are
# not implemented; this is the eval-mode (is_train=False, aug=False) forward, so z = mu.

if __name__ == "__main__":
    # Small alignment-friendly demo shapes; item_tile=256 forces 2 item chunks so the
    # streamed-weight / online-logsumexp path is exercised (grid = (2, 2)).
    B, N_ITEMS, DFAC, PROJ_HID = 512, 512, 128, 128

    key = jax.random.PRNGKey(0)
    kx, ky, kp = jax.random.split(key, 3)
    x = (jax.random.uniform(kx, (B, N_ITEMS)) > 0.8).astype(jnp.float32)
    y = (jax.random.uniform(ky, (B, N_ITEMS)) > 0.8).astype(jnp.float32)
    params = init_params(kp, N_ITEMS, DFAC, PROJ_HID)

    probs, recon_loss, kl, z_proj = multvae_forward(
        x, y, params, tile_batch=256, item_tile=256)
    jax.block_until_ready((probs, recon_loss, kl, z_proj))

    # Validate against a pure-JAX f32 reference (bf16 matmul operands and bf16 probs
    # output -> loosened tolerance).
    probs_r, recon_r, kl_r, zproj_r = ref_forward(x, y, params)
    np.testing.assert_allclose(np.asarray(probs.astype(jnp.float32)),
                               np.asarray(probs_r), rtol=3e-2, atol=3e-2)
    np.testing.assert_allclose(np.asarray(recon_loss), np.asarray(recon_r),
                               rtol=3e-2, atol=3e-2)
    np.testing.assert_allclose(np.asarray(kl), np.asarray(kl_r), rtol=3e-2, atol=3e-2)
    np.testing.assert_allclose(np.asarray(z_proj), np.asarray(zproj_r),
                               rtol=3e-2, atol=3e-2)

    print("KERNEL_OK")
</pallas_src>

<mosaic_0001>
module attributes {stable_mosaic.version = 11 : i64} {
  func.func @_encoder_kernel(%arg0: i32, %arg1: i32, %arg2: memref<256x256xbf16, #tpu.memory_space<vmem>>, %arg3: memref<256x128xbf16, #tpu.memory_space<vmem>>, %arg4: memref<1x128xf32, #tpu.memory_space<vmem>>, %arg5: memref<128x256xbf16, #tpu.memory_space<vmem>>, %arg6: memref<1x256xf32, #tpu.memory_space<vmem>>, %arg7: memref<128x256xbf16, #tpu.memory_space<vmem>>, %arg8: memref<1x256xf32, #tpu.memory_space<vmem>>, %arg9: memref<128x128xbf16, #tpu.memory_space<vmem>>, %arg10: memref<1x128xf32, #tpu.memory_space<vmem>>, %arg11: memref<256x128xbf16, #tpu.memory_space<vmem>>, %arg12: memref<256x128xf32, #tpu.memory_space<vmem>>, %arg13: memref<256x1xf32, #tpu.memory_space<vmem>>, %arg14: memref<256x128xf32, #tpu.memory_space<vmem>>, %arg15: memref<256x1xf32, #tpu.memory_space<vmem>>) attributes {dimension_semantics = [#tpu.dimension_semantics<parallel>, #tpu.dimension_semantics<arbitrary>], iteration_bounds = array<i64: 2, 2>, scalar_prefetch = 0 : i64, scratch_operands = 2 : i64, tpu.core_type = #tpu.core_type<tc>, window_params = [{transform_indices = @transform_0, window_bounds = array<i64: 256, 256>}, {transform_indices = @transform_1, window_bounds = array<i64: 256, 128>}, {pipeline_mode = #tpu.pipeline_mode<synchronous>, transform_indices = @transform_2, window_bounds = array<i64: 1, 128>}, {pipeline_mode = #tpu.pipeline_mode<synchronous>, transform_indices = @transform_3, window_bounds = array<i64: 128, 256>}, {pipeline_mode = #tpu.pipeline_mode<synchronous>, transform_indices = @transform_4, window_bounds = array<i64: 1, 256>}, {pipeline_mode = #tpu.pipeline_mode<synchronous>, transform_indices = @transform_5, window_bounds = array<i64: 128, 256>}, {pipeline_mode = #tpu.pipeline_mode<synchronous>, transform_indices = @transform_6, window_bounds = array<i64: 1, 256>}, {pipeline_mode = #tpu.pipeline_mode<synchronous>, transform_indices = @transform_7, window_bounds = array<i64: 128, 128>}, {pipeline_mode = #tpu.pipeline_mode<synchronous>, transform_indices = @transform_8, window_bounds = array<i64: 1, 128>}, {transform_indices = @transform_9, window_bounds = array<i64: 256, 128>}, {transform_indices = @transform_10, window_bounds = array<i64: 256, 128>}, {transform_indices = @transform_11, window_bounds = array<i64: 256, 1>}]} {
    %c0_i32 = arith.constant 0 : i32
    %0 = arith.cmpi eq, %arg1, %c0_i32 : i32
    %1 = arith.extui %0 : i1 to i32
    %c0_i32_0 = arith.constant 0 : i32
    %2 = arith.cmpi ne, %1, %c0_i32_0 : i32
    scf.if %2 {
      %cst_14 = arith.constant 0.000000e+00 : f32
      %19 = vector.broadcast %cst_14 : f32 to vector<256x128xf32>
      %c0_15 = arith.constant 0 : index
      %c0_16 = arith.constant 0 : index
      %20 = vector.load %arg14[%c0_15, %c0_16] : memref<256x128xf32, #tpu.memory_space<vmem>>, vector<256x128xf32>
      tpu.vector_store %arg14[%c0_15, %c0_16], %19 {strides = array<i32>} : memref<256x128xf32, #tpu.memory_space<vmem>>, vector<256x128xf32>,
      %cst_17 = arith.constant 0.000000e+00 : f32
      %21 = vector.broadcast %cst_17 : f32 to vector<256x1xf32>
      %c0_18 = arith.constant 0 : index
      %c0_19 = arith.constant 0 : index
      %22 = vector.load %arg15[%c0_18, %c0_19] : memref<256x1xf32, #tpu.memory_space<vmem>>, vector<256x1xf32>
      tpu.vector_store %arg15[%c0_18, %c0_19], %21 {strides = array<i32>} : memref<256x1xf32, #tpu.memory_space<vmem>>, vector<256x1xf32>,
    } else {
    }
    %c0 = arith.constant 0 : index
    %c0_1 = arith.constant 0 : index
    %3 = vector.load %arg2[%c0, %c0_1] : memref<256x256xbf16, #tpu.memory_space<vmem>>, vector<256x256xbf16>
    %4 = arith.extf %3 : vector<256x256xbf16> to vector<256x256xf32>
    %c0_2 = arith.constant 0 : index
    %c0_3 = arith.constant 0 : index
    %5 = vector.load %arg15[%c0_2, %c0_3] : memref<256x1xf32, #tpu.memory_space<vmem>>, vector<256x1xf32>
    %6 = arith.mulf %4, %4 : vector<256x256xf32>
    %cst = arith.constant dense<0.000000e+00> : vector<256xf32>
    %7 = vector.multi_reduction <add>, %6, %cst [1] : vector<256x256xf32> to vector<256xf32>
    %8 = vector.shape_cast %7 : vector<256xf32> to vector<256x1xf32>
    %9 = arith.addf %5, %8 : vector<256x1xf32>
    %c0_4 = arith.constant 0 : index
    %c0_5 = arith.constant 0 : index
    %10 = vector.load %arg15[%c0_4, %c0_5] : memref<256x1xf32, #tpu.memory_space<vmem>>, vector<256x1xf32>
    tpu.vector_store %arg15[%c0_4, %c0_5], %9 {strides = array<i32>} : memref<256x1xf32, #tpu.memory_space<vmem>>, vector<256x1xf32>,
    %c0_6 = arith.constant 0 : index
    %c0_7 = arith.constant 0 : index
    %11 = vector.load %arg14[%c0_6, %c0_7] : memref<256x128xf32, #tpu.memory_space<vmem>>, vector<256x128xf32>
    %c0_8 = arith.constant 0 : index
    %c0_9 = arith.constant 0 : index
    %12 = vector.load %arg3[%c0_8, %c0_9] : memref<256x128xbf16, #tpu.memory_space<vmem>>, vector<256x128xbf16>
    %cst_10 = arith.constant dense<0.000000e+00> : vector<256x128xf32>
    %13 = tpu.matmul %3, %12, %cst_10 {dimension_numbers = #tpu.dot_dimension_numbers<[1], [0], [0], [1], [0, 0, 1, 1], [], []>} : vector<256x256xbf16>, vector<256x128xbf16>, vector<256x128xf32> -> vector<256x128xf32>
    %14 = arith.addf %11, %13 : vector<256x128xf32>
    %c0_11 = arith.constant 0 : index
    %c0_12 = arith.constant 0 : index
    %15 = vector.load %arg14[%c0_11, %c0_12] : memref<256x128xf32, #tpu.memory_space<vmem>>, vector<256x128xf32>
    tpu.vector_store %arg14[%c0_11, %c0_12], %14 {strides = array<i32>} : memref<256x128xf32, #tpu.memory_space<vmem>>, vector<256x128xf32>,
    %c1_i32 = arith.constant 1 : i32
    %16 = arith.cmpi eq, %arg1, %c1_i32 : i32
    %17 = arith.extui %16 : i1 to i32
    %c0_i32_13 = arith.constant 0 : i32
    %18 = arith.cmpi ne, %17, %c0_i32_13 : i32
    scf.if %18 {
      %c0_14 = arith.constant 0 : index
      %c0_15 = arith.constant 0 : index
      %19 = vector.load %arg15[%c0_14, %c0_15] : memref<256x1xf32, #tpu.memory_space<vmem>>, vector<256x1xf32>
      %cst_16 = arith.constant 1.000000e-24 : f32
      %20 = vector.broadcast %cst_16 : f32 to vector<256x1xf32>
      %21 = arith.maximumf %19, %20 : vector<256x1xf32>
      %22 = math.rsqrt %21 : vector<256x1xf32>
      %c0_17 = arith.constant 0 : index
      %c0_18 = arith.constant 0 : index
      %23 = vector.load %arg14[%c0_17, %c0_18] : memref<256x128xf32, #tpu.memory_space<vmem>>, vector<256x128xf32>
      %24 = vector.broadcast %22 : vector<256x1xf32> to vector<256x128xf32>
      %25 = arith.mulf %23, %24 : vector<256x128xf32>
      %c0_19 = arith.constant 0 : index
      %c0_20 = arith.constant 0 : index
      %26 = vector.load %arg4[%c0_19, %c0_20] : memref<1x128xf32, #tpu.memory_space<vmem>>, vector<1x128xf32>
      %27 = vector.broadcast %26 : vector<1x128xf32> to vector<256x128xf32>
      %28 = arith.addf %25, %27 : vector<256x128xf32>
      %29 = math.tanh %28 : vector<256x128xf32>
      %30 = arith.truncf %29 : vector<256x128xf32> to vector<256x128xbf16>
      %c0_21 = arith.constant 0 : index
      %c0_22 = arith.constant 0 : index
      %31 = vector.load %arg5[%c0_21, %c0_22] : memref<128x256xbf16, #tpu.memory_space<vmem>>, vector<128x256xbf16>
      %cst_23 = arith.constant dense<0.000000e+00> : vector<256x256xf32>
      %32 = tpu.matmul %30, %31, %cst_23 {dimension_numbers = #tpu.dot_dimension_numbers<[1], [0], [0], [1], [0, 0, 1, 1], [], []>} : vector<256x128xbf16>, vector<128x256xbf16>, vector<256x256xf32> -> vector<256x256xf32>
      %c0_24 = arith.constant 0 : index
      %c0_25 = arith.constant 0 : index
      %33 = vector.load %arg6[%c0_24, %c0_25] : memref<1x256xf32, #tpu.memory_space<vmem>>, vector<1x256xf32>
      %34 = vector.broadcast %33 : vector<1x256xf32> to vector<256x256xf32>
      %35 = arith.addf %32, %34 : vector<256x256xf32>
      %36 = vector.extract_strided_slice %35 {offsets = [0, 0], sizes = [256, 128], strides = [1, 1]} : vector<256x256xf32> to vector<256x128xf32>
      %37 = vector.extract_strided_slice %35 {offsets = [0, 128], sizes = [256, 128], strides = [1, 1]} : vector<256x256xf32> to vector<256x128xf32>
      %cst_26 = arith.constant 0.000000e+00 : f32
      %38 = vector.broadcast %cst_26 : f32 to vector<256x128xf32>
      %39 = arith.subf %38, %37 : vector<256x128xf32>
      %40 = arith.mulf %36, %36 : vector<256x128xf32>
      %cst_27 = arith.constant dense<0.000000e+00> : vector<256xf32>
      %41 = vector.multi_reduction <add>, %40, %cst_27 [1] : vector<256x128xf32> to vector<256xf32>
      %42 = vector.shape_cast %41 : vector<256xf32> to vector<256x1xf32>
      %cst_28 = arith.constant 1.000000e-24 : f32
      %43 = vector.broadcast %cst_28 : f32 to vector<256x1xf32>
      %44 = arith.maximumf %42, %43 : vector<256x1xf32>
      %45 = math.rsqrt %44 : vector<256x1xf32>
      %46 = vector.broadcast %45 : vector<256x1xf32> to vector<256x128xf32>
      %47 = arith.mulf %36, %46 : vector<256x128xf32>
      %48 = arith.truncf %47 : vector<256x128xf32> to vector<256x128xbf16>
      %cst_29 = arith.constant 0.000000e+00 : f32
      %49 = vector.broadcast %cst_29 : f32 to vector<256x128xf32>
      %50 = arith.subf %49, %39 : vector<256x128xf32>
      %51 = math.exp %39 : vector<256x128xf32>
      %52 = arith.addf %50, %51 : vector<256x128xf32>
      %cst_30 = arith.constant 1.000000e+00 : f32
      %53 = vector.broadcast %cst_30 : f32 to vector<256x128xf32>
      %54 = arith.subf %52, %53 : vector<256x128xf32>
      %cst_31 = arith.constant dense<0.000000e+00> : vector<256xf32>
      %55 = vector.multi_reduction <add>, %54, %cst_31 [1] : vector<256x128xf32> to vector<256xf32>
      %56 = vector.shape_cast %55 : vector<256xf32> to vector<256x1xf32>
      %cst_32 = arith.constant 5.000000e-01 : f32
      %57 = vector.broadcast %cst_32 : f32 to vector<256x1xf32>
      %58 = arith.mulf %57, %56 : vector<256x1xf32>
      %c0_33 = arith.constant 0 : index
      %c0_34 = arith.constant 0 : index
      %59 = vector.load %arg13[%c0_33, %c0_34] : memref<256x1xf32, #tpu.memory_space<vmem>>, vector<256x1xf32>
      tpu.vector_store %arg13[%c0_33, %c0_34], %58 {strides = array<i32>} : memref<256x1xf32, #tpu.memory_space<vmem>>, vector<256x1xf32>,
      %c0_35 = arith.constant 0 : index
      %c0_36 = arith.constant 0 : index
      %60 = vector.load %arg7[%c0_35, %c0_36] : memref<128x256xbf16, #tpu.memory_space<vmem>>, vector<128x256xbf16>
      %cst_37 = arith.constant dense<0.000000e+00> : vector<256x256xf32>
      %61 = tpu.matmul %48, %60, %cst_37 {dimension_numbers = #tpu.dot_dimension_numbers<[1], [0], [0], [1], [0, 0, 1, 1], [], []>} : vector<256x128xbf16>, vector<128x256xbf16>, vector<256x256xf32> -> vector<256x256xf32>
      %c0_38 = arith.constant 0 : index
      %c0_39 = arith.constant 0 : index
      %62 = vector.load %arg8[%c0_38, %c0_39] : memref<1x256xf32, #tpu.memory_space<vmem>>, vector<1x256xf32>
      %63 = vector.broadcast %62 : vector<1x256xf32> to vector<256x256xf32>
      %64 = arith.addf %61, %63 : vector<256x256xf32>
      %65 = vector.extract_strided_slice %64 {offsets = [0, 0], sizes = [256, 128], strides = [1, 1]} : vector<256x256xf32> to vector<256x128xf32>
      %66 = math.tanh %65 : vector<256x128xf32>
      %67 = arith.truncf %66 : vector<256x128xf32> to vector<256x128xbf16>
      %c0_40 = arith.constant 0 : index
      %c0_41 = arith.constant 0 : index
      %68 = vector.load %arg11[%c0_40, %c0_41] : memref<256x128xbf16, #tpu.memory_space<vmem>>, vector<256x128xbf16>
      tpu.vector_store %arg11[%c0_40, %c0_41], %67 {strides = array<i32>} : memref<256x128xbf16, #tpu.memory_space<vmem>>, vector<256x128xbf16>,
      %69 = vector.extract_strided_slice %64 {offsets = [0, 128], sizes = [256, 128], strides = [1, 1]} : vector<256x256xf32> to vector<256x128xf32>
      %cst_42 = arith.constant 0.000000e+00 : f32
      %70 = vector.broadcast %cst_42 : f32 to vector<256x128xf32>
      %71 = arith.maximumf %69, %70 : vector<256x128xf32>
      %72 = arith.truncf %71 : vector<256x128xf32> to vector<256x128xbf16>
      %c0_43 = arith.constant 0 : index
      %c0_44 = arith.constant 0 : index
      %73 = vector.load %arg9[%c0_43, %c0_44] : memref<128x128xbf16, #tpu.memory_space<vmem>>, vector<128x128xbf16>
      %cst_45 = arith.constant dense<0.000000e+00> : vector<256x128xf32>
      %74 = tpu.matmul %72, %73, %cst_45 {dimension_numbers = #tpu.dot_dimension_numbers<[1], [0], [0], [1], [0, 0, 1, 1], [], []>} : vector<256x128xbf16>, vector<128x128xbf16>, vector<256x128xf32> -> vector<256x128xf32>
      %c0_46 = arith.constant 0 : index
      %c0_47 = arith.constant 0 : index
      %75 = vector.load %arg10[%c0_46, %c0_47] : memref<1x128xf32, #tpu.memory_space<vmem>>, vector<1x128xf32>
      %76 = vector.broadcast %75 : vector<1x128xf32> to vector<256x128xf32>
      %77 = arith.addf %74, %76 : vector<256x128xf32>
      %c0_48 = arith.constant 0 : index
      %c0_49 = arith.constant 0 : index
      %78 = vector.load %arg12[%c0_48, %c0_49] : memref<256x128xf32, #tpu.memory_space<vmem>>, vector<256x128xf32>
      tpu.vector_store %arg12[%c0_48, %c0_49], %77 {strides = array<i32>} : memref<256x128xf32, #tpu.memory_space<vmem>>, vector<256x128xf32>,
    } else {
    }
    return
  }
  func.func @transform_0(%arg0: i32, %arg1: i32) -> (i32, i32) {
    %c0_i32 = arith.constant 0 : i32
    return %arg0, %arg1 : i32, i32
  }
  func.func @transform_1(%arg0: i32, %arg1: i32) -> (i32, i32) {
    %c0_i32 = arith.constant 0 : i32
    %c0_i32_0 = arith.constant 0 : i32
    return %arg1, %c0_i32 : i32, i32
  }
  func.func @transform_2(%arg0: i32, %arg1: i32) -> (i32, i32) {
    %c0_i32 = arith.constant 0 : i32
    %c0_i32_0 = arith.constant 0 : i32
    %c0_i32_1 = arith.constant 0 : i32
    return %c0_i32, %c0_i32_0 : i32, i32
  }
  func.func @transform_3(%arg0: i32, %arg1: i32) -> (i32, i32) {
    %c0_i32 = arith.constant 0 : i32
    %c0_i32_0 = arith.constant 0 : i32
    %c0_i32_1 = arith.constant 0 : i32
    return %c0_i32, %c0_i32_0 : i32, i32
  }
  func.func @transform_4(%arg0: i32, %arg1: i32) -> (i32, i32) {
    %c0_i32 = arith.constant 0 : i32
    %c0_i32_0 = arith.constant 0 : i32
    %c0_i32_1 = arith.constant 0 : i32
    return %c0_i32, %c0_i32_0 : i32, i32
  }
  func.func @transform_5(%arg0: i32, %arg1: i32) -> (i32, i32) {
    %c0_i32 = arith.constant 0 : i32
    %c0_i32_0 = arith.constant 0 : i32
    %c0_i32_1 = arith.constant 0 : i32
    return %c0_i32, %c0_i32_0 : i32, i32
  }
  func.func @transform_6(%arg0: i32, %arg1: i32) -> (i32, i32) {
    %c0_i32 = arith.constant 0 : i32
    %c0_i32_0 = arith.constant 0 : i32
    %c0_i32_1 = arith.constant 0 : i32
    return %c0_i32, %c0_i32_0 : i32, i32
  }
  func.func @transform_7(%arg0: i32, %arg1: i32) -> (i32, i32) {
    %c0_i32 = arith.constant 0 : i32
    %c0_i32_0 = arith.constant 0 : i32
    %c0_i32_1 = arith.constant 0 : i32
    return %c0_i32, %c0_i32_0 : i32, i32
  }
  func.func @transform_8(%arg0: i32, %arg1: i32) -> (i32, i32) {
    %c0_i32 = arith.constant 0 : i32
    %c0_i32_0 = arith.constant 0 : i32
    %c0_i32_1 = arith.constant 0 : i32
    return %c0_i32, %c0_i32_0 : i32, i32
  }
  func.func @transform_9(%arg0: i32, %arg1: i32) -> (i32, i32) {
    %c0_i32 = arith.constant 0 : i32
    %c0_i32_0 = arith.constant 0 : i32
    return %arg0, %c0_i32 : i32, i32
  }
  func.func @transform_10(%arg0: i32, %arg1: i32) -> (i32, i32) {
    %c0_i32 = arith.constant 0 : i32
    %c0_i32_0 = arith.constant 0 : i32
    return %arg0, %c0_i32 : i32, i32
  }
  func.func @transform_11(%arg0: i32, %arg1: i32) -> (i32, i32) {
    %c0_i32 = arith.constant 0 : i32
    %c0_i32_0 = arith.constant 0 : i32
    return %arg0, %c0_i32 : i32, i32
  }
}

</mosaic_0001>

<bundles_post_ra>
// kernel: tpu_custom_call.1
= control target key start
LH: loop header
LB: loop body
LE: loop exit
PB: predicated region body
PF: predicated region fallthrough
CT: control target
= control target key end

     0   :  { %s8445_s0 = inlined_call_operand.hbm [shape: bf16[512,512], index: 0, kind: input, shape index: {}]   ;;  %s8446_s1 = inlined_call_operand.hbm [shape: bf16[512,128], index: 1, kind: input, shape index: {}]   ;;  %s8447_s2 = inlined_call_operand.hbm [shape: f32[1,128], index: 2, kind: input, shape index: {}]   ;;  %s8448_s3 = inlined_call_operand.hbm [shape: bf16[128,256], index: 3, kind: input, shape index: {}]   ;;  %s8449_s4 = inlined_call_operand.vmem [shape: f32[1,256], index: 4, kind: input, shape index: {}]   ;;  %s8450_s5 = inlined_call_operand.hbm [shape: bf16[128,256], index: 5, kind: input, shape index: {}]   ;;  %s8451_s6 = inlined_call_operand.vmem [shape: f32[1,256], index: 6, kind: input, shape index: {}]   ;;  %s8452_s7 = inlined_call_operand.hbm [shape: bf16[128,128], index: 7, kind: input, shape index: {}]   ;;  %s8453_s8 = inlined_call_operand.vmem [shape: f32[1,128], index: 8, kind: input, shape index: {}]   ;;  %s8454_s9 = inlined_call_operand.hbm [shape: bf16[512,128], index: 9, kind: output, shape index: {0}]   ;;  %s8455_s10 = inlined_call_operand.hbm [shape: f32[512,128], index: 10, kind: output, shape index: {1}]   ;;  %s8456_s11 = inlined_call_operand.vmem [shape: f32[512,1], index: 11, kind: output, shape index: {2}]  }
   0x1   :  { %8506 = sst [smem:[#allocation68_spill]] %s8445_s0 }
   0x2   :  { %8507 = sst [smem:[#allocation69_spill]] %s8447_s2 }
   0x3   :  { %8508 = sst [smem:[#allocation70_spill]] %s8448_s3 }
   0x4   :  { %8509 = sst [smem:[#allocation71_spill]] %s8449_s4 }
   0x5   :  { %8510 = sst [smem:[#allocation72_spill]] %s8450_s5 }
   0x6   :  { %8511 = sst [smem:[#allocation73_spill]] %s8451_s6 }
   0x7   :  { %8512 = sst [smem:[#allocation74_spill]] %s8452_s7 }
   0x8   :  { %8513 = sst [smem:[#allocation75_spill]] %s8453_s8 }
   0x9   :  { %8514 = sst [smem:[#allocation76_spill]] %s8454_s9 }
   0xa   :  { %8515 = sst [smem:[#allocation77_spill]] %s8455_s10 }
   0xb   :  { %8516 = sst [smem:[#allocation78_spill]] %s8456_s11 }
   0xc   :  { %17 = vsyncpa [#allocation5], 0 }
   0xd   :  { %19 = vsyncpa [#allocation5 + $0x1], 0 }
   0xe   :  { %20 = vsyncpa [#allocation8], 0 }
   0xf   :  { %22 = vsyncpa [#allocation8 + $0x1], 0 }
  0x10   :  { %23 = vsyncpa [#allocation11], 0 }
  0x11   :  { %24 = vsyncpa [#allocation14], 0 }
  0x12   :  { %25 = vsyncpa [#allocation6], 0 }
  0x13   :  { %27 = vsyncpa [#allocation6 + $0x1], 0 }
  0x14   :  { %28 = vsyncpa [#allocation17], 0 }
  0x15   :  { %30 = vsyncpa [#allocation17 + $0x1], 0  ;;  %s5813_s17 = smov 0   ;;  %s5815_s18 = smov 0  }
  0x16   :  { %s5817_s19 = smov 0   ;;  %s5819_s20 = smov 0  }
  0x17   :  { %s5821_s21 = smov 0   ;;  %s5823_s22 = smov 0  }
  0x18   :  { %s5825_s23 = smov 0   ;;  %s5827_s24 = smov 0  }
  0x19   :  { %s5829_s25 = smov 0   ;;  %s5831_s26 = smov 0  }
  0x1a   :  { %s5833_s27 = smov 0   ;;  %s5835_s28 = smov 0  }
  0x1b   :  { %s5837_s29 = smov 0   ;;  %s5839_s30 = smov 0  }
  0x1c LB: > { %8517 = sst [smem:[#allocation25_spill]] %s5684_s17  ;;  %s5880_s12 = sadd.s32 4294967295, %s5736_s30   ;;  %s5736_s30 = sphi %s5839_s30, %s36_s30   ;;  %s5732_s29 = sphi %s5837_s29, %s8769_s29   ;;  %s5728_s28 = sphi %s5835_s28, %s8780_s28   ;;  %s5724_s27 = sphi %s5833_s27, %s8779_s27   ;;  %s5720_s26 = sphi %s5831_s26, %s8778_s26   ;;  %s5716_s25 = sphi %s5829_s25, %s8766_s25   ;;  %s5712_s24 = sphi %s5827_s24, %s8777_s24   ;;  %s5708_s23 = sphi %s5825_s23, %s8776_s23   ;;  %s5704_s22 = sphi %s5823_s22, %s8775_s22   ;;  %s5700_s21 = sphi %s5821_s21, %s8774_s21   ;;  %s5696_s20 = sphi %s5819_s20, %s8773_s20   ;;  %s5692_s19 = sphi %s5817_s19, %s8772_s19   ;;  %s5688_s18 = sphi %s5815_s18, %s8771_s18   ;;  %s5684_s17 = sphi %s5813_s17, %s8770_s17  }
  0x1d   : > { %8518 = sst [smem:[#allocation26_spill]] %s5716_s25  ;;  %s4202_s13 = sadd.s32 4294967294, %s5736_s30  }
  0x1e   : > { %8519 = sst [smem:[#allocation27_spill]] %s5720_s26  ;;  %p70_p0 = scmp.ne.s32.totalorder %s5712_s24, %s5708_s23 }
  0x1f   : > { %8520 = sst [smem:[#allocation28_spill]] %s5724_s27  ;;  %p71_p1 = scmp.eq.s32.totalorder %s5880_s12, 0 }
  0x20   : > { %8521 = sst [smem:[#allocation29_spill]] %s5732_s29  ;;  %p96_p2 = scmp.ne.s32.totalorder %s5700_s21, %s5696_s20 }
  0x21   : > { %p266_p3 = scmp.ne.s32.totalorder %s5692_s19, %s5688_s18  ;;  %p5890_p4 = por %p71_p1, %p70_p0 }
  0x22   : > { %p267_p5 = scmp.eq.s32.totalorder %s5880_s12, 3  ;;  %p5897_p6 = por %p96_p2, %p71_p1 }
  0x23   : > { %p272_p7 = scmp.ne.s32.totalorder %s5688_s18, %s5684_s17  ;;  %p273_p9 = scmp.eq.s32.totalorder %s4202_s13, 3 }
  0x24   : > { %p5903_p8 = por %p267_p5, %p266_p3  ;;  %p4203_p10 = scmp.ge.s32.totalorder %s5736_s30, 1 }
  0x25   : > { %p332_p11 = scmp.lt.s32.totalorder %s5736_s30, 5  ;;  %p5909_p12 = por %p273_p9, %p272_p7 }
  0x26   : > { %s8524_s16 = scalar_select %p5903_p8, 1, 0 }
  0x27   : > { %s8526_s20 = scalar_select %p5909_p12, 1, 0 }
  0x28   : > { %8525 = sst [smem:[#allocation30_spill]] %s8524_s16  ;;  %p5913_p13 = pnand %p4203_p10, %p332_p11 }
  0x29   : > { %8527 = sst [smem:[#allocation31_spill]] %s8526_s20  ;;  %s5738_s16 = smov [#allocation9]  }
  0x2a   : > { %s8529_s2 = sld [smem:[#allocation69_spill]]  ;;  %p4873_p0 = pneg %p5913_p13 }
  0x2b   : > { %s346_s13 = sshll.u32 %s5738_s16, 4  ;;  %s8531_s3 = sld [smem:[#allocation70_spill]]  ;;  %s347_s13 = int_to_ptr.vmem [resolvable:$true] %s346_s13 }
  0x2c   : > { %p5924_p2 = pnand %p4873_p0, %p71_p1  ;;  %s5739_s9 = smov [#allocation10]  }
  0x2d   : > { %s357_s10 = sshll.u32 %s5739_s9, 4  ;;  %s8532_s5 = sld [smem:[#allocation72_spill]]  ;;  %s358_s10 = int_to_ptr.vmem [resolvable:$true] %s357_s10 }
  0x2e   : > { %s8466_s11 = smov 128   ;;  %s8467_s27 = smov 8  }
  0x2f   : > { %s5742_s6 = smov [#allocation12]   ;;  %s8533_s7 = sld [smem:[#allocation74_spill]] }
  0x30   : > { %s344_s17 = sshll.u32 %s8529_s2, 4  ;;  %s8465_s16 = smov 4   ;;  %s345_s17 = int_to_ptr.hbm [resolvable:$true] %s344_s17 }
  0x31   : > { %s355_s4 = sshll.u32 %s8531_s3, 4  ;;  %s48_s20 = sadd.s32 1, %s5732_s29  ;;  %s356_s4 = int_to_ptr.hbm [resolvable:$true] %s355_s4 }
  0x32   : > { %4876 = dma.hbm_to_vmem [thread:$0]  (!%p5924_p2), %s345_s17, 16, %s347_s13, [#allocation8]  }
  0x33   : > { %s372_s26 = sshll.u32 %s8532_s5, 4  ;;  %s374_s17 = sshll.u32 %s5742_s6, 4  ;;  %s373_s26 = int_to_ptr.hbm [resolvable:$true] %s372_s26  ;;  %s375_s17 = int_to_ptr.vmem [resolvable:$true] %s374_s17 }
  0x34   : > { %4879 = dma.hbm_to_vmem [thread:$0]  (!%p5924_p2), %s356_s4, 2048, %s358_s10, [#allocation11], %s8466_s11, %s8466_s11, %s8467_s27  }
  0x35   : > { %s389_s2 = sshll.u32 %s8533_s7, 4  ;;  %s5743_s4 = smov [#allocation13]   ;;  %s390_s2 = int_to_ptr.hbm [resolvable:$true] %s389_s2 }
  0x36   : > { %4882 = dma.hbm_to_vmem [thread:$0]  (!%p5924_p2), %s373_s26, 2048, %s375_s17, [#allocation11], %s8466_s11, %s8466_s11, %s8467_s27  }
  0x37   : > { %s391_s9 = sshll.u32 %s5743_s4, 4  ;;  %s8464_s10 = smov 64   ;;  %s392_s9 = int_to_ptr.vmem [resolvable:$true] %s391_s9 }
  0x38   : > { %4885 = dma.hbm_to_vmem [thread:$0]  (!%p5924_p2), %s390_s2, 1024, %s392_s9, [#allocation14], %s8464_s10, %s8464_s10, %s8465_s16  }
  0x39   : > { %s45_s6 = sadd.s32 1, %s5728_s28  ;;  %s57_s13 = sadd.s32 1, %s5716_s25 }
  0x3a   : > { %p46_p3 = scmp.ge.s32.totalorder %s45_s6, 2  ;;  %p64_p5 = scmp.ne.s32.totalorder %s5716_s25, %s5712_s24 }
  0x3b   : > { %p65_p7 = scmp.eq.s32.totalorder %s5736_s30, 0  ;;  %s256_s17 = sadd.s32 1, %s5692_s19 }
  0x3c   : > { %s8782_s6 = smov (%p46_p3, %s45_s6), 0  ;;  %s8784_s20 = smov (!%p46_p3, %s48_s20), %s5732_s29 }
  0x3d   : > { %8534 = sst [smem:[#allocation32_spill]] %s8782_s6  ;;  %s5964_s26 = ssub.s32 %s5728_s28, %s8782_s6 }
  0x3e   : > { %p50_p9 = scmp.ge.s32.totalorder %s8784_s20, 2  ;;  %p81_p10 = scmp.eq.s32.totalorder %s5964_s26, 0 }
  0x3f   : > { %p5970_p11 = por %p65_p7, %p64_p5  ;;  %p4904_p0 = scmp.lt.s32.totalorder %s5736_s30, 4 }
  0x40   : > { %s8786_s20 = smov (%p50_p9, %s8784_s20), 0  ;;  %s408_s2 = sand.u32 1, %s5716_s25  }
  0x41   : > { %8536 = sst [smem:[#allocation33_spill]] %s8786_s20  ;;  %s52_s4 = ssub.s32 %s5732_s29, %s8786_s20 }
  0x42   : > { %s54_s9 = sor.u32 %s5964_s26, %s52_s4  ;;  %p254_p2 = scmp.eq.s32.totalorder %s52_s4, 0 }
  0x43   : > { %p55_p3 = scmp.eq.s32.totalorder %s54_s9, 0  ;;  %s4209_s10 = sshll.u32 %s408_s2, 8 }
  0x44   : > { %s5983_s16 = scalar_select %p254_p2, %s5692_s19, %s256_s17  }
  0x45   : > { %s5986_s11 = scalar_select %p55_p3, %s5716_s25, %s57_s13  }
  0x46   : > { %8537 = sst [smem:[#allocation34_spill]] %s5983_s16  ;;  %s4211_s27 = sshll.u32 %s5728_s28, 1 }
  0x47   : > { %8538 = sst [smem:[#allocation35_spill]] %s5986_s11  ;;  %s4622_s3 = sshll.u32 %s5732_s29, 7 }
  0x48   : > { %s412_s5 = scalar_lea.vmem [#allocation4], %s4209_s10  ;;  %s418_s20 = sadd.s32 %s4622_s3, %s4211_s27 }
  0x49   : > { %s423_s7 = sshll.u32 %s412_s5, 4  ;;  %s4213_s4 = sshll.u32 %s418_s20, 2  ;;  %s424_s7 = int_to_ptr.vmem [resolvable:$true] %s423_s7 }
  0x4a   : > { %p4887_p5 = pnand %p4904_p0, %p5970_p11  ;;  %s8539_s0 = sld [smem:[#allocation68_spill]] }
  0x4b   : > { %s409_s29 = scalar_lea.sflag [#allocation5], %s408_s2  ;;  %s5746_s11 = smov 256  }
  0x4c   : > { %s8540_s25 = smov 8   ;;  %s8541_s10 = smov 128  }
  0x4d   : > { %s433_s5 = sand.u32 1, %s5736_s30   ;;  %s83_s3 = sadd.s32 1, %s5704_s22 }
  0x4e   : > { %p90_p9 = scmp.ne.s32.totalorder %s5704_s22, %s5700_s21  ;;  %s435_s20 = sand.u32 1, %s5704_s22  }
  0x4f   : > { %s6006_s27 = scalar_select %p81_p10, %s5704_s22, %s83_s3  }
  0x50   : > { %s420_s9 = scalar_lea.hbm %s8539_s0, %s4213_s4  ;;  %p92_p11 = por %p90_p9, %p65_p7 }
  0x51   : > { %s421_s6 = sshll.u32 %s420_s9, 4  ;;  %s4623_s8 = sshll.u32 %s5728_s28, 7  ;;  %s422_s6 = int_to_ptr.hbm [resolvable:$true] %s421_s6 }
  0x52   : > { %4889 = dma.hbm_to_vmem [thread:$0]  (!%p4887_p5), %s422_s6, 4096, %s424_s7, %s409_s29, %s5746_s11, %s8541_s10, %s8540_s25  }
  0x53   : > { %s4214_s13 = sshll.u32 %s435_s20, 7  ;;  %s442_s2 = scalar_lea.hbm %s8446_s1, %s4623_s8 }
  0x54   : > { %s443_s9 = sshll.u32 %s442_s2, 4  ;;  %s437_s0 = scalar_lea.vmem [#allocation7], %s4214_s13  ;;  %s444_s9 = int_to_ptr.hbm [resolvable:$true] %s443_s9 }
  0x55   : > { %s445_s16 = sshll.u32 %s437_s0, 4  ;;  %p4890_p2 = pnand %p4904_p0, %p92_p11  ;;  %s446_s16 = int_to_ptr.vmem [resolvable:$true] %s445_s16 }
  0x56   : > { %s434_s7 = scalar_lea.sflag [#allocation8], %s433_s5  ;;  %s8542_s11 = smov 4  }
  0x57   : > { %s8543_s25 = smov 64   ;;  %457 = sbr.rel (%p5913_p13) target bundleno = 1495 (0x5d7), region = 56 }
  0x58   : > { %4892 = dma.hbm_to_vmem [thread:$0]  (!%p4890_p2), %s444_s9, 2048, %s446_s16, %s434_s7, %s8543_s25, %s8543_s25, %s8542_s11  }
  0x59   : > { %s459_s29 = sand.u32 (!%p5913_p13), 1, %s5712_s24  }
  0x5a   : > { %s4218_s6 = sshll.u32 (!%p5913_p13), %s459_s29, 8  ;;  %s460_s26 = scalar_lea.sflag (!%p5913_p13), [#allocation5], %s459_s29 }
  0x5b   : > { %s6023_s10 = scalar_lea.vmem (!%p5913_p13), [#allocation4], %s4218_s6 }
  0x5c   : > { %5655 = dma.done.wait (%p5890_p4), %s460_s26, 4096  }
  0x5d   : > { %5657 = vsyncadd (%p5890_p4), %s460_s26, 4294963200  ;;  %s469_s0 = sand.u32 1, %s5880_s12   ;;  %s471_s16 = sand.u32 1, %s5700_s21  }
  0x5e   : > { %s4219_s5 = sshll.u32 %s471_s16, 7  ;;  %s470_s23 = scalar_lea.sflag [#allocation8], %s469_s0 }
  0x5f   : > { %s6031_s3 = scalar_lea.vmem [#allocation7], %s4219_s5 }
  0x60   : > { %5659 = dma.done.wait (%p5897_p6), %s470_s23, 2048  }
  0x61   : > { %5661 = vsyncadd (%p5897_p6), %s470_s23, 4294965248 }
  0x62   : > { %5663 = dma.done.wait (%p71_p1), [#allocation8], 16  }
  0x63   : > { %5665 = vsyncadd (%p71_p1), [#allocation8], 4294967280 }
  0x64   : > { %5667 = dma.done.wait (%p71_p1), [#allocation11], 4096  }
  0x65   : > { %5669 = vsyncadd (%p71_p1), [#allocation11], 4294963200 }
  0x66   : > { %5671 = dma.done.wait (%p71_p1), [#allocation14], 1024  }
  0x67   : > { %5673 = vsyncadd (%p71_p1), [#allocation14], 4294966272  ;;  %s8544_s14 = sld [smem:[#allocation28_spill]]  ;;  %s6050_s15 = sand.u32 1, %s5688_s18  }
  0x68   : > { %s4224_s8 = sshll.u32 %s6050_s15, 7  ;;  %s4225_s13 = sshll.u32 %s6050_s15, 8 }
  0x69   : > { %s8545_s9 = sld [smem:[#allocation78_spill]]  ;;  %s6060_s11 = scalar_lea.vmem [#allocation15], %s4224_s8 }
  0x6a   : > { %s6062_s12 = scalar_lea.vmem [#allocation16], %s4225_s13  ;;  %s8546_s25 = sld [smem:[#allocation27_spill]] }
  0x6d   : > { %s4226_s20 = sshll.u32 %s8544_s14, 5 }
  0x6e   : > { %p554_p4 = scmp.lt.s32.totalorder %s4226_s20, 63 }
  0x70   : > { %s8788_s20 = smov (!%p554_p4, %s4226_s20), 63  ;;  %p4228_p1 = scmp.ne.s32.totalorder %s8546_s25, 0 }
  0x71   : > { %s4227_s4 = sshll.u32 %s8788_s20, 3 }
  0x72   : > { %s6058_s7 = scalar_lea.vmem %s8545_s9, %s4227_s4  ;;  %562 = sbr.rel (%p4228_p1) target bundleno = 184 (0xb8), region = 84 }
  0x77   : > { %v5747_v0 = vmov 0.0   ;;  %vm595_vm0 = vcmask 7168  }
  0x78   : > { %563 = vst [vmem:[#allocation2 + $0xb0] sm:$0xff] %v5747_v0 }
  0x79   : > { %564 = vst [vmem:[#allocation2] sm:$0xff] %v5747_v0 }
  0x7a   : > { %565 = vst [vmem:[#allocation2 + $0xd8] sm:$0xff] %v5747_v0 }
  0x7b   : > { %566 = vst [vmem:[#allocation2 + $0x18] sm:$0xff] %v5747_v0 }
  0x7c   : > { %567 = vst [vmem:[#allocation2 + $0x50] sm:$0xff] %v5747_v0 }
  0x7d   : > { %568 = vst [vmem:[#allocation2 + $0x68] sm:$0xff] %v5747_v0 }
  0x7e   : > { %569 = vst [vmem:[#allocation2 + $0x30] sm:$0xff] %v5747_v0 }
  0x7f   : > { %570 = vst [vmem:[#allocation2 + $0x48] sm:$0xff] %v5747_v0 }
  0x80   : > { %571 = vst [vmem:[#allocation2 + $0x80] sm:$0xff] %v5747_v0 }
  0x81   : > { %572 = vst [vmem:[#allocation2 + $0x88] sm:$0xff] %v5747_v0 }
  0x82   : > { %573 = vst [vmem:[#allocation2 + $0xe8] sm:$0xff] %v5747_v0 }
  0x83   : > { %574 = vst [vmem:[#allocation2 + $0xb8] sm:$0xff] %v5747_v0 }
  0x84   : > { %575 = vst [vmem:[#allocation2 + $0x60] sm:$0xff] %v5747_v0 }
  0x85   : > { %576 = vst [vmem:[#allocation2 + $0xf0] sm:$0xff] %v5747_v0 }
  0x86   : > { %577 = vst [vmem:[#allocation2 + $0x8] sm:$0xff] %v5747_v0 }
  0x87   : > { %578 = vst [vmem:[#allocation2 + $0x78] sm:$0xff] %v5747_v0 }
  0x88   : > { %579 = vst [vmem:[#allocation2 + $0x38] sm:$0xff] %v5747_v0 }
  0x89   : > { %580 = vst [vmem:[#allocation2 + $0x58] sm:$0xff] %v5747_v0 }
  0x8a   : > { %581 = vst [vmem:[#allocation2 + $0x40] sm:$0xff] %v5747_v0 }
  0x8b   : > { %582 = vst [vmem:[#allocation2 + $0xc8] sm:$0xff] %v5747_v0 }
  0x8c   : > { %583 = vst [vmem:[#allocation2 + $0xe0] sm:$0xff] %v5747_v0 }
  0x8d   : > { %584 = vst [vmem:[#allocation2 + $0x90] sm:$0xff] %v5747_v0 }
  0x8e   : > { %585 = vst [vmem:[#allocation2 + $0x70] sm:$0xff] %v5747_v0 }
  0x8f   : > { %586 = vst [vmem:[#allocation2 + $0xc0] sm:$0xff] %v5747_v0 }
  0x90   : > { %587 = vst [vmem:[#allocation2 + $0xa8] sm:$0xff] %v5747_v0 }
  0x91   : > { %588 = vst [vmem:[#allocation2 + $0xd0] sm:$0xff] %v5747_v0 }
  0x92   : > { %589 = vst [vmem:[#allocation2 + $0x10] sm:$0xff] %v5747_v0 }
  0x93   : > { %590 = vst [vmem:[#allocation2 + $0x28] sm:$0xff] %v5747_v0 }
  0x94   : > { %591 = vst [vmem:[#allocation2 + $0xa0] sm:$0xff] %v5747_v0 }
  0x95   : > { %592 = vst [vmem:[#allocation2 + $0xf8] sm:$0xff] %v5747_v0 }
  0x96   : > { %593 = vst [vmem:[#allocation2 + $0x20] sm:$0xff] %v5747_v0 }
  0x97   : > { %594 = vst [vmem:[#allocation2 + $0x98] sm:$0xff] %v5747_v0 }
  0x98   : > { %596 = vst.msk [vmem:[#allocation3] sm:$0xff] %vm595_vm0, %v5747_v0 }
  0x99   : > { %597 = vst.msk [vmem:[#allocation3 + $0x8] sm:$0xff] %vm595_vm0, %v5747_v0 }
  0x9a   : > { %598 = vst.msk [vmem:[#allocation3 + $0x10] sm:$0xff] %vm595_vm0, %v5747_v0 }
  0x9b   : > { %599 = vst.msk [vmem:[#allocation3 + $0x18] sm:$0xff] %vm595_vm0, %v5747_v0 }
  0x9c   : > { %600 = vst.msk [vmem:[#allocation3 + $0x20] sm:$0xff] %vm595_vm0, %v5747_v0 }
  0x9d   : > { %601 = vst.msk [vmem:[#allocation3 + $0x28] sm:$0xff] %vm595_vm0, %v5747_v0 }
  0x9e   : > { %602 = vst.msk [vmem:[#allocation3 + $0x30] sm:$0xff] %vm595_vm0, %v5747_v0 }
  0x9f   : > { %603 = vst.msk [vmem:[#allocation3 + $0x38] sm:$0xff] %vm595_vm0, %v5747_v0 }
  0xa0   : > { %604 = vst.msk [vmem:[#allocation3 + $0x40] sm:$0xff] %vm595_vm0, %v5747_v0 }
  0xa1   : > { %605 = vst.msk [vmem:[#allocation3 + $0x48] sm:$0xff] %vm595_vm0, %v5747_v0 }
  0xa2   : > { %606 = vst.msk [vmem:[#allocation3 + $0x50] sm:$0xff] %vm595_vm0, %v5747_v0 }
  0xa3   : > { %607 = vst.msk [vmem:[#allocation3 + $0x58] sm:$0xff] %vm595_vm0, %v5747_v0 }
  0xa4   : > { %608 = vst.msk [vmem:[#allocation3 + $0x60] sm:$0xff] %vm595_vm0, %v5747_v0 }
  0xa5   : > { %609 = vst.msk [vmem:[#allocation3 + $0x68] sm:$0xff] %vm595_vm0, %v5747_v0 }
  0xa6   : > { %610 = vst.msk [vmem:[#allocation3 + $0x70] sm:$0xff] %vm595_vm0, %v5747_v0 }
  0xa7   : > { %611 = vst.msk [vmem:[#allocation3 + $0x78] sm:$0xff] %vm595_vm0, %v5747_v0 }
  0xa8   : > { %612 = vst.msk [vmem:[#allocation3 + $0x80] sm:$0xff] %vm595_vm0, %v5747_v0 }
  0xa9   : > { %613 = vst.msk [vmem:[#allocation3 + $0x88] sm:$0xff] %vm595_vm0, %v5747_v0 }
  0xaa   : > { %614 = vst.msk [vmem:[#allocation3 + $0x90] sm:$0xff] %vm595_vm0, %v5747_v0 }
  0xab   : > { %615 = vst.msk [vmem:[#allocation3 + $0x98] sm:$0xff] %vm595_vm0, %v5747_v0 }
  0xac   : > { %616 = vst.msk [vmem:[#allocation3 + $0xa0] sm:$0xff] %vm595_vm0, %v5747_v0 }
  0xad   : > { %617 = vst.msk [vmem:[#allocation3 + $0xa8] sm:$0xff] %vm595_vm0, %v5747_v0 }
  0xae   : > { %618 = vst.msk [vmem:[#allocation3 + $0xb0] sm:$0xff] %vm595_vm0, %v5747_v0 }
  0xaf   : > { %619 = vst.msk [vmem:[#allocation3 + $0xb8] sm:$0xff] %vm595_vm0, %v5747_v0 }
  0xb0   : > { %620 = vst.msk [vmem:[#allocation3 + $0xc0] sm:$0xff] %vm595_vm0, %v5747_v0 }
  0xb1   : > { %621 = vst.msk [vmem:[#allocation3 + $0xc8] sm:$0xff] %vm595_vm0, %v5747_v0 }
  0xb2   : > { %622 = vst.msk [vmem:[#allocation3 + $0xd0] sm:$0xff] %vm595_vm0, %v5747_v0 }
  0xb3   : > { %623 = vst.msk [vmem:[#allocation3 + $0xd8] sm:$0xff] %vm595_vm0, %v5747_v0 }
  0xb4   : > { %624 = vst.msk [vmem:[#allocation3 + $0xe0] sm:$0xff] %vm595_vm0, %v5747_v0 }
  0xb5   : > { %625 = vst.msk [vmem:[#allocation3 + $0xe8] sm:$0xff] %vm595_vm0, %v5747_v0 }
  0xb6   : > { %626 = vst.msk [vmem:[#allocation3 + $0xf0] sm:$0xff] %vm595_vm0, %v5747_v0 }
  0xb7   : > { %627 = vst.msk [vmem:[#allocation3 + $0xf8] sm:$0xff] %vm595_vm0, %v5747_v0 }
  0xb8 PF: > { %v4663_v1 = vld [vmem:[%s6031_s3 + $0x38] sm:$0xff]  ;;  %v4662_v3 = vld [vmem:[%s6031_s3 + $0x30] sm:$0xff]  ;;  %v4661_v5 = vld [vmem:[%s6031_s3 + $0x28] sm:$0xff]  ;;  %vm948_vm1 = vcmask 7168   ;;  %s8547_s29 = sld [smem:[#allocation27_spill]] }
  0xb9   : > { %v4671_v2 = vld [vmem:[%s6031_s3 + $0x78] sm:$0xff]  ;;  %1301 = vmatpush.bf16.msra.mxu0 %v4663_v1  ;;  %4809 = vmatpush.bf16.msra.mxu2 %v4663_v1  ;;  %v4670_v4 = vld [vmem:[%s6031_s3 + $0x70] sm:$0xff]  ;;  %v4669_v6 = vld [vmem:[%s6031_s3 + $0x68] sm:$0xff] }
  0xba   : > { %1390 = vmatpush.bf16.msra.mxu1 %v4671_v2  ;;  %4817 = vmatpush.bf16.msra.mxu3 %v4671_v2  ;;  %v4660_v7 = vld [vmem:[%s6031_s3 + $0x20] sm:$0xff]  ;;  %v4659_v9 = vld [vmem:[%s6031_s3 + $0x18] sm:$0xff]  ;;  %v4658_v11 = vld [vmem:[%s6031_s3 + $0x10] sm:$0xff] }
  0xbb   : > { %v4668_v8 = vld [vmem:[%s6031_s3 + $0x60] sm:$0xff]  ;;  %v4667_v10 = vld [vmem:[%s6031_s3 + $0x58] sm:$0xff]  ;;  %v4666_v12 = vld [vmem:[%s6031_s3 + $0x50] sm:$0xff] }
  0xbc   : > { %v4657_v13 = vld [vmem:[%s6031_s3 + $0x8] sm:$0xff]  ;;  %v4656_v15 = vld [vmem:[%s6031_s3] sm:$0xff]  ;;  %v4239_v29 = vld [vmem:[%s6023_s10 + $0x10] sm:$0xf] }
  0xbd   : > { %1302 = vmatpush.bf16.msra.mxu0 %v4662_v3  ;;  %4810 = vmatpush.bf16.msra.mxu2 %v4662_v3  ;;  %v4665_v14 = vld [vmem:[%s6031_s3 + $0x48] sm:$0xff]  ;;  %v4664_v16 = vld [vmem:[%s6031_s3 + $0x40] sm:$0xff]  ;;  %v4627_v30 = vld [vmem:[%s6023_s10 + $0x14] sm:$0xf0] }
  0xbe   : > { %1391 = vmatpush.bf16.msra.mxu1 %v4670_v4  ;;  %4818 = vmatpush.bf16.msra.mxu3 %v4670_v4  ;;  %v4231_v17 = vld [vmem:[%s6023_s10] sm:$0xf]  ;;  %v4625_v18 = vld [vmem:[%s6023_s10 + $0x4] sm:$0xf0]  ;;  %v4624_v21 = vld [vmem:[%s6023_s10 + $0x4] sm:$0xf]  ;;  %v4240_v37 = vor.u32 %v4627_v30, %v4239_v29 }
  0xbf   : > { %v4295_v19 = vld [vmem:[%s6023_s10 + $0x80] sm:$0xf]  ;;  %v4641_v20 = vld [vmem:[%s6023_s10 + $0x84] sm:$0xf0]  ;;  %v4233_v22 = vld [vmem:[%s6023_s10 + $0x8] sm:$0xf0]  ;;  %v4232_v25 = vor.u32 %v4625_v18, %v4231_v17 }
  0xc0   : > { %v4640_v23 = vld [vmem:[%s6023_s10 + $0x84] sm:$0xf]  ;;  %v4297_v24 = vld [vmem:[%s6023_s10 + $0x88] sm:$0xf0]  ;;  %v4296_v26 = vor.u32 %v4641_v20, %v4295_v19  ;;  %v4236_v27 = vor.u32 %v4624_v21, %v4233_v22  ;;  %v4303_v31 = vld [vmem:[%s6023_s10 + $0x90] sm:$0xf] }
  0xc1   : > { %1303 = vmatpush.bf16.msra.mxu0 %v4661_v5  ;;  %4811 = vmatpush.bf16.msra.mxu2 %v4661_v5  ;;  %v4300_v28 = vor.u32 %v4640_v23, %v4297_v24  ;;  %v4643_v32 = vld [vmem:[%s6023_s10 + $0x94] sm:$0xf0]  ;;  %v4626_v33 = vld [vmem:[%s6023_s10 + $0x14] sm:$0xf]  ;;  %v4241_v34 = vld [vmem:[%s6023_s10 + $0x18] sm:$0xf0] }
  0xc2   : > { %1392 = vmatpush.bf16.msra.mxu1 %v4669_v6  ;;  %4819 = vmatpush.bf16.msra.mxu3 %v4669_v6  ;;  %v4642_v35 = vld [vmem:[%s6023_s10 + $0x94] sm:$0xf]  ;;  %v4305_v36 = vld [vmem:[%s6023_s10 + $0x98] sm:$0xf0]  ;;  %v4304_v38 = vor.u32 %v4643_v32, %v4303_v31  ;;  %v4244_v39 = vor.u32 %v4626_v33, %v4241_v34  ;;  %v628_v42 = vld [vmem:[%s6023_s10] sm:$0xff]  ;;  %p4421_p6 = scmp.ne.s32.totalorder %s8547_s29, 1 }
  0xc3   : > { %v4308_v40 = vor.u32 %v4642_v35, %v4305_v36  ;;  %v630_v41 = vld [vmem:[%s6023_s10 + $0x10] sm:$0xff]  ;;  %v660_v45 = vunpack.c.l.bf16 %v628_v42  ;;  %v661_v46 = vunpack.c.h.bf16 %v628_v42  ;;  %v4247_v53 = vld [vmem:[%s6023_s10 + $0x20] sm:$0xf]  ;;  %v4629_v54 = vld [vmem:[%s6023_s10 + $0x24] sm:$0xf0] }
  0xc4   : > { %v664_v43 = vunpack.c.l.bf16 %v630_v41  ;;  %v665_v44 = vunpack.c.h.bf16 %v630_v41  ;;  %v4311_v55 = vld [vmem:[%s6023_s10 + $0xa0] sm:$0xf]  ;;  %v4645_v56 = vld [vmem:[%s6023_s10 + $0xa4] sm:$0xf0]  ;;  %v4628_v57 = vld [vmem:[%s6023_s10 + $0x24] sm:$0xf]  ;;  %v4248_v61 = vor.u32 %v4629_v54, %v4247_v53 }
  0xc5   : > { %1304 = vmatpush.bf16.msra.mxu0 %v4660_v7  ;;  %4812 = vmatpush.bf16.msra.mxu2 %v4660_v7  ;;  %v756_v49 = vmul.f32 %v660_v45, %v660_v45  ;;  %v757_v50 = vmul.f32 %v661_v46, %v661_v46  ;;  %v4249_v58 = vld [vmem:[%s6023_s10 + $0x28] sm:$0xf0]  ;;  %v4644_v59 = vld [vmem:[%s6023_s10 + $0xa4] sm:$0xf]  ;;  %v4312_v62 = vor.u32 %v4645_v56, %v4311_v55  ;;  %v631_v2 = vld [vmem:[%s6023_s10 + $0x18] sm:$0xff] }
  0xc6   : > { %1393 = vmatpush.bf16.msra.mxu1 %v4668_v8  ;;  %4820 = vmatpush.bf16.msra.mxu3 %v4668_v8  ;;  %v760_v47 = vmul.f32 %v664_v43, %v664_v43  ;;  %v761_v48 = vmul.f32 %v665_v44, %v665_v44  ;;  %v4313_v60 = vld [vmem:[%s6023_s10 + $0xa8] sm:$0xf0]  ;;  %v4252_v63 = vor.u32 %v4628_v57, %v4249_v58  ;;  %v632_v1 = vld [vmem:[%s6023_s10 + $0x20] sm:$0xff]  ;;  %v666_v6 = vunpack.c.l.bf16 %v631_v2  ;;  %v635_v18 = vld [vmem:[%s6023_s10 + $0x38] sm:$0xff] }
  0xc7   : > { %v820_v52 = vadd.f32 %v757_v50, %v756_v49  ;;  %v4316_v0 = vor.u32 %v4644_v59, %v4313_v60  ;;  %v629_v3 = vld [vmem:[%s6023_s10 + $0x8] sm:$0xff]  ;;  %v668_v4 = vunpack.c.l.bf16 %v632_v1  ;;  %v669_v5 = vunpack.c.h.bf16 %v632_v1  ;;  %v634_v19 = vld [vmem:[%s6023_s10 + $0x30] sm:$0xff]  ;;  %v4631_v35 = vld [vmem:[%s6023_s10 + $0x34] sm:$0xf0] }
  0xc8   : > { %v826_v51 = vadd.f32 %v761_v48, %v760_v47  ;;  %v667_v7 = vunpack.c.h.bf16 %v631_v2  ;;  %v662_v8 = vunpack.c.l.bf16 %v629_v3  ;;  %v633_v17 = vld [vmem:[%s6023_s10 + $0x28] sm:$0xff]  ;;  %v674_v23 = vunpack.c.l.bf16 %v635_v18  ;;  %v4255_v34 = vld [vmem:[%s6023_s10 + $0x30] sm:$0xf]  ;;  %v4257_v41 = vld [vmem:[%s6023_s10 + $0x38] sm:$0xf0] }
  0xc9   : > { %1305 = vmatpush.bf16.msra.mxu0 %v4659_v9  ;;  %4813 = vmatpush.bf16.msra.mxu2 %v4659_v9  ;;  %v663_v9 = vunpack.c.h.bf16 %v629_v3  ;;  %v670_v21 = vunpack.c.l.bf16 %v633_v17  ;;  %v671_v22 = vunpack.c.h.bf16 %v633_v17  ;;  %v4646_v42 = vld [vmem:[%s6023_s10 + $0xb4] sm:$0xf]  ;;  %v4321_v43 = vld [vmem:[%s6023_s10 + $0xb8] sm:$0xf0]  ;;  %v4256_v45 = vor.u32 %v4631_v35, %v4255_v34  ;;  %v636_v49 = vld [vmem:[%s6023_s10 + $0x40] sm:$0xff] }
  0xca   : > { %1394 = vmatpush.bf16.msra.mxu1 %v4667_v10  ;;  %4821 = vmatpush.bf16.msra.mxu3 %v4667_v10  ;;  %v764_v10 = vmul.f32 %v668_v4, %v668_v4  ;;  %v770_v30 = vmul.f32 %v674_v23, %v674_v23  ;;  %v4324_v48 = vor.u32 %v4646_v42, %v4321_v43  ;;  %v638_v50 = vld [vmem:[%s6023_s10 + $0x50] sm:$0xff]  ;;  %v677_v53 = vunpack.c.h.bf16 %v636_v49  ;;  %v639_v1 = vld [vmem:[%s6023_s10 + $0x58] sm:$0xff]  ;;  %v641_v2 = vld [vmem:[%s6023_s10 + $0x68] sm:$0xff] }
  0xcb   : > { %827 = vadd.xlane.f32.xlu1 %v826_v51  ;;  %821 = vadd.xlane.f32.xlu0 %v820_v52  ;;  %v767_v29 = vmul.f32 %v671_v22, %v671_v22  ;;  %v637_v51 = vld [vmem:[%s6023_s10 + $0x48] sm:$0xff]  ;;  %v676_v52 = vunpack.c.l.bf16 %v636_v49  ;;  %v680_v54 = vunpack.c.l.bf16 %v638_v50  ;;  %v681_v55 = vunpack.c.h.bf16 %v638_v50  ;;  %v640_v3 = vld [vmem:[%s6023_s10 + $0x60] sm:$0xff]  ;;  %v643_v35 = vld [vmem:[%s6023_s10 + $0x78] sm:$0xff] }
  0xcc   : > { %v678_v56 = vunpack.c.l.bf16 %v637_v51  ;;  %v679_v57 = vunpack.c.h.bf16 %v637_v51  ;;  %v773_v59 = vmul.f32 %v677_v53, %v677_v53  ;;  %v4649_v22 = vld [vmem:[%s6023_s10 + $0xc4] sm:$0xf0]  ;;  %v4632_v23 = vld [vmem:[%s6023_s10 + $0x44] sm:$0xf]  ;;  %v647_v50 = vld [vmem:[%s6023_s10 + $0x98] sm:$0xff] }
  0xcd   : > { %1306 = vmatpush.bf16.msra.mxu0 %v4658_v11  ;;  %4814 = vmatpush.bf16.msra.mxu2 %v4658_v11  ;;  %v765_v11 = vmul.f32 %v669_v5, %v669_v5  ;;  %v772_v58 = vmul.f32 %v676_v52, %v676_v52  ;;  %v776_v60 = vmul.f32 %v680_v54, %v680_v54  ;;  %v682_v5 = vunpack.c.l.bf16 %v639_v1  ;;  %v644_v34 = vld [vmem:[%s6023_s10 + $0x80] sm:$0xff]  ;;  %v645_v49 = vld [vmem:[%s6023_s10 + $0x88] sm:$0xff]  ;;  %v646_v51 = vld [vmem:[%s6023_s10 + $0x90] sm:$0xff] }
  0xce   : > { %1395 = vmatpush.bf16.msra.mxu1 %v4666_v12  ;;  %4822 = vmatpush.bf16.msra.mxu3 %v4666_v12  ;;  %v762_v12 = vmul.f32 %v666_v6, %v666_v6  ;;  %v683_v6 = vunpack.c.h.bf16 %v639_v1  ;;  %v694_v53 = vunpack.c.l.bf16 %v645_v49  ;;  %v695_v54 = vunpack.c.h.bf16 %v645_v49 }
  0xd1   : > { %1307 = vmatpush.bf16.msra.mxu0 %v4657_v13  ;;  %4815 = vmatpush.bf16.msra.mxu2 %v4657_v13  ;;  %v763_v13 = vmul.f32 %v667_v7, %v667_v7  ;;  %v686_v7 = vunpack.c.l.bf16 %v641_v2 }
  0xd2   : > { %1396 = vmatpush.bf16.msra.mxu1 %v4665_v14  ;;  %4823 = vmatpush.bf16.msra.mxu3 %v4665_v14  ;;  %v832_v14 = vadd.f32 %v765_v11, %v764_v10  ;;  %v684_v10 = vunpack.c.l.bf16 %v640_v3  ;;  %v685_v11 = vunpack.c.h.bf16 %v640_v3  ;;  %v4635_v3 = vld [vmem:[%s6023_s10 + $0x54] sm:$0xf0] }
  0xd3   : > { %v829_v20 = vadd.f32 %v763_v13, %v762_v12  ;;  %v778_v12 = vmul.f32 %v682_v5, %v682_v5  ;;  %v779_v13 = vmul.f32 %v683_v6, %v683_v6  ;;  %v4335_v5 = vld [vmem:[%s6023_s10 + $0xd0] sm:$0xf]  ;;  %v4651_v6 = vld [vmem:[%s6023_s10 + $0xd4] sm:$0xf0] }
  0xd4   : > { %833 = vadd.xlane.f32.xlu2 %v832_v14  ;;  %v782_v14 = vmul.f32 %v686_v7, %v686_v7  ;;  %v781_v17 = vmul.f32 %v685_v11, %v685_v11  ;;  %v4634_v7 = vld [vmem:[%s6023_s10 + $0x54] sm:$0xf]  ;;  %v4337_v11 = vld [vmem:[%s6023_s10 + $0xd8] sm:$0xf0] }
  0xd5   : > { %1308 = vmatpush.bf16.msra.mxu0 %v4656_v15  ;;  %4816 = vmatpush.bf16.msra.mxu2 %v4656_v15  ;;  %v758_v15 = vmul.f32 %v662_v8, %v662_v8 }
  0xd6   : > { %1397 = vmatpush.bf16.msra.mxu1 %v4664_v16  ;;  %4824 = vmatpush.bf16.msra.mxu3 %v4664_v16  ;;  %v759_v16 = vmul.f32 %v663_v9, %v663_v9  ;;  %v687_v9 = vunpack.c.h.bf16 %v641_v2  ;;  %v4271_v2 = vld [vmem:[%s6023_s10 + $0x50] sm:$0xf] }
  0xd7   : > { %830 = vadd.xlane.f32.xlu1 %v829_v20  ;;  %v853_v20 = vadd.f32 %v779_v13, %v778_v12  ;;  %v4272_v13 = vor.u32 %v4635_v3, %v4271_v2  ;;  %v656_v2 = vld [vmem:[%s6023_s10 + $0xe0] sm:$0xff]  ;;  %v655_v3 = vld [vmem:[%s6023_s10 + $0xd8] sm:$0xff] }
  0xd8   : > { %1309 = vmatmul.bf16.vlgmr.msra.gmra.mxu0 %v4232_v25  ;;  %1349 = vmatmul.bf16.vlgmr.msra.gmra.mxu2 %v4296_v26  ;;  %v823_v24 = vadd.f32 %v759_v16, %v758_v15  ;;  %v675_v25 = vunpack.c.h.bf16 %v635_v18  ;;  %v672_v26 = vunpack.c.l.bf16 %v634_v19  ;;  %v783_v15 = vmul.f32 %v687_v9, %v687_v9  ;;  %v4263_v18 = vld [vmem:[%s6023_s10 + $0x40] sm:$0xf]  ;;  %v4273_v9 = vld [vmem:[%s6023_s10 + $0x58] sm:$0xf0] }
  0xd9   : > { %1398 = vmatmul.bf16.vlgmr.msra.gmra.mxu1 %v4236_v27  ;;  %1438 = vmatmul.bf16.vlgmr.msra.gmra.mxu3 %v4300_v28  ;;  %v673_v27 = vunpack.c.h.bf16 %v634_v19  ;;  %v766_v28 = vmul.f32 %v670_v21, %v670_v21  ;;  %v780_v16 = vmul.f32 %v684_v10, %v684_v10  ;;  %v4633_v19 = vld [vmem:[%s6023_s10 + $0x44] sm:$0xf0]  ;;  %v4327_v21 = vld [vmem:[%s6023_s10 + $0xc0] sm:$0xf]  ;;  %v4650_v10 = vld [vmem:[%s6023_s10 + $0xd4] sm:$0xf] }
  0xda   : > { %824 = vadd.xlane.f32.xlu0 %v823_v24  ;;  %v771_v31 = vmul.f32 %v675_v25, %v675_v25  ;;  %v768_v32 = vmul.f32 %v672_v26, %v672_v26  ;;  %v859_v24 = vadd.f32 %v783_v15, %v782_v14  ;;  %v4265_v25 = vld [vmem:[%s6023_s10 + $0x48] sm:$0xf0]  ;;  %v4648_v26 = vld [vmem:[%s6023_s10 + $0xc4] sm:$0xf]  ;;  %v4336_v14 = vor.u32 %v4651_v6, %v4335_v5 }
  0xdb   : > { %v769_v33 = vmul.f32 %v673_v27, %v673_v27  ;;  %v835_v36 = vadd.f32 %v767_v29, %v766_v28  ;;  %v4329_v27 = vld [vmem:[%s6023_s10 + $0xc8] sm:$0xf0]  ;;  %v856_v28 = vadd.f32 %v781_v17, %v780_v16  ;;  %v4264_v29 = vor.u32 %v4633_v19, %v4263_v18  ;;  %v648_v17 = vld [vmem:[%s6023_s10 + $0xa0] sm:$0xff]  ;;  %v650_v18 = vld [vmem:[%s6023_s10 + $0xb0] sm:$0xff] }
  0xdc   : > { %v4276_v15 = vor.u32 %v4634_v7, %v4273_v9  ;;  %v4340_v16 = vor.u32 %v4650_v10, %v4337_v11  ;;  %v649_v19 = vld [vmem:[%s6023_s10 + $0xa8] sm:$0xff]  ;;  %v716_v6 = vunpack.c.l.bf16 %v656_v2  ;;  %v717_v7 = vunpack.c.h.bf16 %v656_v2 }
  0xdd   : > { %v838_v44 = vadd.f32 %v769_v33, %v768_v32  ;;  %836 = vadd.xlane.f32.xlu2 %v835_v36  ;;  %v4332_v32 = vor.u32 %v4648_v26, %v4329_v27  ;;  %v642_v33 = vld [vmem:[%s6023_s10 + $0x70] sm:$0xff]  ;;  %v715_v9 = vunpack.c.h.bf16 %v655_v3 }
  0xde   : > { %v688_v36 = vunpack.c.l.bf16 %v642_v33 }
  0xe0   : > { %v784_v42 = vmul.f32 %v688_v36, %v688_v36 }
  0xe2   : > { %839 = vadd.xlane.f32.xlu0 %v838_v44 }
  0xe8   : > { %1314 = vmatmul.bf16.gmra.mxu0 %v4240_v37  ;;  %1354 = vmatmul.bf16.gmra.mxu2 %v4304_v38  ;;  %v4319_v37 = vld [vmem:[%s6023_s10 + $0xb0] sm:$0xf]  ;;  %v4647_v38 = vld [vmem:[%s6023_s10 + $0xb4] sm:$0xf0] }
  0xe9   : > { %1403 = vmatmul.bf16.gmra.mxu1 %v4244_v39  ;;  %1443 = vmatmul.bf16.gmra.mxu3 %v4308_v40  ;;  %v4630_v39 = vld [vmem:[%s6023_s10 + $0x34] sm:$0xf]  ;;  %v841_v40 = vadd.f32 %v771_v31, %v770_v30  ;;  %v4320_v46 = vor.u32 %v4647_v38, %v4319_v37  ;;  %v4328_v30 = vor.u32 %v4649_v22, %v4327_v21  ;;  %v689_v37 = vunpack.c.h.bf16 %v642_v33  ;;  %v651_v33 = vld [vmem:[%s6023_s10 + $0xb8] sm:$0xff] }
  0xea   : > { %v4260_v47 = vor.u32 %v4630_v39, %v4257_v41  ;;  %v4268_v31 = vor.u32 %v4632_v23, %v4265_v25  ;;  %v692_v38 = vunpack.c.l.bf16 %v644_v34  ;;  %v693_v39 = vunpack.c.h.bf16 %v644_v34  ;;  %v653_v34 = vld [vmem:[%s6023_s10 + $0xc8] sm:$0xff] }
  0xeb   : > { %842 = vadd.xlane.f32.xlu1 %v841_v40  ;;  %v690_v40 = vunpack.c.l.bf16 %v643_v35  ;;  %v691_v41 = vunpack.c.h.bf16 %v643_v35  ;;  %v785_v43 = vmul.f32 %v689_v37, %v689_v37  ;;  %v701_v21 = vunpack.c.h.bf16 %v648_v17  ;;  %v652_v35 = vld [vmem:[%s6023_s10 + $0xc0] sm:$0xff] }
  0xec   : > { %v788_v44 = vmul.f32 %v692_v38, %v692_v38  ;;  %v704_v22 = vunpack.c.l.bf16 %v650_v18  ;;  %v705_v23 = vunpack.c.h.bf16 %v650_v18  ;;  %v703_v25 = vunpack.c.h.bf16 %v649_v19 }
  0xed   : > { %v797_v27 = vmul.f32 %v701_v21, %v701_v21  ;;  %v706_v37 = vunpack.c.l.bf16 %v651_v33  ;;  %v707_v38 = vunpack.c.h.bf16 %v651_v33  ;;  %v658_v21 = vld [vmem:[%s6023_s10 + $0xf0] sm:$0xff]  ;;  %v4639_v33 = vld [vmem:[%s6023_s10 + $0x74] sm:$0xf0] }
  0xf8   : > { %1319 = vmatmul.bf16.gmra.mxu0 %v4248_v61  ;;  %1359 = vmatmul.bf16.gmra.mxu2 %v4312_v62  ;;  %v777_v61 = vmul.f32 %v681_v55, %v681_v55  ;;  %v844_v62 = vadd.f32 %v773_v59, %v772_v58  ;;  %v698_v55 = vunpack.c.l.bf16 %v647_v50  ;;  %v696_v58 = vunpack.c.l.bf16 %v646_v51 }
  0xf9   : > { %1408 = vmatmul.bf16.gmra.mxu1 %v4252_v63  ;;  %1448 = vmatmul.bf16.gmra.mxu3 %v4316_v0  ;;  %v774_v63 = vmul.f32 %v678_v56, %v678_v56  ;;  %v775_v0 = vmul.f32 %v679_v57, %v679_v57  ;;  %v699_v57 = vunpack.c.h.bf16 %v647_v50  ;;  %v697_v59 = vunpack.c.h.bf16 %v646_v51  ;;  %v4279_v50 = vld [vmem:[%s6023_s10 + $0x60] sm:$0xf]  ;;  %v4637_v51 = vld [vmem:[%s6023_s10 + $0x64] sm:$0xf0] }
  0xfa   : > { %v850_v4 = vadd.f32 %v777_v61, %v776_v60  ;;  %845 = vadd.xlane.f32.xlu2 %v844_v62  ;;  %v790_v60 = vmul.f32 %v694_v53, %v694_v53  ;;  %v791_v61 = vmul.f32 %v695_v54, %v695_v54  ;;  %v794_v62 = vmul.f32 %v698_v55, %v698_v55  ;;  %v4343_v53 = vld [vmem:[%s6023_s10 + $0xe0] sm:$0xf]  ;;  %v4653_v54 = vld [vmem:[%s6023_s10 + $0xe4] sm:$0xf0]  ;;  %v4636_v55 = vld [vmem:[%s6023_s10 + $0x64] sm:$0xf] }
  0xfb   : > { %v847_v8 = vadd.f32 %v775_v0, %v774_v63  ;;  %v795_v63 = vmul.f32 %v699_v57, %v699_v57  ;;  %v792_v0 = vmul.f32 %v696_v58, %v696_v58  ;;  %v793_v1 = vmul.f32 %v697_v59, %v697_v59  ;;  %v4281_v57 = vld [vmem:[%s6023_s10 + $0x68] sm:$0xf0]  ;;  %v4652_v58 = vld [vmem:[%s6023_s10 + $0xe4] sm:$0xf] }
  0xfc   : > { %851 = vadd.xlane.f32.xlu1 %v850_v4  ;;  %v871_v4 = vadd.f32 %v791_v61, %v790_v60  ;;  %v4345_v59 = vld [vmem:[%s6023_s10 + $0xe8] sm:$0xf0]  ;;  %v4280_v61 = vor.u32 %v4637_v51, %v4279_v50  ;;  %v981_v50 = vld [vmem:[#allocation2 + $0xb0] sm:$0xff] }
  0xfd   : > { %848 = vadd.xlane.f32.xlu0 %v847_v8  ;;  %v877_v8 = vadd.f32 %v795_v63, %v794_v62  ;;  %v874_v12 = vadd.f32 %v793_v1, %v792_v0  ;;  %v4344_v62 = vor.u32 %v4653_v54, %v4343_v53  ;;  %v4284_v63 = vor.u32 %v4636_v55, %v4281_v57  ;;  %v654_v1 = vld [vmem:[%s6023_s10 + $0xd0] sm:$0xff]  ;;  %v997_v55 = vld [vmem:[#allocation2 + $0x38] sm:$0xff] }
  0xfe   : > { %v4348_v0 = vor.u32 %v4652_v58, %v4345_v59  ;;  %v713_v5 = vunpack.c.h.bf16 %v654_v1  ;;  %v982_v59 = vld [vmem:[#allocation2] sm:$0xff] }
 0x100   : > { %v809_v11 = vmul.f32 %v713_v5, %v713_v5  ;;  %v983_v5 = vld [vmem:[#allocation2 + $0xd8] sm:$0xff] }
 0x102   : > { %854 = vadd.xlane.f32.xlu2 %v853_v20  ;;  %v700_v20 = vunpack.c.l.bf16 %v648_v17 }
 0x104   : > { %860 = vadd.xlane.f32.xlu1 %v859_v24  ;;  %v702_v24 = vunpack.c.l.bf16 %v649_v19  ;;  %v796_v26 = vmul.f32 %v700_v20, %v700_v20  ;;  %v657_v19 = vld [vmem:[%s6023_s10 + $0xe8] sm:$0xff]  ;;  %v659_v20 = vld [vmem:[%s6023_s10 + $0xf8] sm:$0xff] }
 0x105   : > { %857 = vadd.xlane.f32.xlu0 %v856_v28  ;;  %v800_v28 = vmul.f32 %v704_v22, %v704_v22  ;;  %v718_v22 = vunpack.c.l.bf16 %v657_v19 }
 0x108   : > { %1324 = vmatmul.bf16.gmra.mxu0 %v4256_v45  ;;  %1364 = vmatmul.bf16.gmra.mxu2 %v4320_v46  ;;  %v789_v45 = vmul.f32 %v693_v39, %v693_v39  ;;  %v862_v46 = vadd.f32 %v785_v43, %v784_v42  ;;  %v710_v39 = vunpack.c.l.bf16 %v653_v34  ;;  %v708_v42 = vunpack.c.l.bf16 %v652_v35 }
 0x109   : > { %1413 = vmatmul.bf16.gmra.mxu1 %v4260_v47  ;;  %1453 = vmatmul.bf16.gmra.mxu3 %v4324_v48  ;;  %v786_v47 = vmul.f32 %v690_v40, %v690_v40  ;;  %v787_v48 = vmul.f32 %v691_v41, %v691_v41  ;;  %v711_v41 = vunpack.c.h.bf16 %v653_v34  ;;  %v709_v43 = vunpack.c.h.bf16 %v652_v35 }
 0x10a   : > { %v868_v52 = vadd.f32 %v789_v45, %v788_v44  ;;  %863 = vadd.xlane.f32.xlu2 %v862_v46  ;;  %v802_v44 = vmul.f32 %v706_v37, %v706_v37  ;;  %v803_v45 = vmul.f32 %v707_v38, %v707_v38  ;;  %v806_v46 = vmul.f32 %v710_v39, %v710_v39  ;;  %v4655_v37 = vld [vmem:[%s6023_s10 + $0xf4] sm:$0xf0]  ;;  %v4638_v38 = vld [vmem:[%s6023_s10 + $0x74] sm:$0xf] }
 0x10b   : > { %v865_v56 = vadd.f32 %v787_v48, %v786_v47  ;;  %v807_v47 = vmul.f32 %v711_v41, %v711_v41  ;;  %v804_v48 = vmul.f32 %v708_v42, %v708_v42  ;;  %v805_v49 = vmul.f32 %v709_v43, %v709_v43  ;;  %v4289_v41 = vld [vmem:[%s6023_s10 + $0x78] sm:$0xf0]  ;;  %v4654_v42 = vld [vmem:[%s6023_s10 + $0xf4] sm:$0xf] }
 0x10c   : > { %869 = vadd.xlane.f32.xlu1 %v868_v52  ;;  %v889_v52 = vadd.f32 %v803_v45, %v802_v44  ;;  %v4353_v43 = vld [vmem:[%s6023_s10 + $0xf8] sm:$0xf0] }
 0x10d   : > { %866 = vadd.xlane.f32.xlu0 %v865_v56  ;;  %v895_v56 = vadd.f32 %v807_v47, %v806_v46  ;;  %v892_v60 = vadd.f32 %v805_v49, %v804_v48  ;;  %v4292_v47 = vor.u32 %v4638_v38, %v4289_v41  ;;  %v4356_v48 = vor.u32 %v4654_v42, %v4353_v43  ;;  %v729_v42 = vld [vmem:[#allocation3 + $0x28] sm:$0xff] }
 0x112   : > { %872 = vadd.xlane.f32.xlu2 %v871_v4  ;;  %v712_v4 = vunpack.c.l.bf16 %v654_v1  ;;  %v998_v1 = vld [vmem:[#allocation2 + $0x58] sm:$0xff] }
 0x114   : > { %878 = vadd.xlane.f32.xlu1 %v877_v8  ;;  %v714_v8 = vunpack.c.l.bf16 %v655_v3  ;;  %v808_v10 = vmul.f32 %v712_v4, %v712_v4 }
 0x115   : > { %875 = vadd.xlane.f32.xlu0 %v874_v12  ;;  %v812_v12 = vmul.f32 %v716_v6, %v716_v6 }
 0x118   : > { %1329 = vmatmul.bf16.gmra.mxu0 %v4264_v29  ;;  %1369 = vmatmul.bf16.gmra.mxu2 %v4328_v30  ;;  %v801_v29 = vmul.f32 %v705_v23, %v705_v23  ;;  %v880_v30 = vadd.f32 %v797_v27, %v796_v26  ;;  %v719_v23 = vunpack.c.h.bf16 %v657_v19  ;;  %v720_v26 = vunpack.c.l.bf16 %v658_v21 }
 0x119   : > { %1418 = vmatmul.bf16.gmra.mxu1 %v4268_v31  ;;  %1458 = vmatmul.bf16.gmra.mxu3 %v4332_v32  ;;  %v798_v31 = vmul.f32 %v702_v24, %v702_v24  ;;  %v799_v32 = vmul.f32 %v703_v25, %v703_v25  ;;  %v722_v24 = vunpack.c.l.bf16 %v659_v20  ;;  %v723_v25 = vunpack.c.h.bf16 %v659_v20 }
 0x11a   : > { %v886_v36 = vadd.f32 %v801_v29, %v800_v28  ;;  %881 = vadd.xlane.f32.xlu2 %v880_v30  ;;  %v721_v27 = vunpack.c.h.bf16 %v658_v21  ;;  %v814_v28 = vmul.f32 %v718_v22, %v718_v22  ;;  %v815_v29 = vmul.f32 %v719_v23, %v719_v23  ;;  %v984_v21 = vld [vmem:[#allocation2 + $0x18] sm:$0xff]  ;;  %v728_v23 = vld [vmem:[#allocation3 + $0x20] sm:$0xff] }
 0x11b   : > { %v883_v40 = vadd.f32 %v799_v32, %v798_v31  ;;  %v818_v30 = vmul.f32 %v722_v24, %v722_v24  ;;  %v819_v31 = vmul.f32 %v723_v25, %v723_v25  ;;  %v4287_v32 = vld [vmem:[%s6023_s10 + $0x70] sm:$0xf]  ;;  %v816_v34 = vmul.f32 %v720_v26, %v720_v26  ;;  %v727_v25 = vld [vmem:[#allocation3 + $0x18] sm:$0xff]  ;;  %v725_v26 = vld [vmem:[#allocation3 + $0x8] sm:$0xff] }
 0x11c   : > { %887 = vadd.xlane.f32.xlu1 %v886_v36  ;;  %v817_v35 = vmul.f32 %v721_v27, %v721_v27  ;;  %v4351_v36 = vld [vmem:[%s6023_s10 + $0xf0] sm:$0xf]  ;;  %v907_v39 = vadd.f32 %v815_v29, %v814_v28  ;;  %v4288_v45 = vor.u32 %v4639_v33, %v4287_v32 }
 0x11d   : > { %884 = vadd.xlane.f32.xlu0 %v883_v40  ;;  %v913_v40 = vadd.f32 %v819_v31, %v818_v30  ;;  %v4352_v46 = vor.u32 %v4655_v37, %v4351_v36  ;;  %v1000_v36 = vld [vmem:[#allocation2 + $0xc8] sm:$0xff] }
 0x11e   : > { %v910_v44 = vadd.f32 %v817_v35, %v816_v34 }
 0x122   : > { %890 = vadd.xlane.f32.xlu2 %v889_v52 }
 0x124   : > { %896 = vadd.xlane.f32.xlu1 %v895_v56 }
 0x125   : > { %893 = vadd.xlane.f32.xlu0 %v892_v60 }
 0x128   : > { %1334 = vmatmul.bf16.gmra.mxu0 %v4272_v13  ;;  %1374 = vmatmul.bf16.gmra.mxu2 %v4336_v14  ;;  %v813_v13 = vmul.f32 %v717_v7, %v717_v7  ;;  %v810_v14 = vmul.f32 %v714_v8, %v714_v8  ;;  %v726_v7 = vld [vmem:[#allocation3 + $0x10] sm:$0xff] }
 0x129   : > { %1423 = vmatmul.bf16.gmra.mxu1 %v4276_v15  ;;  %1463 = vmatmul.bf16.gmra.mxu3 %v4340_v16  ;;  %v811_v15 = vmul.f32 %v715_v9, %v715_v9  ;;  %v898_v16 = vadd.f32 %v809_v11, %v808_v10  ;;  %v724_v9 = vld [vmem:[#allocation3] sm:$0xff] }
 0x12a   : > { %v904_v17 = vadd.f32 %v813_v13, %v812_v12 }
 0x12b   : > { %v901_v18 = vadd.f32 %v811_v15, %v810_v14  ;;  %899 = vadd.xlane.f32.xlu2 %v898_v16 }
 0x12c   : > { %905 = vadd.xlane.f32.xlu1 %v904_v17  ;;  %v999_v17 = vld [vmem:[#allocation2 + $0x40] sm:$0xff] }
 0x12d   : > { %902 = vadd.xlane.f32.xlu0 %v901_v18 }
 0x133   : > { %908 = vadd.xlane.f32.xlu2 %v907_v39 }
 0x134   : > { %914 = vadd.xlane.f32.xlu1 %v913_v40  ;;  %v985_v40 = vld [vmem:[#allocation2 + $0x50] sm:$0xff] }
 0x135   : > { %911 = vadd.xlane.f32.xlu0 %v910_v44  ;;  %v731_v44 = vld [vmem:[#allocation3 + $0x38] sm:$0xff] }
 0x138   : > { %1339 = vmatmul.bf16.gmra.mxu0 %v4280_v61  ;;  %1379 = vmatmul.bf16.gmra.mxu2 %v4344_v62 }
 0x139   : > { %1428 = vmatmul.bf16.gmra.mxu1 %v4284_v63  ;;  %1468 = vmatmul.bf16.gmra.mxu3 %v4348_v0 }
 0x13e   : > { %v828_v8 = vpop.xlane.xlu1 %827  ;;  %v822_v13 = vpop.xlane.xlu0 %821 }
 0x13f   : > { %v918_v12 = vadd.f32 %v828_v8, %v726_v7  ;;  %v916_v14 = vadd.f32 %v822_v13, %v724_v9 }
 0x141   : > { %951 = vst.msk [vmem:[#allocation3 + $0x10] sm:$0xff] %vm948_vm1, %v918_v12 }
 0x142   : > { %949 = vst.msk [vmem:[#allocation3] sm:$0xff] %vm948_vm1, %v916_v14  ;;  %v987_v14 = vld [vmem:[#allocation2 + $0x30] sm:$0xff] }
 0x147   : > { %v834_v24 = vpop.xlane.xlu2 %833 }
 0x148   : > { %1344 = vmatmul.bf16.gmra.mxu0 %v4288_v45  ;;  %1384 = vmatmul.bf16.gmra.mxu2 %v4352_v46  ;;  %v920_v29 = vadd.f32 %v834_v24, %v728_v23  ;;  %v730_v45 = vld [vmem:[#allocation3 + $0x30] sm:$0xff] }
 0x149   : > { %1433 = vmatmul.bf16.gmra.mxu1 %v4292_v47  ;;  %1473 = vmatmul.bf16.gmra.mxu3 %v4356_v48 }
 0x14a   : > { %v831_v30 = vpop.xlane.xlu1 %830  ;;  %953 = vst.msk [vmem:[#allocation3 + $0x20] sm:$0xff] %vm948_vm1, %v920_v29  ;;  %v1003_v29 = vld [vmem:[#allocation2 + $0x70] sm:$0xff] }
 0x14b   : > { %v919_v31 = vadd.f32 %v831_v30, %v727_v25 }
 0x14d   : > { %v825_v32 = vpop.xlane.xlu0 %824  ;;  %952 = vst.msk [vmem:[#allocation3 + $0x18] sm:$0xff] %vm948_vm1, %v919_v31 }
 0x14e   : > { %v917_v34 = vadd.f32 %v825_v32, %v725_v26 }
 0x150   : > { %950 = vst.msk [vmem:[#allocation3 + $0x8] sm:$0xff] %vm948_vm1, %v917_v34  ;;  %v837_v43 = vpop.xlane.xlu2 %836 }
 0x151   : > { %v921_v48 = vadd.f32 %v837_v43, %v729_v42 }
 0x153   : > { %954 = vst.msk [vmem:[#allocation3 + $0x28] sm:$0xff] %vm948_vm1, %v921_v48  ;;  %v1004_v48 = vld [vmem:[#allocation2 + $0xc0] sm:$0xff] }
 0x155   : > { %v1310_v49 = vpop.f32.mrf.mxu0 }
 0x156   : > { %v1399_v51 = vpop.f32.mrf.mxu1 }
 0x157   : > { %v1400_v52 = vadd.f32 %v1399_v51, %v1310_v49  ;;  %v840_v51 = vpop.xlane.xlu0 %839 }
 0x159   : > { %v1479_v53 = vadd.f32 %v1400_v52, %v981_v50 }
 0x15b   : > { %1511 = vst [vmem:[#allocation2 + $0xb0] sm:$0xff] %v1479_v53  ;;  %v1350_v54 = vpop.f32.mrf.mxu2  ;;  %v922_v53 = vadd.f32 %v840_v51, %v730_v45 }
 0x15c   : > { %v1439_v56 = vpop.f32.mrf.mxu3 }
 0x15d   : > { %v1440_v57 = vadd.f32 %v1439_v56, %v1350_v54  ;;  %v1312_v58 = vpop.f32.mrf.mxu0  ;;  %955 = vst.msk [vmem:[#allocation3 + $0x30] sm:$0xff] %vm948_vm1, %v922_v53 }
 0x15e   : > { %v1401_v60 = vpop.f32.mrf.mxu1  ;;  %v843_v49 = vpop.xlane.xlu1 %842 }
 0x15f   : > { %v1495_v61 = vadd.f32 %v1440_v57, %v997_v55  ;;  %v1402_v62 = vadd.f32 %v1401_v60, %v1312_v58  ;;  %v923_v50 = vadd.f32 %v843_v49, %v731_v44  ;;  %v1001_v55 = vld [vmem:[#allocation2 + $0xe0] sm:$0xff] }
 0x161   : > { %1527 = vst [vmem:[#allocation2 + $0x38] sm:$0xff] %v1495_v61  ;;  %v1480_v63 = vadd.f32 %v1402_v62, %v982_v59  ;;  %v986_v59 = vld [vmem:[#allocation2 + $0x68] sm:$0xff]  ;;  %v732_v61 = vld [vmem:[#allocation3 + $0x40] sm:$0xff] }
 0x162   : > { %956 = vst.msk [vmem:[#allocation3 + $0x38] sm:$0xff] %vm948_vm1, %v923_v50 }
 0x163   : > { %1512 = vst [vmem:[#allocation2] sm:$0xff] %v1480_v63  ;;  %v1352_v0 = vpop.f32.mrf.mxu2  ;;  %v734_v63 = vld [vmem:[#allocation3 + $0x50] sm:$0xff] }
 0x164   : > { %v1441_v2 = vpop.f32.mrf.mxu3 }
 0x165   : > { %v1442_v3 = vadd.f32 %v1441_v2, %v1352_v0  ;;  %v1315_v4 = vpop.f32.mrf.mxu0  ;;  %v733_v0 = vld [vmem:[#allocation3 + $0x48] sm:$0xff] }
 0x166   : > { %v1404_v6 = vpop.f32.mrf.mxu1 }
 0x167   : > { %v1496_v10 = vadd.f32 %v1442_v3, %v998_v1  ;;  %v1405_v11 = vadd.f32 %v1404_v6, %v1315_v4 }
 0x169   : > { %1528 = vst [vmem:[#allocation2 + $0x58] sm:$0xff] %v1496_v10  ;;  %v1481_v15 = vadd.f32 %v1405_v11, %v983_v5  ;;  %v1002_v10 = vld [vmem:[#allocation2 + $0x90] sm:$0xff] }
 0x16b   : > { %1513 = vst [vmem:[#allocation2 + $0xd8] sm:$0xff] %v1481_v15  ;;  %v1355_v16 = vpop.f32.mrf.mxu2 }
 0x16c   : > { %v1444_v18 = vpop.f32.mrf.mxu3 }
 0x16d   : > { %v1445_v19 = vadd.f32 %v1444_v18, %v1355_v16  ;;  %v1317_v20 = vpop.f32.mrf.mxu0  ;;  %v846_v62 = vpop.xlane.xlu2 %845  ;;  %v735_v16 = vld [vmem:[#allocation3 + $0x58] sm:$0xff]  ;;  %v737_v18 = vld [vmem:[#allocation3 + $0x68] sm:$0xff] }
 0x16e   : > { %v1406_v22 = vpop.f32.mrf.mxu1  ;;  %v924_v3 = vadd.f32 %v846_v62, %v732_v61 }
 0x16f   : > { %v1497_v27 = vadd.f32 %v1445_v19, %v999_v17  ;;  %v1407_v28 = vadd.f32 %v1406_v22, %v1317_v20  ;;  %v852_v4 = vpop.xlane.xlu1 %851  ;;  %v736_v19 = vld [vmem:[#allocation3 + $0x60] sm:$0xff] }
 0x170   : > { %v926_v5 = vadd.f32 %v852_v4, %v734_v63  ;;  %v849_v6 = vpop.xlane.xlu0 %848  ;;  %957 = vst.msk [vmem:[#allocation3 + $0x40] sm:$0xff] %vm948_vm1, %v924_v3  ;;  %v1005_v3 = vld [vmem:[#allocation2 + $0xa8] sm:$0xff] }
 0x171   : > { %1529 = vst [vmem:[#allocation2 + $0x40] sm:$0xff] %v1497_v27  ;;  %v1482_v33 = vadd.f32 %v1407_v28, %v984_v21  ;;  %v925_v8 = vadd.f32 %v849_v6, %v733_v0 }
 0x172   : > { %959 = vst.msk [vmem:[#allocation3 + $0x50] sm:$0xff] %vm948_vm1, %v926_v5 }
 0x173   : > { %1514 = vst [vmem:[#allocation2 + $0x18] sm:$0xff] %v1482_v33  ;;  %v1357_v35 = vpop.f32.mrf.mxu2  ;;  %v988_v33 = vld [vmem:[#allocation2 + $0x48] sm:$0xff] }
 0x174   : > { %v1446_v37 = vpop.f32.mrf.mxu3  ;;  %958 = vst.msk [vmem:[#allocation3 + $0x48] sm:$0xff] %vm948_vm1, %v925_v8 }
 0x175   : > { %v1447_v38 = vadd.f32 %v1446_v37, %v1357_v35  ;;  %v1320_v39 = vpop.f32.mrf.mxu0  ;;  %v855_v17 = vpop.xlane.xlu2 %854  ;;  %v738_v35 = vld [vmem:[#allocation3 + $0x70] sm:$0xff]  ;;  %v740_v37 = vld [vmem:[#allocation3 + $0x80] sm:$0xff] }
 0x176   : > { %v1409_v41 = vpop.f32.mrf.mxu1  ;;  %v927_v22 = vadd.f32 %v855_v17, %v735_v16 }
 0x177   : > { %v1498_v46 = vadd.f32 %v1447_v38, %v1000_v36  ;;  %v1410_v47 = vadd.f32 %v1409_v41, %v1320_v39  ;;  %v861_v23 = vpop.xlane.xlu1 %860  ;;  %v739_v38 = vld [vmem:[#allocation3 + $0x78] sm:$0xff] }
 0x178   : > { %v929_v24 = vadd.f32 %v861_v23, %v737_v18  ;;  %v858_v25 = vpop.xlane.xlu0 %857  ;;  %960 = vst.msk [vmem:[#allocation3 + $0x58] sm:$0xff] %vm948_vm1, %v927_v22  ;;  %v1006_v22 = vld [vmem:[#allocation2 + $0xd0] sm:$0xff] }
 0x179   : > { %1530 = vst [vmem:[#allocation2 + $0xc8] sm:$0xff] %v1498_v46  ;;  %v1483_v52 = vadd.f32 %v1410_v47, %v985_v40  ;;  %v928_v27 = vadd.f32 %v858_v25, %v736_v19 }
 0x17a   : > { %962 = vst.msk [vmem:[#allocation3 + $0x68] sm:$0xff] %vm948_vm1, %v929_v24 }
 0x17b   : > { %1515 = vst [vmem:[#allocation2 + $0x50] sm:$0xff] %v1483_v52  ;;  %v1360_v54 = vpop.f32.mrf.mxu2  ;;  %v989_v52 = vld [vmem:[#allocation2 + $0x80] sm:$0xff] }
 0x17c   : > { %v1449_v56 = vpop.f32.mrf.mxu3  ;;  %961 = vst.msk [vmem:[#allocation3 + $0x60] sm:$0xff] %vm948_vm1, %v928_v27 }
 0x17d   : > { %v1450_v57 = vadd.f32 %v1449_v56, %v1360_v54  ;;  %v1322_v58 = vpop.f32.mrf.mxu0  ;;  %v864_v36 = vpop.xlane.xlu2 %863  ;;  %v741_v54 = vld [vmem:[#allocation3 + $0x88] sm:$0xff]  ;;  %v743_v56 = vld [vmem:[#allocation3 + $0x98] sm:$0xff] }
 0x17e   : > { %v1411_v60 = vpop.f32.mrf.mxu1  ;;  %v930_v41 = vadd.f32 %v864_v36, %v738_v35 }
 0x17f   : > { %v1499_v1 = vadd.f32 %v1450_v57, %v1001_v55  ;;  %v1412_v2 = vadd.f32 %v1411_v60, %v1322_v58  ;;  %v870_v42 = vpop.xlane.xlu1 %869  ;;  %v742_v57 = vld [vmem:[#allocation3 + $0x90] sm:$0xff] }
 0x180   : > { %v932_v43 = vadd.f32 %v870_v42, %v740_v37  ;;  %v867_v44 = vpop.xlane.xlu0 %866  ;;  %963 = vst.msk [vmem:[#allocation3 + $0x70] sm:$0xff] %vm948_vm1, %v930_v41  ;;  %v1007_v41 = vld [vmem:[#allocation2 + $0x10] sm:$0xff] }
 0x181   : > { %1531 = vst [vmem:[#allocation2 + $0xe0] sm:$0xff] %v1499_v1  ;;  %v1484_v7 = vadd.f32 %v1412_v2, %v986_v59  ;;  %v931_v46 = vadd.f32 %v867_v44, %v739_v38 }
 0x182   : > { %965 = vst.msk [vmem:[#allocation3 + $0x80] sm:$0xff] %vm948_vm1, %v932_v43 }
 0x183   : > { %1516 = vst [vmem:[#allocation2 + $0x68] sm:$0xff] %v1484_v7  ;;  %v1362_v9 = vpop.f32.mrf.mxu2  ;;  %v990_v7 = vld [vmem:[#allocation2 + $0x88] sm:$0xff] }
 0x184   : > { %v1451_v11 = vpop.f32.mrf.mxu3  ;;  %964 = vst.msk [vmem:[#allocation3 + $0x78] sm:$0xff] %vm948_vm1, %v931_v46 }
 0x185   : > { %v1452_v12 = vadd.f32 %v1451_v11, %v1362_v9  ;;  %v1325_v13 = vpop.f32.mrf.mxu0  ;;  %v873_v55 = vpop.xlane.xlu2 %872  ;;  %v744_v9 = vld [vmem:[#allocation3 + $0xa0] sm:$0xff]  ;;  %v746_v11 = vld [vmem:[#allocation3 + $0xb0] sm:$0xff] }
 0x186   : > { %v1414_v15 = vpop.f32.mrf.mxu1  ;;  %v933_v60 = vadd.f32 %v873_v55, %v741_v54 }
 0x187   : > { %v1500_v20 = vadd.f32 %v1452_v12, %v1002_v10  ;;  %v1415_v21 = vadd.f32 %v1414_v15, %v1325_v13  ;;  %v879_v61 = vpop.xlane.xlu1 %878  ;;  %v745_v12 = vld [vmem:[#allocation3 + $0xa8] sm:$0xff] }
 0x188   : > { %v935_v62 = vadd.f32 %v879_v61, %v743_v56  ;;  %v876_v63 = vpop.xlane.xlu0 %875  ;;  %966 = vst.msk [vmem:[#allocation3 + $0x88] sm:$0xff] %vm948_vm1, %v933_v60  ;;  %v1008_v60 = vld [vmem:[#allocation2 + $0x28] sm:$0xff] }
 0x189   : > { %1532 = vst [vmem:[#allocation2 + $0x90] sm:$0xff] %v1500_v20  ;;  %v1485_v26 = vadd.f32 %v1415_v21, %v987_v14  ;;  %v934_v1 = vadd.f32 %v876_v63, %v742_v57 }
 0x18a   : > { %968 = vst.msk [vmem:[#allocation3 + $0x98] sm:$0xff] %vm948_vm1, %v935_v62 }
 0x18b   : > { %1517 = vst [vmem:[#allocation2 + $0x30] sm:$0xff] %v1485_v26  ;;  %v1365_v28 = vpop.f32.mrf.mxu2  ;;  %v991_v26 = vld [vmem:[#allocation2 + $0xe8] sm:$0xff] }
 0x18c   : > { %v1454_v30 = vpop.f32.mrf.mxu3  ;;  %967 = vst.msk [vmem:[#allocation3 + $0x90] sm:$0xff] %vm948_vm1, %v934_v1 }
 0x18d   : > { %v1455_v31 = vadd.f32 %v1454_v30, %v1365_v28  ;;  %v1327_v32 = vpop.f32.mrf.mxu0  ;;  %v882_v10 = vpop.xlane.xlu2 %881  ;;  %v747_v28 = vld [vmem:[#allocation3 + $0xb8] sm:$0xff]  ;;  %v749_v30 = vld [vmem:[#allocation3 + $0xc8] sm:$0xff] }
 0x18e   : > { %v1416_v34 = vpop.f32.mrf.mxu1  ;;  %v936_v15 = vadd.f32 %v882_v10, %v744_v9 }
 0x18f   : > { %v1501_v39 = vadd.f32 %v1455_v31, %v1003_v29  ;;  %v1417_v40 = vadd.f32 %v1416_v34, %v1327_v32  ;;  %v888_v16 = vpop.xlane.xlu1 %887  ;;  %v748_v31 = vld [vmem:[#allocation3 + $0xc0] sm:$0xff] }
 0x190   : > { %v938_v17 = vadd.f32 %v888_v16, %v746_v11  ;;  %v885_v18 = vpop.xlane.xlu0 %884  ;;  %969 = vst.msk [vmem:[#allocation3 + $0xa0] sm:$0xff] %vm948_vm1, %v936_v15  ;;  %v1009_v15 = vld [vmem:[#allocation2 + $0xa0] sm:$0xff] }
 0x191   : > { %1533 = vst [vmem:[#allocation2 + $0x70] sm:$0xff] %v1501_v39  ;;  %v1486_v45 = vadd.f32 %v1417_v40, %v988_v33  ;;  %v937_v20 = vadd.f32 %v885_v18, %v745_v12 }
 0x192   : > { %971 = vst.msk [vmem:[#allocation3 + $0xb0] sm:$0xff] %vm948_vm1, %v938_v17 }
 0x193   : > { %1518 = vst [vmem:[#allocation2 + $0x48] sm:$0xff] %v1486_v45  ;;  %v1367_v47 = vpop.f32.mrf.mxu2  ;;  %v992_v45 = vld [vmem:[#allocation2 + $0xb8] sm:$0xff] }
 0x194   : > { %v1456_v49 = vpop.f32.mrf.mxu3  ;;  %970 = vst.msk [vmem:[#allocation3 + $0xa8] sm:$0xff] %vm948_vm1, %v937_v20 }
 0x195   : > { %v1457_v50 = vadd.f32 %v1456_v49, %v1367_v47  ;;  %v1330_v51 = vpop.f32.mrf.mxu0  ;;  %v891_v29 = vpop.xlane.xlu2 %890  ;;  %v750_v47 = vld [vmem:[#allocation3 + $0xd0] sm:$0xff]  ;;  %v752_v49 = vld [vmem:[#allocation3 + $0xe0] sm:$0xff] }
 0x196   : > { %v1419_v53 = vpop.f32.mrf.mxu1  ;;  %v939_v34 = vadd.f32 %v891_v29, %v747_v28  ;;  %v995_v29 = vld [vmem:[#allocation2 + $0x8] sm:$0xff] }
 0x197   : > { %v1502_v58 = vadd.f32 %v1457_v50, %v1004_v48  ;;  %v1420_v59 = vadd.f32 %v1419_v53, %v1330_v51  ;;  %v897_v35 = vpop.xlane.xlu1 %896  ;;  %v751_v50 = vld [vmem:[#allocation3 + $0xd8] sm:$0xff] }
 0x198   : > { %v941_v36 = vadd.f32 %v897_v35, %v749_v30  ;;  %v894_v37 = vpop.xlane.xlu0 %893  ;;  %972 = vst.msk [vmem:[#allocation3 + $0xb8] sm:$0xff] %vm948_vm1, %v939_v34  ;;  %v1011_v35 = vld [vmem:[#allocation2 + $0x20] sm:$0xff] }
 0x199   : > { %1534 = vst [vmem:[#allocation2 + $0xc0] sm:$0xff] %v1502_v58  ;;  %v1487_v0 = vadd.f32 %v1420_v59, %v989_v52  ;;  %v940_v39 = vadd.f32 %v894_v37, %v748_v31 }
 0x19a   : > { %974 = vst.msk [vmem:[#allocation3 + $0xc8] sm:$0xff] %vm948_vm1, %v941_v36 }
 0x19b   : > { %1519 = vst [vmem:[#allocation2 + $0x80] sm:$0xff] %v1487_v0  ;;  %v1370_v2 = vpop.f32.mrf.mxu2  ;;  %v993_v0 = vld [vmem:[#allocation2 + $0x60] sm:$0xff] }
 0x19c   : > { %v1459_v4 = vpop.f32.mrf.mxu3  ;;  %973 = vst.msk [vmem:[#allocation3 + $0xc0] sm:$0xff] %vm948_vm1, %v940_v39  ;;  %v996_v39 = vld [vmem:[#allocation2 + $0x78] sm:$0xff] }
 0x19d   : > { %v1460_v5 = vadd.f32 %v1459_v4, %v1370_v2  ;;  %v1332_v6 = vpop.f32.mrf.mxu0  ;;  %v753_v2 = vld [vmem:[#allocation3 + $0xe8] sm:$0xff]  ;;  %v755_v4 = vld [vmem:[#allocation3 + $0xf8] sm:$0xff] }
 0x19e   : > { %v1421_v8 = vpop.f32.mrf.mxu1  ;;  %v900_v48 = vpop.xlane.xlu2 %899 }
 0x19f   : > { %v1503_v13 = vadd.f32 %v1460_v5, %v1005_v3  ;;  %v1422_v14 = vadd.f32 %v1421_v8, %v1332_v6  ;;  %v942_v53 = vadd.f32 %v900_v48, %v750_v47  ;;  %v906_v54 = vpop.xlane.xlu1 %905  ;;  %v754_v5 = vld [vmem:[#allocation3 + $0xf0] sm:$0xff] }
 0x1a0   : > { %v944_v55 = vadd.f32 %v906_v54, %v752_v49  ;;  %v903_v56 = vpop.xlane.xlu0 %902 }
 0x1a1   : > { %1535 = vst [vmem:[#allocation2 + $0xa8] sm:$0xff] %v1503_v13  ;;  %v1488_v19 = vadd.f32 %v1422_v14, %v990_v7  ;;  %v943_v58 = vadd.f32 %v903_v56, %v751_v50 }
 0x1a2   : > { %975 = vst.msk [vmem:[#allocation3 + $0xd0] sm:$0xff] %vm948_vm1, %v942_v53 }
 0x1a3   : > { %1520 = vst [vmem:[#allocation2 + $0x88] sm:$0xff] %v1488_v19  ;;  %v1372_v21 = vpop.f32.mrf.mxu2  ;;  %v994_v19 = vld [vmem:[#allocation2 + $0xf0] sm:$0xff] }
 0x1a4   : > { %v1461_v23 = vpop.f32.mrf.mxu3  ;;  %977 = vst.msk [vmem:[#allocation3 + $0xe0] sm:$0xff] %vm948_vm1, %v944_v55 }
 0x1a5   : > { %v1462_v24 = vadd.f32 %v1461_v23, %v1372_v21  ;;  %v1335_v25 = vpop.f32.mrf.mxu0  ;;  %976 = vst.msk [vmem:[#allocation3 + $0xd8] sm:$0xff] %vm948_vm1, %v943_v58 }
 0x1a6   : > { %v1424_v27 = vpop.f32.mrf.mxu1  ;;  %v909_v3 = vpop.xlane.xlu2 %908 }
 0x1a7   : > { %v1504_v32 = vadd.f32 %v1462_v24, %v1006_v22  ;;  %v1425_v33 = vadd.f32 %v1424_v27, %v1335_v25  ;;  %v945_v8 = vadd.f32 %v909_v3, %v753_v2  ;;  %v915_v9 = vpop.xlane.xlu1 %914  ;;  %v1010_v25 = vld [vmem:[#allocation2 + $0xf8] sm:$0xff] }
 0x1a8   : > { %v947_v10 = vadd.f32 %v915_v9, %v755_v4  ;;  %v912_v11 = vpop.xlane.xlu0 %911 }
 0x1a9   : > { %1536 = vst [vmem:[#allocation2 + $0xd0] sm:$0xff] %v1504_v32  ;;  %v1489_v38 = vadd.f32 %v1425_v33, %v991_v26  ;;  %v946_v13 = vadd.f32 %v912_v11, %v754_v5 }
 0x1aa   : > { %978 = vst.msk [vmem:[#allocation3 + $0xe8] sm:$0xff] %vm948_vm1, %v945_v8 }
 0x1ab   : > { %1521 = vst [vmem:[#allocation2 + $0xe8] sm:$0xff] %v1489_v38  ;;  %v1375_v40 = vpop.f32.mrf.mxu2 }
 0x1ac   : > { %v1464_v42 = vpop.f32.mrf.mxu3  ;;  %980 = vst.msk [vmem:[#allocation3 + $0xf8] sm:$0xff] %vm948_vm1, %v947_v10 }
 0x1ad   : > { %v1465_v43 = vadd.f32 %v1464_v42, %v1375_v40  ;;  %v1337_v44 = vpop.f32.mrf.mxu0  ;;  %979 = vst.msk [vmem:[#allocation3 + $0xf0] sm:$0xff] %vm948_vm1, %v946_v13 }
 0x1ae   : > { %v1426_v46 = vpop.f32.mrf.mxu1 }
 0x1af   : > { %v1505_v51 = vadd.f32 %v1465_v43, %v1007_v41  ;;  %v1427_v52 = vadd.f32 %v1426_v46, %v1337_v44 }
 0x1b1   : > { %1537 = vst [vmem:[#allocation2 + $0x10] sm:$0xff] %v1505_v51  ;;  %v1490_v57 = vadd.f32 %v1427_v52, %v992_v45  ;;  %v1012_v45 = vld [vmem:[#allocation2 + $0x98] sm:$0xff] }
 0x1b3   : > { %1522 = vst [vmem:[#allocation2 + $0xb8] sm:$0xff] %v1490_v57  ;;  %v1377_v59 = vpop.f32.mrf.mxu2 }
 0x1b4   : > { %v1466_v61 = vpop.f32.mrf.mxu3 }
 0x1b5   : > { %v1467_v62 = vadd.f32 %v1466_v61, %v1377_v59  ;;  %v1340_v63 = vpop.f32.mrf.mxu0 }
 0x1b6   : > { %v1429_v1 = vpop.f32.mrf.mxu1 }
 0x1b7   : > { %v1506_v6 = vadd.f32 %v1467_v62, %v1008_v60  ;;  %v1430_v7 = vadd.f32 %v1429_v1, %v1340_v63 }
 0x1b9   : > { %1538 = vst [vmem:[#allocation2 + $0x28] sm:$0xff] %v1506_v6  ;;  %v1491_v12 = vadd.f32 %v1430_v7, %v993_v0 }
 0x1bb   : > { %1523 = vst [vmem:[#allocation2 + $0x60] sm:$0xff] %v1491_v12  ;;  %v1380_v14 = vpop.f32.mrf.mxu2 }
 0x1bc   : > { %v1469_v16 = vpop.f32.mrf.mxu3 }
 0x1bd   : > { %v1470_v17 = vadd.f32 %v1469_v16, %v1380_v14  ;;  %v1342_v18 = vpop.f32.mrf.mxu0 }
 0x1be   : > { %v1431_v20 = vpop.f32.mrf.mxu1 }
 0x1bf   : > { %v1507_v21 = vadd.f32 %v1470_v17, %v1009_v15  ;;  %v1432_v22 = vadd.f32 %v1431_v20, %v1342_v18 }
 0x1c1   : > { %1539 = vst [vmem:[#allocation2 + $0xa0] sm:$0xff] %v1507_v21  ;;  %v1492_v23 = vadd.f32 %v1432_v22, %v994_v19 }
 0x1c3   : > { %1524 = vst [vmem:[#allocation2 + $0xf0] sm:$0xff] %v1492_v23  ;;  %v1382_v24 = vpop.f32.mrf.mxu2 }
 0x1c4   : > { %v1471_v26 = vpop.f32.mrf.mxu3 }
 0x1c5   : > { %v1472_v27 = vadd.f32 %v1471_v26, %v1382_v24  ;;  %v1345_v28 = vpop.f32.mrf.mxu0 }
 0x1c6   : > { %v1434_v30 = vpop.f32.mrf.mxu1 }
 0x1c7   : > { %v1508_v31 = vadd.f32 %v1472_v27, %v1010_v25  ;;  %v1435_v32 = vadd.f32 %v1434_v30, %v1345_v28 }
 0x1c9   : > { %1540 = vst [vmem:[#allocation2 + $0xf8] sm:$0xff] %v1508_v31  ;;  %v1493_v33 = vadd.f32 %v1435_v32, %v995_v29 }
 0x1cb   : > { %1525 = vst [vmem:[#allocation2 + $0x8] sm:$0xff] %v1493_v33  ;;  %v1385_v34 = vpop.f32.mrf.mxu2 }
 0x1cc   : > { %v1474_v36 = vpop.f32.mrf.mxu3 }
 0x1cd   : > { %v1475_v37 = vadd.f32 %v1474_v36, %v1385_v34  ;;  %v1347_v38 = vpop.f32.mrf.mxu0 }
 0x1ce   : > { %v1436_v40 = vpop.f32.mrf.mxu1 }
 0x1cf   : > { %v1509_v41 = vadd.f32 %v1475_v37, %v1011_v35  ;;  %v1437_v42 = vadd.f32 %v1436_v40, %v1347_v38 }
 0x1d1   : > { %1541 = vst [vmem:[#allocation2 + $0x20] sm:$0xff] %v1509_v41  ;;  %v1494_v43 = vadd.f32 %v1437_v42, %v996_v39 }
 0x1d3   : > { %1526 = vst [vmem:[#allocation2 + $0x78] sm:$0xff] %v1494_v43  ;;  %v1387_v44 = vpop.f32.mrf.mxu2 }
 0x1d4   : > { %v1476_v46 = vpop.f32.mrf.mxu3 }
 0x1d5   : > { %v1477_v47 = vadd.f32 %v1476_v46, %v1387_v44  ;;  %1546 = sbr.rel (%p4421_p6) target bundleno = 1451 (0x5ab), region = 88 }
 0x1d7   : > { %v1510_v48 = vadd.f32 %v1477_v47, %v1012_v45 }
 0x1d9   : > { %1542 = vst [vmem:[#allocation2 + $0x98] sm:$0xff] %v1510_v48 }
 0x1da   : > { %v1551_v49 = vld [vmem:[#allocation3 + $0x20] sm:$0xff]  ;;  %v1549_v50 = vld [vmem:[#allocation3 + $0x10] sm:$0xff]  ;;  %v5748_v52 = vmov 0   ;;  %v1552_v56 = vld [vmem:[#allocation3 + $0x28] sm:$0xff]  ;;  %s8606_s10 = sld [smem:[#allocation71_spill]] }
 0x1db   : > { %v1547_v51 = vld [vmem:[#allocation3] sm:$0xff]  ;;  %5039 = vset.pattern.permute.xlu2 %v5748_v52  ;;  %5038 = vset.pattern.permute.xlu1 %v5748_v52  ;;  %v6306_v53 = vmax.f32 %v1551_v49, 1e-24  ;;  %v6308_v54 = vmax.f32 %v1549_v50, 1e-24  ;;  %v1550_v57 = vld [vmem:[#allocation3 + $0x18] sm:$0xff] }
 0x1dc   : > { %v6310_v55 = vmax.f32 %v1547_v51, 1e-24  ;;  %5037 = vset.pattern.permute.xlu0 %v5748_v52  ;;  %v1548_v58 = vld [vmem:[#allocation3 + $0x8] sm:$0xff]  ;;  %v1555_v59 = vld [vmem:[#allocation3 + $0x40] sm:$0xff]  ;;  %v1554_v60 = vld [vmem:[#allocation3 + $0x38] sm:$0xff]  ;;  %s8753_s5 = sld [smem:[#allocation73_spill]] }
 0x1dd   : > { %5042 = vrsqrt.f32 %v6306_v53  ;;  %v6314_v61 = vmax.f32 %v1552_v56, 1e-24  ;;  %v6316_v62 = vmax.f32 %v1550_v57, 1e-24  ;;  %v6318_v63 = vmax.f32 %v1548_v58, 1e-24 }
 0x1de   : > { %5044 = vrsqrt.f32 %v6308_v54  ;;  %v6321_v0 = vmax.f32 %v1555_v59, 1e-24  ;;  %v6324_v1 = vmax.f32 %v1554_v60, 1e-24  ;;  %v1553_v2 = vld [vmem:[#allocation3 + $0x30] sm:$0xff]  ;;  %v1558_v3 = vld [vmem:[#allocation3 + $0x58] sm:$0xff]  ;;  %vm1657_vm2 = vweird.f32 %v6306_v53 }
 0x1df   : > { %5046 = vrsqrt.f32 %v6310_v55  ;;  %v1557_v4 = vld [vmem:[#allocation3 + $0x50] sm:$0xff]  ;;  %v6331_v6 = vmax.f32 %v1553_v2, 1e-24  ;;  %v6339_v9 = vmax.f32 %v1558_v3, 1e-24  ;;  %vm1637_vm3 = vweird.f32 %v6308_v54  ;;  %v1556_v47 = vld [vmem:[#allocation3 + $0x48] sm:$0xff] }
 0x1e0   : > { %5048 = vrsqrt.f32 %v6314_v61  ;;  %vm1617_vm4 = vweird.f32 %v6310_v55  ;;  %v6347_v12 = vmax.f32 %v1557_v4, 1e-24  ;;  %vm1667_vm7 = vweird.f32 %v6314_v61  ;;  %v1561_v52 = vld [vmem:[#allocation3 + $0x70] sm:$0xff]  ;;  %v1560_v57 = vld [vmem:[#allocation3 + $0x68] sm:$0xff]  ;;  %v1559_v58 = vld [vmem:[#allocation3 + $0x60] sm:$0xff]  ;;  %s8756_s14 = sld [smem:[#allocation75_spill]] }
 0x1e1   : > { %5050 = vrsqrt.f32 %v6316_v62  ;;  %vm1647_vm9 = vweird.f32 %v6316_v62  ;;  %vm1627_vm10 = vweird.f32 %v6318_v63  ;;  %vm1697_vm15 = vweird.f32 %v6321_v0  ;;  %v1564_v3 = vld [vmem:[#allocation3 + $0x88] sm:$0xff] }
 0x1e2   : > { %5052 = vrsqrt.f32 %v6318_v63  ;;  %v6434_v2 = vmax.f32 %v1556_v47, 1e-24 }
 0x1e3   : > { %v6328_v5 = vpop.eup %5042  ;;  %5054 = vrsqrt.f32 %v6321_v0 }
 0x1e4   : > { %v6333_v7 = vpop.eup %5044  ;;  %v1652_v8 = vmul.f32 %v6328_v5, %v6306_v53  ;;  %5056 = vrsqrt.f32 %v6324_v1  ;;  %vm1658_vm5 = vweird.f32 %v6328_v5 }
 0x1e5   : > { %v6341_v10 = vpop.eup %5046  ;;  %v1632_v11 = vmul.f32 %v6333_v7, %v6308_v54  ;;  %vm1638_vm6 = vweird.f32 %v6333_v7  ;;  %5058 = vrsqrt.f32 %v6331_v6  ;;  %vm6387_vm12 = vmor %vm1657_vm2, %vm1658_vm5  ;;  %vm1687_vm2 = vweird.f32 %v6324_v1 }
 0x1e6   : > { %v6349_v13 = vpop.eup %5048  ;;  %v1653_v14 = vmul.f32 %v6328_v5, %v1652_v8  ;;  %v1612_v15 = vmul.f32 %v6341_v10, %v6310_v55  ;;  %vm1618_vm8 = vweird.f32 %v6341_v10  ;;  %5060 = vrsqrt.f32 %v6339_v9  ;;  %vm6398_vm13 = vmor %vm1637_vm3, %vm1638_vm6 }
 0x1e7   : > { %v6357_v16 = vpop.eup %5050  ;;  %v1633_v17 = vmul.f32 %v6333_v7, %v1632_v11  ;;  %v1662_v18 = vmul.f32 %v6349_v13, %v6314_v61  ;;  %vm1668_vm11 = vweird.f32 %v6349_v13  ;;  %5062 = vrsqrt.f32 %v6347_v12  ;;  %vm6410_vm14 = vmor %vm1617_vm4, %vm1618_vm8 }
 0x1e8   : > { %v6365_v19 = vpop.eup %5052  ;;  %v1654_v20 = vmul.f32 0.5, %v1653_v14  ;;  %v1613_v21 = vmul.f32 %v6341_v10, %v1612_v15  ;;  %v1642_v22 = vmul.f32 %v6357_v16, %v6316_v62  ;;  %vm1648_vm0 = vweird.f32 %v6357_v16  ;;  %vm6442_vm4 = vmor %vm1667_vm7, %vm1668_vm11 }
 0x1e9   : > { %v6372_v23 = vpop.eup %5054  ;;  %v1634_v24 = vmul.f32 0.5, %v1633_v17  ;;  %v1663_v25 = vmul.f32 %v6349_v13, %v1662_v18  ;;  %v1622_v26 = vmul.f32 %v6365_v19, %v6318_v63  ;;  %vm1628_vm3 = vweird.f32 %v6365_v19  ;;  %vm6455_vm5 = vmor %vm1647_vm9, %vm1648_vm0 }
 0x1ea   : > { %v6378_v27 = vpop.eup %5056  ;;  %v1655_v28 = vsub.f32 1.5, %v1654_v20  ;;  %v1614_v29 = vmul.f32 0.5, %v1613_v21  ;;  %v1643_v30 = vmul.f32 %v6357_v16, %v1642_v22  ;;  %v1692_v31 = vmul.f32 %v6372_v23, %v6321_v0  ;;  %vm6470_vm6 = vmor %vm1627_vm10, %vm1628_vm3 }
 0x1eb   : > { %v1635_v33 = vsub.f32 1.5, %v1634_v24  ;;  %v1664_v34 = vmul.f32 0.5, %v1663_v25  ;;  %v1623_v35 = vmul.f32 %v6365_v19, %v1622_v26  ;;  %v6403_v41 = vpop.eup %5058  ;;  %v1682_v46 = vmul.f32 %v6378_v27, %v6324_v1 }
 0x1ec   : > { %v1656_v36 = vmul.f32 %v6328_v5, %v1655_v28  ;;  %v1615_v38 = vsub.f32 1.5, %v1614_v29  ;;  %v1644_v39 = vmul.f32 0.5, %v1643_v30  ;;  %v1693_v40 = vmul.f32 %v6372_v23, %v1692_v31  ;;  %v6417_v48 = vpop.eup %5060 }
 0x1ed   : > { %v1636_v42 = vmul.f32 %v6333_v7, %v1635_v33  ;;  %v1665_v44 = vsub.f32 1.5, %v1664_v34  ;;  %v1624_v45 = vmul.f32 0.5, %v1623_v35  ;;  %v1683_v56 = vmul.f32 %v6378_v27, %v1682_v46  ;;  %v6436_v4 = vpop.eup %5062 }
 0x1ee   : > { %v1660_v49 = vsel %vm6387_vm12, %v6328_v5, %v1656_v36  ;;  %v1616_v50 = vmul.f32 %v6341_v10, %v1615_v38  ;;  %v1645_v51 = vsub.f32 1.5, %v1644_v39  ;;  %v1694_v55 = vmul.f32 0.5, %v1693_v40  ;;  %v1562_v36 = vld [vmem:[#allocation3 + $0x78] sm:$0xff]  ;;  %v1571_v40 = vld [vmem:[#allocation3 + $0xc0] sm:$0xff] }
 0x1ef   : > { %1985 = vperm.xlu2 %5039, %v1660_v49   ;;  %v1640_v53 = vsel %vm6398_vm13, %v6333_v7, %v1636_v42  ;;  %v1625_v54 = vsub.f32 1.5, %v1624_v45  ;;  %v1666_v60 = vmul.f32 %v6349_v13, %v1665_v44  ;;  %v1684_v8 = vmul.f32 0.5, %v1683_v56  ;;  %v1566_v45 = vld [vmem:[#allocation3 + $0x98] sm:$0xff]  ;;  %v1565_v49 = vld [vmem:[#allocation3 + $0x90] sm:$0xff] }
 0x1f0   : > { %1975 = vperm.xlu1 %5038, %v1640_v53   ;;  %v1620_v59 = vsel %vm6410_vm14, %v6341_v10, %v1616_v50  ;;  %v1646_v7 = vmul.f32 %v6357_v16, %v1645_v51  ;;  %v1672_v10 = vmul.f32 %v6403_v41, %v6331_v6  ;;  %v6449_v11 = vmax.f32 %v1561_v52, 1e-24 }
 0x1f1   : > { %1965 = vperm.xlu0 %5037, %v1620_v59   ;;  %v1626_v61 = vmul.f32 %v6365_v19, %v1625_v54  ;;  %v1722_v15 = vmul.f32 %v6417_v48, %v6339_v9  ;;  %v6462_v17 = vmax.f32 %v1560_v57, 1e-24  ;;  %v6464_v18 = vmax.f32 %v1559_v58, 1e-24 }
 0x1f2   : > { %v1695_v62 = vsub.f32 1.5, %v1694_v55  ;;  %vm1698_vm7 = vweird.f32 %v6372_v23  ;;  %v1673_v21 = vmul.f32 %v6403_v41, %v1672_v10  ;;  %v6476_v22 = vmax.f32 %v1564_v3, 1e-24 }
 0x1f3   : > { %v1670_v24 = vsel %vm6442_vm4, %v6349_v13, %v1666_v60  ;;  %v1685_v25 = vsub.f32 1.5, %v1684_v8  ;;  %v1723_v26 = vmul.f32 %v6417_v48, %v1722_v15  ;;  %v1712_v63 = vmul.f32 %v6436_v4, %v6347_v12  ;;  %vm6501_vm10 = vmor %vm1697_vm15, %vm1698_vm7 }
 0x1f4   : > { %v1650_v28 = vsel %vm6455_vm5, %v6357_v16, %v1646_v7  ;;  %vm1688_vm8 = vweird.f32 %v6378_v27  ;;  %v1674_v29 = vmul.f32 0.5, %v1673_v21  ;;  %5064 = vrsqrt.f32 %v6434_v2  ;;  %v1563_v16 = vld [vmem:[#allocation3 + $0x80] sm:$0xff] }
 0x1f5   : > { %v1630_v30 = vsel %vm6470_vm6, %v6365_v19, %v1626_v61  ;;  %v1724_v13 = vmul.f32 0.5, %v1723_v26  ;;  %v1713_v31 = vmul.f32 %v6436_v4, %v1712_v63  ;;  %5066 = vrsqrt.f32 %v6449_v11  ;;  %vm6512_vm12 = vmor %vm1687_vm2, %vm1688_vm8 }
 0x1f6   : > { %v1696_v32 = vmul.f32 %v6372_v23, %v1695_v62  ;;  %v1675_v33 = vsub.f32 1.5, %v1674_v29  ;;  %vm1677_vm9 = vweird.f32 %v6331_v6  ;;  %5068 = vrsqrt.f32 %v6462_v17 }
 0x1f7   : > { %1990 = vperm.xlu2 %5039, %v1670_v24   ;;  %v1686_v34 = vmul.f32 %v6378_v27, %v1685_v25  ;;  %vm1678_vm11 = vweird.f32 %v6403_v41  ;;  %v1725_v35 = vsub.f32 1.5, %v1724_v13  ;;  %5070 = vrsqrt.f32 %v6464_v18  ;;  %v1576_v24 = vld [vmem:[#allocation3 + $0xe8] sm:$0xff] }
 0x1f8   : > { %1980 = vperm.xlu1 %5038, %v1650_v28   ;;  %v1714_v0 = vmul.f32 0.5, %v1713_v31  ;;  %5072 = vrsqrt.f32 %v6476_v22  ;;  %v1676_v38 = vmul.f32 %v6403_v41, %v1675_v33  ;;  %vm1727_vm13 = vweird.f32 %v6339_v9  ;;  %vm6531_vm15 = vmor %vm1677_vm9, %vm1678_vm11  ;;  %v4683_v9 = vld [vmem:[#allocation10 + $0x54] sm:$0xf0] }
 0x1f9   : > { %1970 = vperm.xlu0 %5037, %v1630_v30   ;;  %vm1728_vm14 = vweird.f32 %v6417_v48  ;;  %v6520_v39 = vmax.f32 %v1563_v16, 1e-24  ;;  %v1700_v1 = vsel %vm6501_vm10, %v6372_v23, %v1696_v32  ;;  %vm1717_vm0 = vweird.f32 %v6347_v12 }
 0x1fa   : > { %v6522_v42 = vpop.eup %5064  ;;  %vm1718_vm2 = vweird.f32 %v6436_v4  ;;  %v6537_v44 = vmax.f32 %v1562_v36, 1e-24  ;;  %v1690_v23 = vsel %vm6512_vm12, %v6378_v27, %v1686_v34  ;;  %v1726_v47 = vmul.f32 %v6417_v48, %v1725_v35  ;;  %vm6577_vm4 = vmor %vm1727_vm13, %vm1728_vm14  ;;  %v1568_v35 = vld [vmem:[#allocation3 + $0xa8] sm:$0xff]  ;;  %v1567_v36 = vld [vmem:[#allocation3 + $0xa0] sm:$0xff] }
 0x1fb   : > { %v6539_v46 = vpop.eup %5066  ;;  %v1702_v6 = vmul.f32 %v6522_v42, %v6434_v2  ;;  %vm1707_vm3 = vweird.f32 %v6434_v2  ;;  %v1715_v51 = vsub.f32 1.5, %v1714_v0  ;;  %5074 = vrsqrt.f32 %v6520_v39  ;;  %vm6592_vm6 = vmor %vm1717_vm0, %vm1718_vm2 }
 0x1fc   : > { %v6548_v50 = vpop.eup %5068  ;;  %v1752_v52 = vmul.f32 %v6539_v46, %v6449_v11  ;;  %v6553_v53 = vmax.f32 %v1571_v40, 1e-24  ;;  %v1680_v27 = vsel %vm6531_vm15, %v6403_v41, %v1676_v38  ;;  %v6563_v57 = vmax.f32 %v1566_v45, 1e-24 }
 0x1fd   : > { %v6555_v54 = vpop.eup %5070  ;;  %v1703_v55 = vmul.f32 %v6522_v42, %v1702_v6  ;;  %v1742_v56 = vmul.f32 %v6548_v50, %v6462_v17  ;;  %5076 = vrsqrt.f32 %v6537_v44  ;;  %v6571_v3 = vmax.f32 %v1565_v49, 1e-24 }
 0x1fe   : > { %v6565_v58 = vpop.eup %5072  ;;  %v1753_v59 = vmul.f32 %v6539_v46, %v1752_v52  ;;  %v1732_v60 = vmul.f32 %v6555_v54, %v6464_v18  ;;  %vm1708_vm5 = vweird.f32 %v6522_v42  ;;  %v1716_v10 = vmul.f32 %v6436_v4, %v1715_v51 }
 0x1ff   : > { %2005 = vperm.xlu2 %5039, %v1700_v1   ;;  %v1704_v5 = vmul.f32 0.5, %v1703_v55  ;;  %v1743_v7 = vmul.f32 %v6548_v50, %v1742_v56  ;;  %v1782_v8 = vmul.f32 %v6565_v58, %v6476_v22  ;;  %5078 = vrsqrt.f32 %v6553_v53  ;;  %vm6603_vm7 = vmor %vm1707_vm3, %vm1708_vm5 }
 0x200   : > { %2000 = vperm.xlu1 %5038, %v1690_v23   ;;  %v1754_v14 = vmul.f32 0.5, %v1753_v59  ;;  %v1733_v61 = vmul.f32 %v6555_v54, %v1732_v60  ;;  %v1730_v21 = vsel %vm6577_vm4, %v6417_v48, %v1726_v47  ;;  %vm1757_vm8 = vweird.f32 %v6449_v11  ;;  %v1569_v59 = vld [vmem:[#allocation3 + $0xb0] sm:$0xff] }
 0x201   : > { %1995 = vperm.xlu0 %5037, %v1680_v27   ;;  %v1705_v15 = vsub.f32 1.5, %v1704_v5  ;;  %v1744_v20 = vmul.f32 0.5, %v1743_v7  ;;  %v6596_v62 = vpop.eup %5074  ;;  %5080 = vrsqrt.f32 %v6563_v57  ;;  %v1783_v63 = vmul.f32 %v6565_v58, %v1782_v8  ;;  %v1572_v27 = vld [vmem:[#allocation3 + $0xc8] sm:$0xff]  ;;  %v1574_v5 = vld [vmem:[#allocation3 + $0xd8] sm:$0xff] }
 0x202   : > { %v1734_v12 = vmul.f32 0.5, %v1733_v61  ;;  %v1755_v26 = vsub.f32 1.5, %v1754_v14  ;;  %v1772_v28 = vmul.f32 %v6596_v62, %v6520_v39  ;;  %v1720_v2 = vsel %vm6592_vm6, %v6436_v4, %v1716_v10  ;;  %v1573_v61 = vld [vmem:[#allocation3 + $0xd0] sm:$0xff] }
 0x203   : > { %v1706_v25 = vmul.f32 %v6522_v42, %v1705_v15  ;;  %v6613_v48 = vpop.eup %5076  ;;  %v1745_v29 = vsub.f32 1.5, %v1744_v20  ;;  %vm1747_vm9 = vweird.f32 %v6462_v17  ;;  %5082 = vrsqrt.f32 %v6571_v3 }
 0x204   : > { %vm1758_vm10 = vweird.f32 %v6539_v46  ;;  %v1735_v13 = vsub.f32 1.5, %v1734_v12  ;;  %v1773_v31 = vmul.f32 %v6596_v62, %v1772_v28  ;;  %vm1748_vm11 = vweird.f32 %v6548_v50 }
 0x205   : > { %v1710_v30 = vsel %vm6603_vm7, %v6522_v42, %v1706_v25  ;;  %v6625_v32 = vpop.eup %5078  ;;  %vm1737_vm12 = vweird.f32 %v6464_v18  ;;  %vm1738_vm13 = vweird.f32 %v6555_v54  ;;  %v1762_v4 = vmul.f32 %v6613_v48, %v6537_v44  ;;  %vm6641_vm14 = vmor %vm1757_vm8, %vm1758_vm10 }
 0x206   : > { %v1756_v33 = vmul.f32 %v6539_v46, %v1755_v26  ;;  %v1784_v16 = vmul.f32 0.5, %v1783_v63  ;;  %v1774_v19 = vmul.f32 0.5, %v1773_v31  ;;  %v1852_v34 = vmul.f32 %v6625_v32, %v6553_v53  ;;  %vm6651_vm15 = vmor %vm1747_vm9, %vm1748_vm11 }
 0x207   : > { %2020 = vperm.xlu2 %5039, %v1730_v21   ;;  %v6635_v37 = vpop.eup %5080  ;;  %v1746_v38 = vmul.f32 %v6548_v50, %v1745_v29  ;;  %v1763_v40 = vmul.f32 %v6613_v48, %v1762_v4  ;;  %v1736_v1 = vmul.f32 %v6555_v54, %v1735_v13  ;;  %vm1787_vm0 = vweird.f32 %v6476_v22  ;;  %vm6666_vm3 = vmor %vm1737_vm12, %vm1738_vm13  ;;  %v1570_v29 = vld [vmem:[#allocation3 + $0xb8] sm:$0xff] }
 0x208   : > { %2015 = vperm.xlu1 %5038, %v1720_v2   ;;  %vm1777_vm2 = vweird.f32 %v6520_v39  ;;  %v1802_v11 = vmul.f32 %v6635_v37, %v6563_v57  ;;  %v1853_v23 = vmul.f32 %v6625_v32, %v1852_v34  ;;  %v6671_v47 = vmax.f32 %v1568_v35, 1e-24  ;;  %v1575_v39 = vld [vmem:[#allocation3 + $0xe0] sm:$0xff] }
 0x209   : > { %2010 = vperm.xlu0 %5037, %v1710_v30   ;;  %v6660_v43 = vpop.eup %5082  ;;  %v1764_v45 = vmul.f32 0.5, %v1763_v40  ;;  %v6673_v6 = vmax.f32 %v1567_v36, 1e-24  ;;  %v1760_v49 = vsel %vm6641_vm14, %v6539_v46, %v1756_v33  ;;  %v1785_v51 = vsub.f32 1.5, %v1784_v16 }
 0x20a   : > { %v1775_v52 = vsub.f32 1.5, %v1774_v19  ;;  %v1792_v18 = vmul.f32 %v6660_v43, %v6571_v3  ;;  %v1750_v55 = vsel %vm6651_vm15, %v6548_v50, %v1746_v38  ;;  %vm1788_vm4 = vweird.f32 %v6565_v58 }
 0x20b   : > { %v1803_v56 = vmul.f32 %v6635_v37, %v1802_v11  ;;  %5084 = vrsqrt.f32 %v6671_v47  ;;  %v1740_v46 = vsel %vm6666_vm3, %v6555_v54, %v1736_v1  ;;  %vm1778_vm5 = vweird.f32 %v6596_v62  ;;  %vm6700_vm7 = vmor %vm1787_vm0, %vm1788_vm4  ;;  %v1578_v11 = vld [vmem:[#allocation3 + $0xf8] sm:$0xff] }
 0x20c   : > { %v1765_v60 = vsub.f32 1.5, %v1764_v45  ;;  %v1793_v41 = vmul.f32 %v6660_v43, %v1792_v18  ;;  %vm1767_vm6 = vweird.f32 %v6537_v44  ;;  %v1854_v50 = vmul.f32 0.5, %v1853_v23  ;;  %vm6712_vm9 = vmor %vm1777_vm2, %vm1778_vm5 }
 0x20d   : > { %5086 = vrsqrt.f32 %v6673_v6  ;;  %v6693_v7 = vmax.f32 %v1572_v27, 1e-24  ;;  %v1786_v8 = vmul.f32 %v6565_v58, %v1785_v51  ;;  %v1776_v10 = vmul.f32 %v6596_v62, %v1775_v52 }
 0x20e   : > { %vm1768_vm8 = vweird.f32 %v6613_v48  ;;  %v6706_v14 = vmax.f32 %v1569_v59, 1e-24  ;;  %vm1857_vm10 = vweird.f32 %v6553_v53  ;;  %v1804_v22 = vmul.f32 0.5, %v1803_v56 }
 0x20f   : > { %2035 = vperm.xlu2 %5039, %v1760_v49   ;;  %5088 = vrsqrt.f32 %v6693_v7  ;;  %v6718_v15 = vmax.f32 %v1574_v5, 1e-24  ;;  %v1766_v20 = vmul.f32 %v6613_v48, %v1765_v60  ;;  %vm1807_vm11 = vweird.f32 %v6563_v57  ;;  %vm6729_vm12 = vmor %vm1767_vm6, %vm1768_vm8  ;;  %v1940_v57 = vld [vmem:[#allocation2 + $0x88] sm:$0xff] }
 0x210   : > { %2030 = vperm.xlu1 %5038, %v1750_v55   ;;  %v1794_v21 = vmul.f32 0.5, %v1793_v41  ;;  %5090 = vrsqrt.f32 %v6706_v14  ;;  %v1855_v26 = vsub.f32 1.5, %v1854_v50  ;;  %vm1858_vm13 = vweird.f32 %v6625_v32 }
 0x211   : > { %2025 = vperm.xlu0 %5037, %v1740_v46   ;;  %v6723_v12 = vpop.eup %5084  ;;  %5092 = vrsqrt.f32 %v6718_v15  ;;  %v6735_v63 = vmax.f32 %v1573_v61, 1e-24  ;;  %v1790_v28 = vsel %vm6700_vm7, %v6565_v58, %v1786_v8  ;;  %v1780_v2 = vsel %vm6712_vm9, %v6596_v62, %v1776_v10  ;;  %vm6772_vm0 = vmor %vm1857_vm10, %vm1858_vm13 }
 0x212   : > { %vm1797_vm14 = vweird.f32 %v6571_v3  ;;  %v1822_v44 = vmul.f32 %v6723_v12, %v6671_v47  ;;  %v1805_v13 = vsub.f32 1.5, %v1804_v22  ;;  %v6749_v31 = vmax.f32 %v1576_v24, 1e-24 }
 0x213   : > { %v6746_v30 = vpop.eup %5086  ;;  %5094 = vrsqrt.f32 %v6735_v63  ;;  %v6751_v4 = vmax.f32 %v1575_v39, 1e-24  ;;  %v1770_v58 = vsel %vm6729_vm12, %v6613_v48, %v1766_v20  ;;  %v1795_v62 = vsub.f32 1.5, %v1794_v21 }
 0x214   : > { %v1823_v33 = vmul.f32 %v6723_v12, %v1822_v44  ;;  %v1812_v16 = vmul.f32 %v6746_v30, %v6673_v6  ;;  %v1856_v34 = vmul.f32 %v6625_v32, %v1855_v26  ;;  %vm1808_vm15 = vweird.f32 %v6635_v37  ;;  %v4440_v26 = vld [vmem:[#allocation10 + $0x20] sm:$0xf] }
 0x215   : > { %v6759_v19 = vpop.eup %5088  ;;  %5096 = vrsqrt.f32 %v6749_v31  ;;  %v6764_v35 = vmax.f32 %v1570_v29, 1e-24  ;;  %vm1798_vm2 = vweird.f32 %v6660_v43  ;;  %v1806_v1 = vmul.f32 %v6635_v37, %v1805_v13  ;;  %vm6790_vm3 = vmor %vm1807_vm11, %vm1808_vm15 }
 0x216   : > { %v6766_v36 = vpop.eup %5090  ;;  %v1824_v0 = vmul.f32 0.5, %v1823_v33  ;;  %v1813_v38 = vmul.f32 %v6746_v30, %v1812_v16  ;;  %v1862_v40 = vmul.f32 %v6759_v19, %v6693_v7  ;;  %5098 = vrsqrt.f32 %v6751_v4  ;;  %vm6807_vm4 = vmor %vm1797_vm14, %vm1798_vm2 }
 0x217   : > { %2050 = vperm.xlu2 %5039, %v1790_v28   ;;  %v6780_v42 = vpop.eup %5092  ;;  %v1832_v53 = vmul.f32 %v6766_v36, %v6706_v14  ;;  %v1796_v45 = vmul.f32 %v6660_v43, %v1795_v62  ;;  %v1860_v18 = vsel %vm6772_vm0, %v6625_v32, %v1856_v34  ;;  %vm1827_vm5 = vweird.f32 %v6671_v47  ;;  %v1577_v28 = vld [vmem:[#allocation3 + $0xf0] sm:$0xff] }
 0x218   : > { %2045 = vperm.xlu1 %5038, %v1780_v2   ;;  %v1814_v23 = vmul.f32 0.5, %v1813_v38  ;;  %v1863_v49 = vmul.f32 %v6759_v19, %v1862_v40  ;;  %v1882_v51 = vmul.f32 %v6780_v42, %v6718_v15  ;;  %5100 = vrsqrt.f32 %v6764_v35 }
 0x219   : > { %2040 = vperm.xlu0 %5037, %v1770_v58   ;;  %v6798_v52 = vpop.eup %5094  ;;  %v1825_v27 = vsub.f32 1.5, %v1824_v0  ;;  %v1833_v56 = vmul.f32 %v6766_v36, %v1832_v53  ;;  %v6814_v59 = vmax.f32 %v1578_v11, 1e-24  ;;  %v1810_v3 = vsel %vm6790_vm3, %v6635_v37, %v1806_v1 }
 0x21a   : > { %v1864_v55 = vmul.f32 0.5, %v1863_v49  ;;  %v1815_v32 = vsub.f32 1.5, %v1814_v23  ;;  %v1883_v60 = vmul.f32 %v6780_v42, %v1882_v51  ;;  %v1872_v41 = vmul.f32 %v6798_v52, %v6735_v63 }
 0x21b   : > { %v6816_v46 = vpop.eup %5096  ;;  %v1800_v5 = vsel %vm6807_vm4, %v6660_v43, %v1796_v45  ;;  %vm1828_vm6 = vweird.f32 %v6723_v12  ;;  %vm1817_vm7 = vweird.f32 %v6673_v6  ;;  %vm1818_vm8 = vweird.f32 %v6746_v30 }
 0x21c   : > { %v1865_v50 = vsub.f32 1.5, %v1864_v55  ;;  %v6829_v8 = vpop.eup %5098  ;;  %vm1867_vm9 = vweird.f32 %v6693_v7  ;;  %vm1868_vm10 = vweird.f32 %v6759_v19  ;;  %v1873_v37 = vmul.f32 %v6798_v52, %v1872_v41  ;;  %vm6845_vm11 = vmor %vm1827_vm5, %vm1828_vm6  ;;  %v4687_v41 = vld [vmem:[#allocation10 + $0x74] sm:$0xf0] }
 0x21d   : > { %v1826_v54 = vmul.f32 %v6723_v12, %v1825_v27  ;;  %v1834_v43 = vmul.f32 0.5, %v1833_v56  ;;  %v1902_v10 = vmul.f32 %v6816_v46, %v6749_v31  ;;  %5102 = vrsqrt.f32 %v6814_v59  ;;  %vm6856_vm12 = vmor %vm1817_vm7, %vm1818_vm8 }
 0x21e   : > { %v6839_v61 = vpop.eup %5100  ;;  %v1816_v22 = vmul.f32 %v6746_v30, %v1815_v32  ;;  %v1884_v20 = vmul.f32 0.5, %v1883_v60  ;;  %v1892_v21 = vmul.f32 %v6829_v8, %v6751_v4  ;;  %v1866_v47 = vmul.f32 %v6759_v19, %v1865_v50  ;;  %vm6867_vm13 = vmor %vm1867_vm9, %vm1868_vm10  ;;  %v4480_v60 = vld [vmem:[#allocation10 + $0x70] sm:$0xf] }
 0x21f   : > { %2085 = vperm.xlu2 %5039, %v1860_v18   ;;  %v1874_v39 = vmul.f32 0.5, %v1873_v37  ;;  %v1842_v25 = vmul.f32 %v6839_v61, %v6764_v35  ;;  %v1830_v6 = vsel %vm6845_vm11, %v6723_v12, %v1826_v54  ;;  %v1835_v2 = vsub.f32 1.5, %v1834_v43  ;;  %v4685_v37 = vld [vmem:[#allocation10 + $0x64] sm:$0xf0] }
 0x220   : > { %2060 = vperm.xlu1 %5038, %v1810_v3   ;;  %vm1837_vm14 = vweird.f32 %v6706_v14  ;;  %v1903_v44 = vmul.f32 %v6816_v46, %v1902_v10  ;;  %v1820_v29 = vsel %vm6856_vm12, %v6746_v30, %v1816_v22  ;;  %vm1838_vm15 = vweird.f32 %v6766_v36 }
 0x221   : > { %2055 = vperm.xlu0 %5037, %v1800_v5   ;;  %v1885_v7 = vsub.f32 1.5, %v1884_v20  ;;  %v1893_v13 = vmul.f32 %v6829_v8, %v1892_v21  ;;  %v1870_v12 = vsel %vm6867_vm13, %v6759_v19, %v1866_v47  ;;  %v1875_v62 = vsub.f32 1.5, %v1874_v39  ;;  %vm6899_vm5 = vmor %vm1837_vm14, %vm1838_vm15  ;;  %v4456_v20 = vld [vmem:[#allocation10 + $0x40] sm:$0xf]  ;;  %v4681_v21 = vld [vmem:[#allocation10 + $0x44] sm:$0xf0] }
 0x222   : > { %v1843_v33 = vmul.f32 %v6839_v61, %v1842_v25  ;;  %v6887_v16 = vmax.f32 %v1577_v28, 1e-24  ;;  %vm1887_vm0 = vweird.f32 %v6718_v15  ;;  %vm1888_vm2 = vweird.f32 %v6780_v42  ;;  %v4448_v47 = vld [vmem:[#allocation10 + $0x30] sm:$0xf]  ;;  %v4679_v39 = vld [vmem:[#allocation10 + $0x34] sm:$0xf0] }
 0x223   : > { %v6881_v58 = vpop.eup %5102  ;;  %vm1877_vm3 = vweird.f32 %v6735_v63  ;;  %v1836_v30 = vmul.f32 %v6766_v36, %v1835_v2  ;;  %vm1878_vm4 = vweird.f32 %v6798_v52  ;;  %v1904_v34 = vmul.f32 0.5, %v1903_v44  ;;  %vm6906_vm6 = vmor %vm1887_vm0, %vm1888_vm2  ;;  %v4677_v28 = vld [vmem:[#allocation10 + $0x24] sm:$0xf0]  ;;  %v4432_v2 = vld [vmem:[#allocation10 + $0x10] sm:$0xf] }
 0x224   : > { %5104 = vrsqrt.f32 %v6887_v16  ;;  %v1886_v15 = vmul.f32 %v6780_v42, %v1885_v7  ;;  %v1894_v63 = vmul.f32 0.5, %v1893_v13  ;;  %v1922_v48 = vmul.f32 %v6881_v58, %v6814_v59  ;;  %vm6911_vm7 = vmor %vm1877_vm3, %vm1878_vm4  ;;  %v4675_v44 = vld [vmem:[#allocation10 + $0x14] sm:$0xf0]  ;;  %v4424_v13 = vld [vmem:[#allocation10] sm:$0xf] }
 0x225   : > { %v1876_v38 = vmul.f32 %v6798_v52, %v1875_v62  ;;  %v1844_v40 = vmul.f32 0.5, %v1843_v33  ;;  %v1840_v14 = vsel %vm6899_vm5, %v6766_v36, %v1836_v30  ;;  %v1905_v53 = vsub.f32 1.5, %v1904_v34  ;;  %v1931_v30 = vld [vmem:[#allocation2 + $0xb0] sm:$0xff]  ;;  %v6955_v19 = vld [vmem:[#allocation9] ss:$0 sm:$0xff] }
 0x226   : > { %v1890_v11 = vsel %vm6906_vm6, %v6780_v42, %v1886_v15  ;;  %v1895_v17 = vsub.f32 1.5, %v1894_v63  ;;  %v1923_v45 = vmul.f32 %v6881_v58, %v1922_v48  ;;  %vm1907_vm8 = vweird.f32 %v6749_v31  ;;  %v1932_v63 = vld [vmem:[#allocation2] sm:$0xff] }
 0x227   : > { %2070 = vperm.xlu2 %5039, %v1830_v6   ;;  %v1880_v49 = vsel %vm6911_vm7, %v6798_v52, %v1876_v38  ;;  %vm1908_vm9 = vweird.f32 %v6816_v46  ;;  %v1845_v51 = vsub.f32 1.5, %v1844_v40  ;;  %vm1897_vm10 = vweird.f32 %v6751_v4 }
 0x228   : > { %2065 = vperm.xlu1 %5038, %v1820_v29   ;;  %vm1898_vm11 = vweird.f32 %v6829_v8  ;;  %v1906_v42 = vmul.f32 %v6816_v46, %v1905_v53  ;;  %vm1847_vm12 = vweird.f32 %v6764_v35  ;;  %vm1848_vm13 = vweird.f32 %v6839_v61  ;;  %vm1909_vm14 = vmor %vm1907_vm8, %vm1908_vm9  ;;  %v1939_v53 = vld [vmem:[#allocation2 + $0x80] sm:$0xff] }
 0x229   : > { %2090 = vperm.xlu0 %5037, %v1870_v12   ;;  %v1896_v31 = vmul.f32 %v6829_v8, %v1895_v17  ;;  %v1924_v52 = vmul.f32 0.5, %v1923_v45  ;;  %vm1899_vm15 = vmor %vm1897_vm10, %vm1898_vm11  ;;  %v1846_v4 = vmul.f32 %v6839_v61, %v1845_v51  ;;  %vm1927_vm2 = vweird.f32 %v6814_v59  ;;  %v4472_v59 = vld [vmem:[#allocation10 + $0x60] sm:$0xf]  ;;  %v1934_v45 = vld [vmem:[#allocation2 + $0x18] sm:$0xff] }
 0x22a   : > { %v5105_v23 = vpop.eup %5104  ;;  %vm6935_vm0 = vmor %vm1847_vm12, %vm1848_vm13  ;;  %v1910_v55 = vsel %vm1909_vm14, %v6816_v46, %v1906_v42  ;;  %vm1928_vm3 = vweird.f32 %v6881_v58  ;;  %v4481_v5 = vor.u32 %v4687_v41, %v4480_v60  ;;  %vm1917_vm4 = vweird.f32 %v6887_v16  ;;  %v1935_v60 = vld [vmem:[#allocation2 + $0x50] sm:$0xff]  ;;  %v1936_v41 = vld [vmem:[#allocation2 + $0x68] sm:$0xff] }
 0x22b   : > { %v1912_v36 = vmul.f32 %v5105_v23, %v6887_v16  ;;  %v1900_v35 = vsel %vm1899_vm15, %v6829_v8, %v1896_v31  ;;  %v1925_v56 = vsub.f32 1.5, %v1924_v52  ;;  %v1850_v3 = vsel %vm6935_vm0, %v6839_v61, %v1846_v4  ;;  %vm6948_vm6 = vmor %vm1927_vm2, %vm1928_vm3  ;;  %v4464_v61 = vld [vmem:[#allocation10 + $0x50] sm:$0xf] }
 0x22c   : > { %vm1918_vm5 = vweird.f32 %v5105_v23  ;;  %2341 = vmatpush.bf16.msra.mxu0 %v4481_v5  ;;  %4825 = vmatpush.bf16.msra.mxu1 %v4481_v5  ;;  %v4473_v54 = vor.u32 %v4685_v37, %v4472_v59  ;;  %v4465_v22 = vor.u32 %v4683_v9, %v4464_v61  ;;  %v4457_v24 = vor.u32 %v4681_v21, %v4456_v20 }
 0x22d   : > { %v1913_v18 = vmul.f32 %v5105_v23, %v1912_v36  ;;  %v1926_v46 = vmul.f32 %v6881_v58, %v1925_v56  ;;  %4826 = vmatpush.bf16.msra.mxu2 %v4481_v5  ;;  %vm1919_vm7 = vmor %vm1917_vm4, %vm1918_vm5  ;;  %4827 = vmatpush.bf16.msra.mxu3 %v4481_v5  ;;  %v4449_v25 = vor.u32 %v4679_v39, %v4448_v47  ;;  %v1942_v5 = vld [vmem:[#allocation2 + $0xb8] sm:$0xff] }
 0x22e   : > { %v4441_v6 = vor.u32 %v4677_v28, %v4440_v26  ;;  %v4433_v29 = vor.u32 %v4675_v44, %v4432_v2  ;;  %v4686_v2 = vld [vmem:[#allocation10 + $0x74] sm:$0xf]  ;;  %v4482_v44 = vld [vmem:[#allocation10 + $0x78] sm:$0xf0] }
 0x22f   : > { %2075 = vperm.xlu2 %5039, %v1840_v14   ;;  %v1914_v27 = vmul.f32 0.5, %v1913_v18  ;;  %v1930_v43 = vsel %vm6948_vm6, %v6881_v58, %v1926_v46  ;;  %v4673_v58 = vld [vmem:[#allocation10 + $0x4] sm:$0xf0] }
 0x230   : > { %2100 = vperm.xlu1 %5038, %v1890_v11   ;;  %2342 = vmatpush.bf16.msra.mxu0 %v4473_v54  ;;  %v4425_v12 = vor.u32 %v4673_v58, %v4424_v13  ;;  %v1933_v11 = vld [vmem:[#allocation2 + $0xd8] sm:$0xff] }
 0x231   : > { %2095 = vperm.xlu0 %5037, %v1880_v49   ;;  %v1915_v32 = vsub.f32 1.5, %v1914_v27  ;;  %4828 = vmatpush.bf16.msra.mxu1 %v4473_v54 }
 0x232   : > { %4829 = vmatpush.bf16.msra.mxu2 %v4473_v54  ;;  %4830 = vmatpush.bf16.msra.mxu3 %v4473_v54 }
 0x233   : > { %v1916_v8 = vmul.f32 %v5105_v23, %v1915_v32 }
 0x234   : > { %2343 = vmatpush.bf16.msra.mxu0 %v4465_v22 }
 0x235   : > { %v1920_v10 = vsel %vm1919_vm7, %v5105_v23, %v1916_v8  ;;  %4831 = vmatpush.bf16.msra.mxu1 %v4465_v22  ;;  %v1948_v8 = vld [vmem:[#allocation2 + $0x58] sm:$0xff] }
 0x236   : > { %4832 = vmatpush.bf16.msra.mxu2 %v4465_v22  ;;  %4833 = vmatpush.bf16.msra.mxu3 %v4465_v22 }
 0x237   : > { %2110 = vperm.xlu2 %5039, %v1910_v55  }
 0x238   : > { %2105 = vperm.xlu1 %5038, %v1900_v35   ;;  %2344 = vmatpush.bf16.msra.mxu0 %v4457_v24 }
 0x239   : > { %2080 = vperm.xlu0 %5037, %v1850_v3   ;;  %4834 = vmatpush.bf16.msra.mxu1 %v4457_v24 }
 0x23a   : > { %4835 = vmatpush.bf16.msra.mxu2 %v4457_v24  ;;  %4836 = vmatpush.bf16.msra.mxu3 %v4457_v24 }
 0x23c   : > { %2345 = vmatpush.bf16.msra.mxu0 %v4449_v25 }
 0x23d   : > { %4837 = vmatpush.bf16.msra.mxu1 %v4449_v25 }
 0x23e   : > { %4838 = vmatpush.bf16.msra.mxu2 %v4449_v25  ;;  %4839 = vmatpush.bf16.msra.mxu3 %v4449_v25 }
 0x240   : > { %2120 = vperm.xlu1 %5038, %v1930_v43   ;;  %2346 = vmatpush.bf16.msra.mxu0 %v4441_v6  ;;  %v1941_v43 = vld [vmem:[#allocation2 + $0xe8] sm:$0xff] }
 0x241   : > { %2115 = vperm.xlu0 %5037, %v1920_v10   ;;  %4840 = vmatpush.bf16.msra.mxu1 %v4441_v6 }
 0x242   : > { %4841 = vmatpush.bf16.msra.mxu2 %v4441_v6  ;;  %4842 = vmatpush.bf16.msra.mxu3 %v4441_v6  ;;  %v1947_v6 = vld [vmem:[#allocation2 + $0x38] sm:$0xff] }
 0x244   : > { %2347 = vmatpush.bf16.msra.mxu0 %v4433_v29 }
 0x245   : > { %4843 = vmatpush.bf16.msra.mxu1 %v4433_v29 }
 0x246   : > { %4844 = vmatpush.bf16.msra.mxu2 %v4433_v29  ;;  %4845 = vmatpush.bf16.msra.mxu3 %v4433_v29 }
 0x248   : > { %2348 = vmatpush.bf16.msra.mxu0 %v4425_v12 }
 0x249   : > { %v1986_v7 = vpop.permute.xlu2 %1985  ;;  %4846 = vmatpush.bf16.msra.mxu1 %v4425_v12 }
 0x24a   : > { %4847 = vmatpush.bf16.msra.mxu2 %v4425_v12  ;;  %4848 = vmatpush.bf16.msra.mxu3 %v4425_v12  ;;  %v2127_v50 = vmul.f32 %v1986_v7, %v1935_v60  ;;  %v4485_v7 = vor.u32 %v4686_v2, %v4482_v44 }
 0x24c   : > { %v2163_v24 = vadd.f32 %v6955_v19, %v2127_v50 }
 0x24d   : > { %2430 = vmatpush.bf16.msrb.mxu1 %v4485_v7  ;;  %v4434_v7 = vld [vmem:[#allocation10 + $0x18] sm:$0xf0] }
 0x251   : > { %v1991_v62 = vpop.permute.xlu2 %1990 }
 0x252   : > { %v2128_v54 = vmul.f32 %v1991_v62, %v1936_v41 }
 0x254   : > { %v2164_v39 = vadd.f32 %v6955_v19, %v2128_v54 }
 0x259   : > { %v2006_v34 = vpop.permute.xlu2 %2005 }
 0x25a   : > { %v2131_v49 = vmul.f32 %v2006_v34, %v1939_v53  ;;  %v1950_v53 = vld [vmem:[#allocation2 + $0xc8] sm:$0xff] }
 0x25c   : > { %v2167_v18 = vadd.f32 %v6955_v19, %v2131_v49 }
 0x261   : > { %v2021_v14 = vpop.permute.xlu2 %2020 }
 0x262   : > { %v1976_v33 = vpop.permute.xlu1 %1975  ;;  %v2134_v9 = vmul.f32 %v2021_v14, %v1942_v5 }
 0x263   : > { %v1966_v16 = vpop.permute.xlu0 %1965  ;;  %v2125_v36 = vmul.f32 %v1976_v33, %v1933_v11  ;;  %v4684_v33 = vld [vmem:[#allocation10 + $0x64] sm:$0xf] }
 0x264   : > { %v2123_v15 = vmul.f32 %v1966_v16, %v1931_v30  ;;  %v2170_v28 = vadd.f32 %v6955_v19, %v2134_v9  ;;  %v4474_v16 = vld [vmem:[#allocation10 + $0x68] sm:$0xf0]  ;;  %v4450_v9 = vld [vmem:[#allocation10 + $0x38] sm:$0xf0] }
 0x265   : > { %v2161_v4 = vadd.f32 %v6955_v19, %v2125_v36  ;;  %v4477_v34 = vor.u32 %v4684_v33, %v4474_v16  ;;  %v1949_v36 = vld [vmem:[#allocation2 + $0x40] sm:$0xff]  ;;  %v1952_v16 = vld [vmem:[#allocation2 + $0x90] sm:$0xff] }
 0x266   : > { %v2159_v0 = vadd.f32 %v6955_v19, %v2123_v15  ;;  %v1938_v15 = vld [vmem:[#allocation2 + $0x48] sm:$0xff] }
 0x267   : > { %2431 = vmatpush.bf16.msrb.mxu1 %v4477_v34  ;;  %v4672_v34 = vld [vmem:[#allocation10 + $0x4] sm:$0xf] }
 0x268   : > { %5106 = vtanh.f32 %v2159_v0  ;;  %v1944_v0 = vld [vmem:[#allocation2 + $0xf0] sm:$0xff] }
 0x269   : > { %v6968_v27 = vpop.permute.xlu2 %2035 }
 0x26a   : > { %v1981_v48 = vpop.permute.xlu1 %1980 }
 0x26b   : > { %v1971_v38 = vpop.permute.xlu0 %1970  ;;  %v2126_v31 = vmul.f32 %v1981_v48, %v1934_v45 }
 0x26c   : > { %v2124_v40 = vmul.f32 %v1971_v38, %v1932_v63  ;;  %v1937_v63 = vld [vmem:[#allocation2 + $0x30] sm:$0xff] }
 0x26d   : > { %v2162_v55 = vadd.f32 %v6955_v19, %v2126_v31  ;;  %v4682_v38 = vld [vmem:[#allocation10 + $0x54] sm:$0xf] }
 0x26e   : > { %v2160_v1 = vadd.f32 %v6955_v19, %v2124_v40  ;;  %v5107_v51 = vpop.eup %5106  ;;  %v4466_v40 = vld [vmem:[#allocation10 + $0x58] sm:$0xf0] }
 0x26f   : > { %v4469_v11 = vor.u32 %v4682_v38, %v4466_v40  ;;  %v1951_v38 = vld [vmem:[#allocation2 + $0xe0] sm:$0xff] }
 0x270   : > { %5108 = vtanh.f32 %v2160_v1 }
 0x271   : > { %5110 = vtanh.f32 %v2167_v18  ;;  %v2051_v22 = vpop.permute.xlu2 %2050  ;;  %v1943_v18 = vld [vmem:[#allocation2 + $0x60] sm:$0xff]  ;;  %2432 = vmatpush.bf16.msrb.mxu1 %v4469_v11 }
 0x272   : > { %v6959_v17 = vpop.permute.xlu1 %2000  ;;  %5112 = vtanh.f32 %v2161_v4  ;;  %v2140_v20 = vmul.f32 %v2051_v22, %v1948_v8 }
 0x273   : > { %v6961_v23 = vpop.permute.xlu0 %1995  ;;  %5114 = vtanh.f32 %v2162_v55  ;;  %v2130_v14 = vmul.f32 %v6959_v17, %v1938_v15  ;;  %v1955_v55 = vld [vmem:[#allocation2 + $0xa8] sm:$0xff] }
 0x274   : > { %v2176_v29 = vadd.f32 %v6955_v19, %v2140_v20  ;;  %v2129_v49 = vmul.f32 %v6961_v23, %v1937_v63  ;;  %v4426_v15 = vld [vmem:[#allocation10 + $0x8] sm:$0xf0] }
 0x275   : > { %v2166_v17 = vadd.f32 %v6955_v19, %v2130_v14  ;;  %v1958_v14 = vld [vmem:[#allocation2 + $0x28] sm:$0xff]  ;;  %v4429_v11 = vor.u32 %v4672_v34, %v4426_v15  ;;  %v1962_v15 = vld [vmem:[#allocation2 + $0x98] sm:$0xff] }
 0x276   : > { %v5109_v42 = vpop.eup %5108  ;;  %v2165_v5 = vadd.f32 %v6955_v19, %v2129_v49 }
 0x277   : > { %v6963_v52 = vpack.c.bf16 %v5109_v42, %v5107_v51  ;;  %v5111_v46 = vpop.eup %5110 }
 0x278   : > { %v5113_v37 = vpop.eup %5112 }
 0x279   : > { %2349 = vmatmul.bf16.vlgmr.msra.gmra.mxu0 %v6963_v52  ;;  %v5115_v61 = vpop.eup %5114  ;;  %v2086_v23 = vpop.permute.xlu2 %2085 }
 0x27a   : > { %v2016_v35 = vpop.permute.xlu1 %2015  ;;  %v6976_v25 = vpack.c.bf16 %v5115_v61, %v5113_v37  ;;  %v2147_v8 = vmul.f32 %v2086_v23, %v1955_v55  ;;  %v4678_v61 = vld [vmem:[#allocation10 + $0x34] sm:$0xf] }
 0x27b   : > { %v2011_v56 = vpop.permute.xlu0 %2010  ;;  %v2133_v47 = vmul.f32 %v2016_v35, %v1941_v43  ;;  %v4453_v20 = vor.u32 %v4678_v61, %v4450_v9 }
 0x27c   : > { %v2132_v3 = vmul.f32 %v2011_v56, %v1940_v57  ;;  %v4680_v56 = vld [vmem:[#allocation10 + $0x44] sm:$0xf] }
 0x27d   : > { %v2169_v13 = vadd.f32 %v6955_v19, %v2133_v47  ;;  %v4676_v47 = vld [vmem:[#allocation10 + $0x24] sm:$0xf] }
 0x27e   : > { %v2168_v32 = vadd.f32 %v6955_v19, %v2132_v3  ;;  %v4458_v3 = vld [vmem:[#allocation10 + $0x48] sm:$0xf0] }
 0x27f   : > { %v4461_v41 = vor.u32 %v4680_v56, %v4458_v3 }
 0x280   : > { %5116 = vtanh.f32 %v2168_v32 }
 0x281   : > { %5118 = vtanh.f32 %v2163_v24  ;;  %2433 = vmatpush.bf16.msrb.mxu1 %v4461_v41 }
 0x282   : > { %v2031_v59 = vpop.permute.xlu1 %2030  ;;  %5120 = vtanh.f32 %v2164_v39  ;;  %v4442_v39 = vld [vmem:[#allocation10 + $0x28] sm:$0xf0] }
 0x283   : > { %v6972_v10 = vpop.permute.xlu0 %2025  ;;  %5122 = vtanh.f32 %v2170_v28  ;;  %v2136_v31 = vmul.f32 %v2031_v59, %v1944_v0  ;;  %v2183_v28 = vadd.f32 %v6955_v19, %v2147_v8  ;;  %v4445_v2 = vor.u32 %v4676_v47, %v4442_v39 }
 0x284   : > { %5124 = vtanh.f32 %v2176_v29  ;;  %v4674_v29 = vld [vmem:[#allocation10 + $0x14] sm:$0xf] }
 0x285   : > { %5126 = vtanh.f32 %v2169_v13  ;;  %v2172_v59 = vadd.f32 %v6955_v19, %v2136_v31  ;;  %2434 = vmatpush.bf16.msrb.mxu1 %v4453_v20  ;;  %v1945_v31 = vld [vmem:[#allocation2 + $0x8] sm:$0xff]  ;;  %v1959_v20 = vld [vmem:[#allocation2 + $0xa0] sm:$0xff] }
 0x286   : > { %v5117_v21 = vpop.eup %5116 }
 0x287   : > { %v6978_v26 = vpack.c.bf16 %v5117_v21, %v5111_v46  ;;  %v5119_v48 = vpop.eup %5118  ;;  %v2135_v46 = vmul.f32 %v6972_v10, %v1943_v18  ;;  %v1956_v10 = vld [vmem:[#allocation2 + $0xd0] sm:$0xff] }
 0x288   : > { %v5121_v1 = vpop.eup %5120 }
 0x289   : > { %2354 = vmatmul.bf16.gmra.mxu0 %v6976_v25  ;;  %2369 = vmatmul.bf16.vlgmr.msra.gmra.mxu1 %v6978_v26  ;;  %v5123_v45 = vpop.eup %5122  ;;  %v6996_v37 = vpack.c.bf16 %v5121_v1, %v5119_v48  ;;  %v2171_v21 = vadd.f32 %v6955_v19, %v2135_v46  ;;  %v1946_v48 = vld [vmem:[#allocation2 + $0x78] sm:$0xff] }
 0x28a   : > { %v2046_v58 = vpop.permute.xlu1 %2045  ;;  %v5125_v42 = vpop.eup %5124  ;;  %2435 = vmatpush.bf16.msrb.mxu1 %v4445_v2 }
 0x28b   : > { %v2139_v12 = vmul.f32 %v2046_v58, %v1947_v6  ;;  %v6985_v62 = vpop.permute.xlu0 %2040  ;;  %v5127_v57 = vpop.eup %5126 }
 0x28c   : > { %v6998_v54 = vpack.c.bf16 %v5123_v45, %v5127_v57  ;;  %v2138_v49 = vmul.f32 %v6985_v62, %v1946_v48  ;;  %v2137_v62 = vmul.f32 %v6968_v27, %v1945_v31 }
 0x28d   : > { %v2175_v30 = vadd.f32 %v6955_v19, %v2139_v12  ;;  %v4437_v12 = vor.u32 %v4674_v29, %v4434_v7 }
 0x28e   : > { %v2173_v46 = vadd.f32 %v6955_v19, %v2137_v62 }
 0x28f   : > { %5128 = vtanh.f32 %v2175_v30  ;;  %v2071_v30 = vpop.permute.xlu2 %2070  ;;  %2436 = vmatpush.bf16.msrb.mxu1 %v4437_v12 }
 0x290   : > { %5130 = vtanh.f32 %v2166_v17  ;;  %v2144_v1 = vmul.f32 %v2071_v30, %v1952_v16 }
 0x291   : > { %5132 = vtanh.f32 %v2165_v5 }
 0x292   : > { %v2061_v51 = vpop.permute.xlu1 %2060  ;;  %5134 = vtanh.f32 %v2172_v59  ;;  %v2180_v56 = vadd.f32 %v6955_v19, %v2144_v1 }
 0x293   : > { %v2056_v4 = vpop.permute.xlu0 %2055  ;;  %v2142_v35 = vmul.f32 %v2061_v51, %v1950_v53  ;;  %v1957_v51 = vld [vmem:[#allocation2 + $0x10] sm:$0xff]  ;;  %2437 = vmatpush.bf16.msrb.mxu1 %v4429_v11 }
 0x294   : > { %v2141_v60 = vmul.f32 %v2056_v4, %v1949_v36 }
 0x295   : > { %v5129_v32 = vpop.eup %5128  ;;  %v2178_v43 = vadd.f32 %v6955_v19, %v2142_v35 }
 0x296   : > { %v6993_v50 = vpack.c.bf16 %v5125_v42, %v5129_v32  ;;  %v2177_v22 = vadd.f32 %v6955_v19, %v2141_v60  ;;  %v5131_v58 = vpop.eup %5130  ;;  %v2174_v60 = vadd.f32 %v6955_v19, %v2138_v49 }
 0x297   : > { %5136 = vtanh.f32 %v2178_v43  ;;  %v5133_v33 = vpop.eup %5132  ;;  %v2076_v27 = vpop.permute.xlu2 %2075  ;;  %v1954_v43 = vld [vmem:[#allocation2 + $0xc0] sm:$0xff] }
 0x298   : > { %2389 = vmatmul.bf16.vlgmr.msra.gmra.mxu2 %v6993_v50  ;;  %5138 = vtanh.f32 %v2177_v22  ;;  %v5135_v63 = vpop.eup %5134  ;;  %v7009_v55 = vpack.c.bf16 %v5131_v58, %v5133_v33  ;;  %v1953_v22 = vld [vmem:[#allocation2 + $0x70] sm:$0xff] }
 0x299   : > { %2359 = vmatmul.bf16.gmra.mxu0 %v6996_v37  ;;  %2374 = vmatmul.bf16.gmra.mxu1 %v6998_v54  ;;  %5140 = vtanh.f32 %v2171_v21 }
 0x29a   : > { %v2066_v24 = vpop.permute.xlu1 %2065  ;;  %5142 = vtanh.f32 %v2183_v28  ;;  %v2145_v28 = vmul.f32 %v2076_v27, %v1953_v22 }
 0x29b   : > { %v2091_v6 = vpop.permute.xlu0 %2090  ;;  %v2143_v18 = vmul.f32 %v2066_v24, %v1951_v38 }
 0x29c   : > { %v2148_v44 = vmul.f32 %v2091_v6, %v1956_v10  ;;  %v1960_v6 = vld [vmem:[#allocation2 + $0xf8] sm:$0xff]  ;;  %v2181_v33 = vadd.f32 %v6955_v19, %v2145_v28 }
 0x29d   : > { %v5137_v0 = vpop.eup %5136  ;;  %v2179_v41 = vadd.f32 %v6955_v19, %v2143_v18 }
 0x29e   : > { %v2184_v13 = vadd.f32 %v6955_v19, %v2148_v44  ;;  %v5139_v40 = vpop.eup %5138 }
 0x29f   : > { %v5141_v45 = vpop.eup %5140  ;;  %v7011_v35 = vpack.c.bf16 %v5137_v0, %v5139_v40  ;;  %v2111_v2 = vpop.permute.xlu2 %2110  ;;  %v1961_v0 = vld [vmem:[#allocation2 + $0x20] sm:$0xff] }
 0x2a0   : > { %5144 = vtanh.f32 %v2184_v13  ;;  %v5143_v42 = vpop.eup %5142  ;;  %v7014_v32 = vpack.c.bf16 %v5135_v63, %v5141_v45  ;;  %v2152_v58 = vmul.f32 %v2111_v2, %v1960_v6 }
 0x2a1   : > { %5146 = vtanh.f32 %v2180_v56 }
 0x2a2   : > { %v2101_v53 = vpop.permute.xlu1 %2100  ;;  %5148 = vtanh.f32 %v2174_v60  ;;  %v2188_v30 = vadd.f32 %v6955_v19, %v2152_v58 }
 0x2a3   : > { %v2096_v36 = vpop.permute.xlu0 %2095  ;;  %v2150_v57 = vmul.f32 %v2101_v53, %v1958_v14  ;;  %5150 = vtanh.f32 %v2179_v41 }
 0x2a4   : > { %v2149_v3 = vmul.f32 %v2096_v36, %v1957_v51 }
 0x2a5   : > { %v2186_v5 = vadd.f32 %v6955_v19, %v2150_v57 }
 0x2a6   : > { %v5145_v4 = vpop.eup %5144  ;;  %v2185_v23 = vadd.f32 %v6955_v19, %v2149_v3 }
 0x2a7   : > { %v7016_v17 = vpack.c.bf16 %v5145_v4, %v5143_v42  ;;  %5152 = vtanh.f32 %v2186_v5  ;;  %v5147_v8 = vpop.eup %5146 }
 0x2a8   : > { %2394 = vmatmul.bf16.gmra.mxu2 %v7011_v35  ;;  %5154 = vtanh.f32 %v2185_v23  ;;  %v5149_v59 = vpop.eup %5148 }
 0x2a9   : > { %2364 = vmatmul.bf16.gmra.mxu0 %v7009_v55  ;;  %2379 = vmatmul.bf16.gmra.mxu1 %v7014_v32  ;;  %5156 = vtanh.f32 %v2173_v46  ;;  %v5151_v9 = vpop.eup %5150 }
 0x2aa   : > { %2409 = vmatmul.bf16.vlgmr.msra.gmra.mxu3 %v7016_v17  ;;  %v2106_v21 = vpop.permute.xlu1 %2105  ;;  %v7028_v44 = vpack.c.bf16 %v5147_v8, %v5151_v9 }
 0x2ab   : > { %v2081_v61 = vpop.permute.xlu0 %2080  ;;  %v2151_v29 = vmul.f32 %v2106_v21, %v1959_v20 }
 0x2ac   : > { %v2146_v47 = vmul.f32 %v2081_v61, %v1954_v43 }
 0x2ad   : > { %v5153_v10 = vpop.eup %5152  ;;  %v2187_v16 = vadd.f32 %v6955_v19, %v2151_v29 }
 0x2ae   : > { %v5155_v24 = vpop.eup %5154  ;;  %v2182_v12 = vadd.f32 %v6955_v19, %v2146_v47 }
 0x2af   : > { %v5157_v39 = vpop.eup %5156  ;;  %v7033_v13 = vpack.c.bf16 %v5153_v10, %v5155_v24 }
 0x2b0   : > { %v7030_v7 = vpack.c.bf16 %v5149_v59, %v5157_v39  ;;  %5158 = vtanh.f32 %v2182_v12 }
 0x2b1   : > { %5160 = vtanh.f32 %v2181_v33 }
 0x2b2   : > { %5162 = vtanh.f32 %v2187_v16  ;;  %v2121_v63 = vpop.permute.xlu1 %2120 }
 0x2b3   : > { %5164 = vtanh.f32 %v2188_v30  ;;  %v2116_v38 = vpop.permute.xlu0 %2115  ;;  %v2154_v1 = vmul.f32 %v2121_v63, %v1962_v15 }
 0x2b4   : > { %v2153_v11 = vmul.f32 %v2116_v38, %v1961_v0  ;;  %v4702_v38 = vld [vmem:[#allocation12 + $0x74] sm:$0xf] }
 0x2b5   : > { %v2190_v49 = vadd.f32 %v6955_v19, %v2154_v1 }
 0x2b6   : > { %v5159_v34 = vpop.eup %5158  ;;  %v2189_v51 = vadd.f32 %v6955_v19, %v2153_v11 }
 0x2b7   : > { %v5161_v48 = vpop.eup %5160  ;;  %5166 = vtanh.f32 %v2190_v49 }
 0x2b8   : > { %2399 = vmatmul.bf16.gmra.mxu2 %v7028_v44  ;;  %v5163_v40 = vpop.eup %5162  ;;  %v7041_v14 = vpack.c.bf16 %v5159_v34, %v5161_v48  ;;  %5168 = vtanh.f32 %v2189_v51 }
 0x2b9   : > { %2384 = vmatmul.bf16.gmra.mxu1 %v7030_v7  ;;  %v5165_v53 = vpop.eup %5164 }
 0x2ba   : > { %2414 = vmatmul.bf16.gmra.mxu3 %v7033_v13  ;;  %v7044_v45 = vpack.c.bf16 %v5165_v53, %v5163_v40  ;;  %v4578_v40 = vld [vmem:[#allocation12 + $0x78] sm:$0xf0] }
 0x2bb   : > { %v4581_v53 = vor.u32 %v4702_v38, %v4578_v40  ;;  %v4576_v40 = vld [vmem:[#allocation12 + $0x70] sm:$0xf] }
 0x2bd   : > { %v5167_v36 = vpop.eup %5166  ;;  %3526 = vmatpush.bf16.msrb.mxu3 %v4581_v53 }
 0x2be   : > { %v5169_v42 = vpop.eup %5168 }
 0x2bf   : > { %v7050_v31 = vpack.c.bf16 %v5167_v36, %v5169_v42 }
 0x2c8   : > { %2404 = vmatmul.bf16.gmra.mxu2 %v7041_v14 }
 0x2c9   : > { %2438 = vmatmul.bf16.vlgmr.msrb.gmra.mxu1 %v6963_v52  ;;  %v7058_v52 = vld [vmem:[%s8606_s10] sm:$0x3] }
 0x2ca   : > { %2419 = vmatmul.bf16.gmra.mxu3 %v7044_v45  ;;  %v7061_v18 = vperm.slane %v7058_v52, 0 }
 0x2d9   : > { %2443 = vmatmul.bf16.gmra.mxu1 %v6976_v25 }
 0x2da   : > { %2424 = vmatmul.bf16.gmra.mxu3 %v7050_v31 }
 0x2e9   : > { %2448 = vmatmul.bf16.gmra.mxu1 %v6996_v37 }
 0x2f6   : > { %v2350_v19 = vpop.f32.mrf.mxu0 }
 0x2f7   : > { %v7064_v4 = vadd.f32 %v2350_v19, %v7061_v18 }
 0x2f9   : > { %2453 = vmatmul.bf16.gmra.mxu1 %v7009_v55  ;;  %v2551_v25 = vmul.f32 %v7064_v4, %v7064_v4 }
 0x2fb   : > { %2583 = vadd.xlane.f32.xlu2 %v2551_v25 }
 0x2fe   : > { %v2352_v57 = vpop.f32.mrf.mxu0 }
 0x2ff   : > { %v7070_v37 = vadd.f32 %v2352_v57, %v7061_v18  ;;  %v4700_v57 = vld [vmem:[#allocation12 + $0x64] sm:$0xf] }
 0x301   : > { %v2552_v56 = vmul.f32 %v7070_v37, %v7070_v37 }
 0x303   : > { %2585 = vadd.xlane.f32.xlu0 %v2552_v56 }
 0x306   : > { %v2355_v3 = vpop.f32.mrf.mxu0  ;;  %v2370_v62 = vpop.f32.mrf.mxu1 }
 0x307   : > { %v7075_v60 = vadd.f32 %v2355_v3, %v7061_v18  ;;  %v7099_v21 = vadd.f32 %v2370_v62, %v7061_v18 }
 0x309   : > { %2458 = vmatmul.bf16.gmra.mxu1 %v6978_v26  ;;  %v2553_v55 = vmul.f32 %v7075_v60, %v7075_v60  ;;  %v2559_v28 = vmul.f32 %v7099_v21, %v7099_v21 }
 0x30b   : > { %2587 = vadd.xlane.f32.xlu1 %v2553_v55 }
 0x30e   : > { %v2357_v41 = vpop.f32.mrf.mxu0  ;;  %v2372_v5 = vpop.f32.mrf.mxu1 }
 0x30f   : > { %v7081_v23 = vadd.f32 %v2357_v41, %v7061_v18  ;;  %v7110_v2 = vadd.f32 %v2372_v5, %v7061_v18 }
 0x311   : > { %v2554_v46 = vmul.f32 %v7081_v23, %v7081_v23  ;;  %v2560_v30 = vmul.f32 %v7110_v2, %v7110_v2 }
 0x313   : > { %2589 = vadd.xlane.f32.xlu2 %v2554_v46 }
 0x316   : > { %v2360_v27 = vpop.f32.mrf.mxu0  ;;  %v2375_v8 = vpop.f32.mrf.mxu1 }
 0x317   : > { %v7086_v59 = vadd.f32 %v2360_v27, %v7061_v18  ;;  %v7127_v63 = vadd.f32 %v2375_v8, %v7061_v18 }
 0x319   : > { %2463 = vmatmul.bf16.gmra.mxu1 %v6998_v54  ;;  %v2555_v26 = vmul.f32 %v7086_v59, %v7086_v59  ;;  %v2561_v49 = vmul.f32 %v7127_v63, %v7127_v63 }
 0x31b   : > { %2591 = vadd.xlane.f32.xlu2 %v2555_v26  ;;  %v7091_v43 = vpop.f32.mrf.mxu2 }
 0x31c   : > { %v7163_v8 = vadd.f32 %v7091_v43, %v7061_v18 }
 0x31e   : > { %v2362_v61 = vpop.f32.mrf.mxu0  ;;  %v2377_v9 = vpop.f32.mrf.mxu1  ;;  %8612 = vst [vmem:[#allocation41_spill] sm:$0xff] %v7163_v8 }
 0x31f   : > { %v7094_v22 = vadd.f32 %v2362_v61, %v7061_v18  ;;  %v7115_v58 = vadd.f32 %v2377_v9, %v7061_v18  ;;  %v4698_v9 = vld [vmem:[#allocation12 + $0x54] sm:$0xf] }
 0x321   : > { %v2556_v10 = vmul.f32 %v7094_v22, %v7094_v22  ;;  %v2562_v34 = vmul.f32 %v7115_v58, %v7115_v58 }
 0x323   : > { %2593 = vadd.xlane.f32.xlu0 %v2556_v10  ;;  %v2392_v20 = vpop.f32.mrf.mxu2  ;;  %v4562_v10 = vld [vmem:[#allocation12 + $0x58] sm:$0xf0] }
 0x324   : > { %v7150_v56 = vadd.f32 %v2392_v20, %v7061_v18 }
 0x326   : > { %v2365_v54 = vpop.f32.mrf.mxu0  ;;  %v2380_v24 = vpop.f32.mrf.mxu1  ;;  %8610 = vst [vmem:[#allocation39_spill] sm:$0xff] %v7150_v56  ;;  %v2568_v46 = vmul.f32 %v7150_v56, %v7150_v56 }
 0x327   : > { %v7102_v47 = vadd.f32 %v2365_v54, %v7061_v18  ;;  %v7130_v48 = vadd.f32 %v2380_v24, %v7061_v18  ;;  %v4565_v24 = vor.u32 %v4698_v9, %v4562_v10  ;;  %v4560_v9 = vld [vmem:[#allocation12 + $0x50] sm:$0xf]  ;;  %v4699_v10 = vld [vmem:[#allocation12 + $0x54] sm:$0xf0] }
 0x329   : > { %2468 = vmatmul.bf16.gmra.mxu1 %v7014_v32  ;;  %v2557_v39 = vmul.f32 %v7102_v47, %v7102_v47  ;;  %8607 = vst [vmem:[#allocation36_spill] sm:$0xff] %v7130_v48  ;;  %v2563_v51 = vmul.f32 %v7130_v48, %v7130_v48 }
 0x32b   : > { %2595 = vadd.xlane.f32.xlu1 %v2557_v39  ;;  %2599 = vadd.xlane.f32.xlu0 %v2559_v28  ;;  %v2395_v6 = vpop.f32.mrf.mxu2  ;;  %v2567_v39 = vmul.f32 %v7163_v8, %v7163_v8 }
 0x32c   : > { %v7166_v26 = vadd.f32 %v2395_v6, %v7061_v18 }
 0x32d   : > { %v7112_v29 = vpop.f32.mrf.mxu3 }
 0x32e   : > { %v2367_v12 = vpop.f32.mrf.mxu0  ;;  %v2382_v33 = vpop.f32.mrf.mxu1  ;;  %8613 = vst [vmem:[#allocation42_spill] sm:$0xff] %v7166_v26  ;;  %v2569_v43 = vmul.f32 %v7166_v26, %v7166_v26 }
 0x32f   : > { %v7118_v32 = vadd.f32 %v2367_v12, %v7061_v18  ;;  %v7145_v19 = vadd.f32 %v2382_v33, %v7061_v18 }
 0x331   : > { %v2558_v16 = vmul.f32 %v7118_v32, %v7118_v32  ;;  %8609 = vst [vmem:[#allocation38_spill] sm:$0xff] %v7145_v19  ;;  %v2564_v41 = vmul.f32 %v7145_v19, %v7145_v19 }
 0x333   : > { %2597 = vadd.xlane.f32.xlu2 %v2558_v16  ;;  %2601 = vadd.xlane.f32.xlu1 %v2560_v30  ;;  %v2397_v15 = vpop.f32.mrf.mxu2  ;;  %v4696_v16 = vld [vmem:[#allocation12 + $0x44] sm:$0xf]  ;;  %v4554_v30 = vld [vmem:[#allocation12 + $0x48] sm:$0xf0] }
 0x334   : > { %2605 = vadd.xlane.f32.xlu0 %v2562_v34  ;;  %v7179_v12 = vadd.f32 %v2397_v15, %v7061_v18  ;;  %v4557_v38 = vor.u32 %v4696_v16, %v4554_v30  ;;  %v4697_v16 = vld [vmem:[#allocation12 + $0x44] sm:$0xf0] }
 0x335   : > { %v7132_v0 = vpop.f32.mrf.mxu3 }
 0x336   : > { %v2385_v1 = vpop.f32.mrf.mxu1  ;;  %8615 = vst [vmem:[#allocation44_spill] sm:$0xff] %v7179_v12  ;;  %v2570_v15 = vmul.f32 %v7179_v12, %v7179_v12 }
 0x337   : > { %v7135_v11 = vadd.f32 %v2385_v1, %v7061_v18  ;;  %v4703_v1 = vld [vmem:[#allocation12 + $0x74] sm:$0xf0] }
 0x338   : > { %v4577_v53 = vor.u32 %v4703_v1, %v4576_v40 }
 0x339   : > { %8608 = vst [vmem:[#allocation37_spill] sm:$0xff] %v7135_v11  ;;  %2473 = vmatmul.bf16.gmra.mxu1 %v7030_v7  ;;  %v2565_v36 = vmul.f32 %v7135_v11, %v7135_v11  ;;  %v4570_v7 = vld [vmem:[#allocation12 + $0x68] sm:$0xf0] }
 0x33a   : > { %v4573_v62 = vor.u32 %v4700_v57, %v4570_v7  ;;  %3437 = vmatpush.bf16.msrb.mxu2 %v4577_v53  ;;  %v4694_v53 = vld [vmem:[#allocation12 + $0x34] sm:$0xf] }
 0x33b   : > { %2603 = vadd.xlane.f32.xlu2 %v2561_v49  ;;  %2607 = vadd.xlane.f32.xlu1 %v2563_v51  ;;  %v2400_v42 = vpop.f32.mrf.mxu2  ;;  %v7187_v49 = vperm.slane %v7058_v52, 1  ;;  %v7198_v52 = vadd.f32 %v7112_v29, %v7061_v18 }
 0x33c   : > { %2611 = vadd.xlane.f32.xlu0 %v2565_v36  ;;  %3527 = vmatpush.bf16.msrb.mxu3 %v4573_v62  ;;  %v7169_v20 = vadd.f32 %v2400_v42, %v7061_v18  ;;  %v4568_v36 = vld [vmem:[#allocation12 + $0x60] sm:$0xf]  ;;  %v4701_v42 = vld [vmem:[#allocation12 + $0x64] sm:$0xf0] }
 0x33d   : > { %v7147_v25 = vpop.f32.mrf.mxu3  ;;  %v4569_v7 = vor.u32 %v4701_v42, %v4568_v36  ;;  %8618 = vst [vmem:[#allocation47_spill] sm:$0xff] %v7198_v52  ;;  %v4544_v42 = vld [vmem:[#allocation12 + $0x30] sm:$0xf] }
 0x33e   : > { %v2387_v3 = vpop.f32.mrf.mxu1  ;;  %8614 = vst [vmem:[#allocation43_spill] sm:$0xff] %v7169_v20  ;;  %v2571_v28 = vmul.f32 %v7169_v20, %v7169_v20 }
 0x33f   : > { %v7153_v55 = vadd.f32 %v2387_v3, %v7061_v18  ;;  %3438 = vmatpush.bf16.msrb.mxu2 %v4569_v7 }
 0x340   : > { %3528 = vmatpush.bf16.msrb.mxu3 %v4565_v24  ;;  %v4561_v24 = vor.u32 %v4699_v10, %v4560_v9 }
 0x341   : > { %8611 = vst [vmem:[#allocation40_spill] sm:$0xff] %v7153_v55  ;;  %v2566_v5 = vmul.f32 %v7153_v55, %v7153_v55 }
 0x343   : > { %2609 = vadd.xlane.f32.xlu2 %v2564_v41  ;;  %2613 = vadd.xlane.f32.xlu1 %v2566_v5  ;;  %v2402_v27 = vpop.f32.mrf.mxu2 }
 0x344   : > { %2617 = vadd.xlane.f32.xlu0 %v2568_v46  ;;  %v7182_v33 = vadd.f32 %v2402_v27, %v7061_v18  ;;  %3529 = vmatpush.bf16.msrb.mxu3 %v4557_v38 }
 0x345   : > { %v2417_v61 = vpop.f32.mrf.mxu3  ;;  %3439 = vmatpush.bf16.msrb.mxu2 %v4561_v24 }
 0x346   : > { %v2439_v54 = vpop.f32.mrf.mxu1  ;;  %8616 = vst [vmem:[#allocation45_spill] sm:$0xff] %v7182_v33  ;;  %v2572_v51 = vmul.f32 %v7182_v33, %v7182_v33  ;;  %v7227_v38 = vadd.f32 %v2417_v61, %v7061_v18 }
 0x347   : > { %v7201_v62 = vadd.f32 %v2439_v54, %v7187_v49  ;;  %v2575_v54 = vmul.f32 %v7198_v52, %v7198_v52  ;;  %v4711_v52 = vld [vmem:[#allocation13 + $0x38] sm:$0xff] }
 0x348   : > { %8622 = vst [vmem:[#allocation51_spill] sm:$0xff] %v7227_v38  ;;  %v2578_v9 = vmul.f32 %v7227_v38, %v7227_v38  ;;  %3827 = vmatpush.bf16.msrb.mxu0 %v4711_v52 }
 0x349   : > { %2478 = vmatmul.bf16.gmra.mxu1 %v6993_v50  ;;  %v2519_v29 = vsub.f32 0.0, %v7201_v62 }
 0x34b   : > { %2615 = vadd.xlane.f32.xlu2 %v2567_v39  ;;  %2619 = vadd.xlane.f32.xlu1 %v2569_v43  ;;  %v2405_v6 = vpop.f32.mrf.mxu2  ;;  %v3079_v40 = vmul.f32 1.442695, %v2519_v29 }
 0x34c   : > { %2623 = vadd.xlane.f32.xlu0 %v2571_v28  ;;  %v7204_v41 = vadd.f32 %v2405_v6, %v7061_v18  ;;  %v7219_v28 = vadd.f32 %v7147_v25, %v7061_v18  ;;  %v4552_v6 = vld [vmem:[#allocation12 + $0x40] sm:$0xf] }
 0x34d   : > { %v7184_v50 = vpop.f32.mrf.mxu3  ;;  %v4553_v30 = vor.u32 %v4697_v16, %v4552_v6  ;;  %5170 = vpow2.f32 %v3079_v40  ;;  %v4693_v16 = vld [vmem:[#allocation12 + $0x24] sm:$0xf0] }
 0x34e   : > { %v2441_v34 = vpop.f32.mrf.mxu1  ;;  %8619 = vst [vmem:[#allocation48_spill] sm:$0xff] %v7204_v41  ;;  %v2573_v43 = vmul.f32 %v7204_v41, %v7204_v41  ;;  %v2577_v25 = vmul.f32 %v7219_v28, %v7219_v28 }
 0x34f   : > { %v7209_v39 = vadd.f32 %v2441_v34, %v7187_v49  ;;  %8620 = vst [vmem:[#allocation49_spill] sm:$0xff] %v7219_v28  ;;  %3440 = vmatpush.bf16.msrb.mxu2 %v4553_v30 }
 0x351   : > { %v2520_v34 = vsub.f32 0.0, %v7209_v39 }
 0x353   : > { %2621 = vadd.xlane.f32.xlu2 %v2570_v15  ;;  %2625 = vadd.xlane.f32.xlu1 %v2572_v51  ;;  %v2407_v57 = vpop.f32.mrf.mxu2  ;;  %v4546_v15 = vld [vmem:[#allocation12 + $0x38] sm:$0xf0] }
 0x354   : > { %v7194_v3 = vadd.f32 %v2407_v57, %v7061_v18  ;;  %v4549_v36 = vor.u32 %v4694_v53, %v4546_v15  ;;  %v4695_v57 = vld [vmem:[#allocation12 + $0x34] sm:$0xf0] }
 0x355   : > { %v2422_v5 = vpop.f32.mrf.mxu3  ;;  %v4545_v62 = vor.u32 %v4695_v57, %v4544_v42  ;;  %v4530_v42 = vld [vmem:[#allocation12 + $0x18] sm:$0xf0]  ;;  %v5171_v57 = vpop.eup %5170 }
 0x356   : > { %8617 = vst [vmem:[#allocation46_spill] sm:$0xff] %v7194_v3  ;;  %v2444_v46 = vpop.f32.mrf.mxu1  ;;  %v2574_v27 = vmul.f32 %v7194_v3, %v7194_v3  ;;  %3530 = vmatpush.bf16.msrb.mxu3 %v4549_v36  ;;  %v7245_v24 = vadd.f32 %v2422_v5, %v7061_v18  ;;  %v4690_v36 = vld [vmem:[#allocation12 + $0x14] sm:$0xf] }
 0x357   : > { %v7237_v61 = vadd.f32 %v2444_v46, %v7187_v49  ;;  %3441 = vmatpush.bf16.msrb.mxu2 %v4545_v62  ;;  %v4536_v46 = vld [vmem:[#allocation12 + $0x20] sm:$0xf]  ;;  %v4691_v62 = vld [vmem:[#allocation12 + $0x14] sm:$0xf0] }
 0x358   : > { %2629 = vadd.xlane.f32.xlu0 %v2574_v27  ;;  %8623 = vst [vmem:[#allocation52_spill] sm:$0xff] %v7245_v24  ;;  %v4537_v40 = vor.u32 %v4693_v16, %v4536_v46  ;;  %v2580_v15 = vmul.f32 %v7245_v24, %v7245_v24 }
 0x359   : > { %2483 = vmatmul.bf16.gmra.mxu1 %v7011_v35  ;;  %v7224_v35 = vadd.f32 %v7132_v0, %v7061_v18  ;;  %v3081_v0 = vmul.f32 1.442695, %v2520_v34  ;;  %v2521_v30 = vsub.f32 0.0, %v7237_v61  ;;  %v4533_v61 = vor.u32 %v4690_v36, %v4530_v42  ;;  %v4522_v36 = vld [vmem:[#allocation12 + $0x8] sm:$0xf0] }
 0x35a   : > { %v4689_v42 = vld [vmem:[#allocation12 + $0x4] sm:$0xf0] }
 0x35b   : > { %2631 = vadd.xlane.f32.xlu1 %v2575_v54  ;;  %2627 = vadd.xlane.f32.xlu2 %v2573_v43  ;;  %8621 = vst [vmem:[#allocation50_spill] sm:$0xff] %v7224_v35  ;;  %v2576_v10 = vmul.f32 %v7224_v35, %v7224_v35  ;;  %v4692_v54 = vld [vmem:[#allocation12 + $0x24] sm:$0xf]  ;;  %v4538_v43 = vld [vmem:[#allocation12 + $0x28] sm:$0xf0]  ;;  %5172 = vpow2.f32 %v3081_v0 }
 0x35c   : > { %v4541_v6 = vor.u32 %v4692_v54, %v4538_v43  ;;  %3442 = vmatpush.bf16.msrb.mxu2 %v4537_v40 }
 0x35d   : > { %v2425_v7 = vpop.f32.mrf.mxu3 }
 0x35e   : > { %v2446_v1 = vpop.f32.mrf.mxu1  ;;  %3531 = vmatpush.bf16.msrb.mxu3 %v4541_v6 }
 0x35f   : > { %v7232_v51 = vadd.f32 %v2446_v1, %v7187_v49  ;;  %v7250_v1 = vadd.f32 %v7184_v50, %v7061_v18  ;;  %v4528_v50 = vld [vmem:[#allocation12 + $0x10] sm:$0xf] }
 0x360   : > { %2635 = vadd.xlane.f32.xlu0 %v2577_v25  ;;  %v7253_v25 = vadd.f32 %v2425_v7, %v7061_v18  ;;  %v3083_v7 = vmul.f32 1.442695, %v2521_v30 }
 0x361   : > { %v2522_v27 = vsub.f32 0.0, %v7232_v51  ;;  %8624 = vst [vmem:[#allocation53_spill] sm:$0xff] %v7250_v1  ;;  %v2579_v43 = vmul.f32 %v7250_v1, %v7250_v1  ;;  %v5173_v6 = vpop.eup %5172 }
 0x362   : > { %8625 = vst [vmem:[#allocation54_spill] sm:$0xff] %v7253_v25  ;;  %v2581_v46 = vmul.f32 %v7253_v25, %v7253_v25  ;;  %3532 = vmatpush.bf16.msrb.mxu3 %v4533_v61 }
 0x363   : > { %2637 = vadd.xlane.f32.xlu1 %v2578_v9  ;;  %2633 = vadd.xlane.f32.xlu2 %v2576_v10  ;;  %v3085_v5 = vmul.f32 1.442695, %v2522_v27  ;;  %v3047_v9 = vsub.f32 0.0, %v2519_v29  ;;  %v4529_v10 = vor.u32 %v4691_v62, %v4528_v50  ;;  %v4520_v29 = vld [vmem:[#allocation12] sm:$0xf] }
 0x365   : > { %5174 = vpow2.f32 %v3085_v5  ;;  %v2427_v16 = vpop.f32.mrf.mxu3  ;;  %v3143_v40 = vadd.f32 %v5171_v57, %v3047_v9  ;;  %3443 = vmatpush.bf16.msrb.mxu2 %v4529_v10 }
 0x366   : > { %v2449_v53 = vpop.f32.mrf.mxu1  ;;  %5176 = vpow2.f32 %v3083_v7  ;;  %v7268_v50 = vadd.f32 %v2427_v16, %v7061_v18 }
 0x367   : > { %v2450_v0 = vadd.f32 %v2449_v53, %v7187_v49  ;;  %v4688_v53 = vld [vmem:[#allocation12 + $0x4] sm:$0xf]  ;;  %v4486_v9 = vadd.f32 -1.0, %v3143_v40 }
 0x368   : > { %2641 = vadd.xlane.f32.xlu0 %v2580_v15  ;;  %v4525_v5 = vor.u32 %v4688_v53, %v4522_v36  ;;  %8626 = vst [vmem:[#allocation55_spill] sm:$0xff] %v7268_v50  ;;  %v2582_v7 = vmul.f32 %v7268_v50, %v7268_v50  ;;  %v3049_v53 = vsub.f32 0.0, %v2521_v30 }
 0x369   : > { %v2523_v54 = vsub.f32 0.0, %v2450_v0  ;;  %2488 = vmatmul.bf16.gmra.mxu1 %v7028_v44  ;;  %v3048_v44 = vsub.f32 0.0, %v2520_v34  ;;  %v4521_v0 = vor.u32 %v4689_v42, %v4520_v29  ;;  %v3050_v34 = vsub.f32 0.0, %v2522_v27 }
 0x36a   : > { %3533 = vmatpush.bf16.msrb.mxu3 %v4525_v5 }
 0x36b   : > { %v3087_v15 = vmul.f32 1.442695, %v2523_v54  ;;  %2639 = vadd.xlane.f32.xlu2 %v2579_v43  ;;  %2643 = vadd.xlane.f32.xlu1 %v2581_v46  ;;  %v3144_v61 = vadd.f32 %v5173_v6, %v3048_v44  ;;  %v5175_v10 = vpop.eup %5174  ;;  %v3051_v36 = vsub.f32 0.0, %v2523_v54 }
 0x36c   : > { %3444 = vmatpush.bf16.msrb.mxu2 %v4521_v0  ;;  %v5177_v6 = vpop.eup %5176  ;;  %v3146_v16 = vadd.f32 %v5175_v10, %v3050_v34 }
 0x36d   : > { %5178 = vpow2.f32 %v3087_v15  ;;  %v4487_v46 = vadd.f32 -1.0, %v3144_v61  ;;  %v3145_v15 = vadd.f32 %v5177_v6, %v3049_v53 }
 0x36e   : > { %v2584_v57 = vpop.xlane.xlu2 %2583  ;;  %v2451_v62 = vpop.f32.mrf.mxu1  ;;  %v4489_v5 = vadd.f32 -1.0, %v3146_v16 }
 0x36f   : > { %v7270_v43 = vmax.f32 %v2584_v57, 1e-24  ;;  %v2452_v39 = vadd.f32 %v2451_v62, %v7187_v49  ;;  %v4488_v54 = vadd.f32 -1.0, %v3145_v15 }
 0x370   : > { %3207 = vadd.xlane.f32.xlu0 %v4486_v9 }
 0x371   : > { %5180 = vrsqrt.f32 %v7270_v43  ;;  %v2524_v18 = vsub.f32 0.0, %v2452_v39  ;;  %vm2685_vm9 = vweird.f32 %v7270_v43 }
 0x373   : > { %v5179_v40 = vpop.eup %5178  ;;  %v3089_v29 = vmul.f32 1.442695, %v2524_v18  ;;  %2645 = vadd.xlane.f32.xlu2 %v2582_v7  ;;  %3209 = vadd.xlane.f32.xlu1 %v4487_v46  ;;  %v3052_v34 = vsub.f32 0.0, %v2524_v18 }
 0x374   : > { %v3147_v44 = vadd.f32 %v5179_v40, %v3051_v36 }
 0x375   : > { %5182 = vpow2.f32 %v3089_v29 }
 0x376   : > { %v2454_v51 = vpop.f32.mrf.mxu1  ;;  %v2586_v27 = vpop.xlane.xlu0 %2585  ;;  %v4490_v62 = vadd.f32 -1.0, %v3147_v44 }
 0x377   : > { %v7278_v42 = vpop.eup %5180  ;;  %v2455_v0 = vadd.f32 %v2454_v51, %v7187_v49  ;;  %v2648_v57 = vmax.f32 %v2586_v27, 1e-24 }
 0x378   : > { %v2680_v61 = vmul.f32 %v7278_v42, %v7270_v43  ;;  %3213 = vadd.xlane.f32.xlu0 %v4489_v5  ;;  %vm2686_vm8 = vweird.f32 %v7278_v42 }
 0x379   : > { %v2525_v30 = vsub.f32 0.0, %v2455_v0  ;;  %5184 = vrsqrt.f32 %v2648_v57  ;;  %2493 = vmatmul.bf16.gmra.mxu1 %v7041_v14  ;;  %vm7294_vm11 = vmor %vm2685_vm9, %vm2686_vm8  ;;  %vm2695_vm12 = vweird.f32 %v2648_v57 }
 0x37a   : > { %v2681_v9 = vmul.f32 %v7278_v42, %v2680_v61 }
 0x37b   : > { %v5183_v10 = vpop.eup %5182  ;;  %v3091_v39 = vmul.f32 1.442695, %v2525_v30  ;;  %3211 = vadd.xlane.f32.xlu2 %v4488_v54  ;;  %3215 = vadd.xlane.f32.xlu1 %v4490_v62  ;;  %v3053_v51 = vsub.f32 0.0, %v2525_v30 }
 0x37c   : > { %v2682_v7 = vmul.f32 0.5, %v2681_v9  ;;  %v3148_v46 = vadd.f32 %v5183_v10, %v3052_v34 }
 0x37d   : > { %5186 = vpow2.f32 %v3091_v39 }
 0x37e   : > { %v2588_v6 = vpop.xlane.xlu1 %2587  ;;  %v2456_v16 = vpop.f32.mrf.mxu1  ;;  %v2683_v14 = vsub.f32 1.5, %v2682_v7  ;;  %v4491_v44 = vadd.f32 -1.0, %v3148_v46 }
 0x37f   : > { %v5185_v40 = vpop.eup %5184  ;;  %v7285_v53 = vmax.f32 %v2588_v6, 1e-24  ;;  %v2457_v36 = vadd.f32 %v2456_v16, %v7187_v49 }
 0x380   : > { %v2690_v29 = vmul.f32 %v5185_v40, %v2648_v57  ;;  %v2684_v0 = vmul.f32 %v7278_v42, %v2683_v14  ;;  %vm2696_vm10 = vweird.f32 %v5185_v40 }
 0x381   : > { %5188 = vrsqrt.f32 %v7285_v53  ;;  %v2526_v15 = vsub.f32 0.0, %v2457_v36  ;;  %vm2697_vm13 = vmor %vm2695_vm12, %vm2696_vm10  ;;  %vm2705_vm15 = vweird.f32 %v7285_v53 }
 0x382   : > { %v2691_v27 = vmul.f32 %v5185_v40, %v2690_v29  ;;  %v2688_v43 = vsel %vm7294_vm11, %v7278_v42, %v2684_v0 }
 0x383   : > { %v5187_v5 = vpop.eup %5186  ;;  %v3093_v18 = vmul.f32 1.442695, %v2526_v15  ;;  %3217 = vadd.xlane.f32.xlu2 %v4491_v44  ;;  %v3054_v44 = vsub.f32 0.0, %v2526_v15  ;;  %v2999_v57 = vmul.f32 %v2688_v43, %v7064_v4 }
 0x384   : > { %v2692_v61 = vmul.f32 0.5, %v2691_v27  ;;  %v3149_v54 = vadd.f32 %v5187_v5, %v3053_v51 }
 0x385   : > { %5190 = vpow2.f32 %v3093_v18 }
 0x386   : > { %v2693_v62 = vsub.f32 1.5, %v2692_v61  ;;  %v2590_v9 = vpop.xlane.xlu2 %2589  ;;  %v2459_v10 = vpop.f32.mrf.mxu1  ;;  %v4492_v39 = vadd.f32 -1.0, %v3149_v54 }
 0x387   : > { %v7292_v34 = vpop.eup %5188  ;;  %v2650_v7 = vmax.f32 %v2590_v9, 1e-24  ;;  %v2460_v46 = vadd.f32 %v2459_v10, %v7187_v49 }
 0x388   : > { %v2694_v6 = vmul.f32 %v5185_v40, %v2693_v62  ;;  %v2700_v16 = vmul.f32 %v7292_v34, %v7285_v53  ;;  %3219 = vadd.xlane.f32.xlu0 %v4492_v39  ;;  %vm2706_vm14 = vweird.f32 %v7292_v34 }
 0x389   : > { %5192 = vrsqrt.f32 %v2650_v7  ;;  %v2527_v36 = vsub.f32 0.0, %v2460_v46  ;;  %2498 = vmatmul.bf16.gmra.mxu1 %v7016_v17  ;;  %vm7315_vm2 = vmor %vm2705_vm15, %vm2706_vm14  ;;  %vm2715_vm3 = vweird.f32 %v2650_v7 }
 0x38a   : > { %v2701_v14 = vmul.f32 %v7292_v34, %v2700_v16  ;;  %v2698_v29 = vsel %vm2697_vm13, %v5185_v40, %v2694_v6 }
 0x38b   : > { %v5191_v51 = vpop.eup %5190  ;;  %v3095_v27 = vmul.f32 1.442695, %v2527_v36  ;;  %v3000_v5 = vmul.f32 %v2698_v29, %v7070_v37  ;;  %v3055_v37 = vsub.f32 0.0, %v2527_v36 }
 0x38c   : > { %v2702_v18 = vmul.f32 0.5, %v2701_v14  ;;  %v3150_v61 = vadd.f32 %v5191_v51, %v3054_v44 }
 0x38d   : > { %5194 = vpow2.f32 %v3095_v27  ;;  %v3031_v54 = vpack.c.bf16 %v3000_v5, %v2999_v57 }
 0x38e   : > { %v2592_v42 = vpop.xlane.xlu2 %2591  ;;  %v2461_v0 = vpop.f32.mrf.mxu1  ;;  %v4493_v62 = vadd.f32 -1.0, %v3150_v61  ;;  %v2703_v40 = vsub.f32 1.5, %v2702_v18 }
 0x38f   : > { %v5193_v9 = vpop.eup %5192  ;;  %v7308_v10 = vmax.f32 %v2592_v42, 1e-24  ;;  %v2462_v17 = vadd.f32 %v2461_v0, %v7187_v49  ;;  %3445 = vmatmul.bf16.vlgmr.msrb.gmra.mxu2 %v3031_v54  ;;  %3534 = vmatmul.bf16.vlgmr.msrb.gmra.mxu3 %v3031_v54 }
 0x390   : > { %v2710_v15 = vmul.f32 %v5193_v9, %v2650_v7  ;;  %3221 = vadd.xlane.f32.xlu1 %v4493_v62  ;;  %v2704_v43 = vmul.f32 %v7292_v34, %v2703_v40  ;;  %vm2716_vm0 = vweird.f32 %v5193_v9 }
 0x391   : > { %v2528_v4 = vsub.f32 0.0, %v2462_v17  ;;  %5196 = vrsqrt.f32 %v7308_v10  ;;  %vm2717_vm4 = vmor %vm2715_vm3, %vm2716_vm0  ;;  %vm2725_vm9 = vweird.f32 %v7308_v10 }
 0x392   : > { %v2711_v39 = vmul.f32 %v5193_v9, %v2710_v15  ;;  %v2708_v53 = vsel %vm7315_vm2, %v7292_v34, %v2704_v43 }
 0x393   : > { %v5195_v30 = vpop.eup %5194  ;;  %v3097_v46 = vmul.f32 1.442695, %v2528_v4  ;;  %v3056_v54 = vsub.f32 0.0, %v2528_v4  ;;  %v3001_v7 = vmul.f32 %v2708_v53, %v7075_v60 }
 0x394   : > { %v2712_v6 = vmul.f32 0.5, %v2711_v39  ;;  %v3151_v16 = vadd.f32 %v5195_v30, %v3055_v37 }
 0x395   : > { %5198 = vpow2.f32 %v3097_v46 }
 0x396   : > { %v2713_v14 = vsub.f32 1.5, %v2712_v6  ;;  %v2464_v29 = vpop.f32.mrf.mxu1  ;;  %v2594_v44 = vpop.xlane.xlu0 %2593  ;;  %v4494_v51 = vadd.f32 -1.0, %v3151_v16 }
 0x397   : > { %v2465_v27 = vadd.f32 %v2464_v29, %v7187_v49  ;;  %v7320_v57 = vmax.f32 %v2594_v44, 1e-24  ;;  %v7322_v5 = vpop.eup %5196 }
 0x398   : > { %3223 = vadd.xlane.f32.xlu2 %v4494_v51  ;;  %v2714_v18 = vmul.f32 %v5193_v9, %v2713_v14  ;;  %v2720_v62 = vmul.f32 %v7322_v5, %v7308_v10  ;;  %vm2726_vm6 = vweird.f32 %v7322_v5 }
 0x399   : > { %v2529_v61 = vsub.f32 0.0, %v2465_v27  ;;  %5200 = vrsqrt.f32 %v7320_v57  ;;  %2503 = vmatmul.bf16.gmra.mxu1 %v7033_v13  ;;  %vm2735_vm7 = vweird.f32 %v7320_v57  ;;  %vm7356_vm10 = vmor %vm2725_vm9, %vm2726_vm6 }
 0x39a   : > { %v2718_v42 = vsel %vm2717_vm4, %v5193_v9, %v2714_v18  ;;  %v2721_v13 = vmul.f32 %v7322_v5, %v2720_v62 }
 0x39b   : > { %v5199_v0 = vpop.eup %5198  ;;  %v3099_v17 = vmul.f32 1.442695, %v2529_v61  ;;  %v3002_v40 = vmul.f32 %v2718_v42, %v7081_v23  ;;  %v3057_v23 = vsub.f32 0.0, %v2529_v61 }
 0x39c   : > { %v3152_v15 = vadd.f32 %v5199_v0, %v3056_v54  ;;  %v2722_v29 = vmul.f32 0.5, %v2721_v13 }
 0x39d   : > { %5202 = vpow2.f32 %v3099_v17  ;;  %v3032_v34 = vpack.c.bf16 %v3002_v40, %v3001_v7 }
 0x39e   : > { %v2596_v39 = vpop.xlane.xlu1 %2595  ;;  %v2466_v37 = vpop.f32.mrf.mxu1  ;;  %v4495_v30 = vadd.f32 -1.0, %v3152_v15  ;;  %v2723_v54 = vsub.f32 1.5, %v2722_v29 }
 0x39f   : > { %v5201_v46 = vpop.eup %5200  ;;  %v2467_v9 = vadd.f32 %v2466_v37, %v7187_v49  ;;  %v2600_v4 = vpop.xlane.xlu0 %2599  ;;  %3450 = vmatmul.bf16.gmra.mxu2 %v3032_v34  ;;  %3539 = vmatmul.bf16.gmra.mxu3 %v3032_v34  ;;  %v7336_v16 = vmax.f32 %v2596_v39, 1e-24 }
 0x3a0   : > { %v2730_v6 = vmul.f32 %v5201_v46, %v7320_v57  ;;  %3225 = vadd.xlane.f32.xlu0 %v4495_v30  ;;  %vm2736_vm5 = vweird.f32 %v5201_v46  ;;  %v2724_v39 = vmul.f32 %v7322_v5, %v2723_v54 }
 0x3a1   : > { %v2530_v60 = vsub.f32 0.0, %v2467_v9  ;;  %5204 = vrsqrt.f32 %v7336_v16  ;;  %vm7349_vm8 = vmor %vm2735_vm7, %vm2736_vm5  ;;  %vm2745_vm13 = vweird.f32 %v7336_v16 }
 0x3a2   : > { %v2731_v43 = vmul.f32 %v5201_v46, %v2730_v6  ;;  %v2728_v10 = vsel %vm7356_vm10, %v7322_v5, %v2724_v39 }
 0x3a3   : > { %v5203_v14 = vpop.eup %5202  ;;  %v3101_v44 = vmul.f32 1.442695, %v2530_v60  ;;  %v3058_v40 = vsub.f32 0.0, %v2530_v60  ;;  %v3003_v54 = vmul.f32 %v2728_v10, %v7086_v59 }
 0x3a4   : > { %v2732_v51 = vmul.f32 0.5, %v2731_v43  ;;  %v3153_v36 = vadd.f32 %v5203_v14, %v3057_v23 }
 0x3a5   : > { %5206 = vpow2.f32 %v3101_v44 }
 0x3a6   : > { %v2598_v27 = vpop.xlane.xlu2 %2597  ;;  %v2602_v53 = vpop.xlane.xlu1 %2601  ;;  %v4496_v18 = vadd.f32 -1.0, %v3153_v36  ;;  %v2733_v42 = vsub.f32 1.5, %v2732_v51 }
 0x3a7   : > { %v7339_v0 = vmax.f32 %v2598_v27, 1e-24  ;;  %v2469_v62 = vpop.f32.mrf.mxu1  ;;  %v2606_v17 = vpop.xlane.xlu0 %2605 }
 0x3a8   : > { %v2470_v61 = vadd.f32 %v2469_v62, %v7187_v49  ;;  %3227 = vadd.xlane.f32.xlu1 %v4496_v18  ;;  %v7344_v7 = vpop.eup %5204  ;;  %v2734_v37 = vmul.f32 %v5201_v46, %v2733_v42  ;;  %v7374_v18 = vmax.f32 %v2600_v4, 1e-24  ;;  %v7382_v30 = vmax.f32 %v2606_v17, 1e-24 }
 0x3a9   : > { %5208 = vrsqrt.f32 %v7339_v0  ;;  %2508 = vmatmul.bf16.gmra.mxu1 %v7044_v45  ;;  %v2740_v57 = vmul.f32 %v7344_v7, %v7336_v16  ;;  %vm2746_vm11 = vweird.f32 %v7344_v7  ;;  %vm2755_vm15 = vweird.f32 %v7339_v0 }
 0x3aa   : > { %v2531_v15 = vsub.f32 0.0, %v2470_v61  ;;  %v2738_v45 = vsel %vm7349_vm8, %v5201_v46, %v2734_v37  ;;  %vm7423_vm14 = vmor %vm2745_vm13, %vm2746_vm11  ;;  %vm2765_vm2 = vweird.f32 %v7374_v18  ;;  %vm2795_vm11 = vweird.f32 %v7382_v30 }
 0x3ab   : > { %v5207_v34 = vpop.eup %5206  ;;  %v3004_v51 = vmul.f32 %v2738_v45, %v7094_v22  ;;  %v2741_v27 = vmul.f32 %v7344_v7, %v2740_v57  ;;  %v7380_v22 = vmax.f32 %v2602_v53, 1e-24 }
 0x3ac   : > { %v3103_v13 = vmul.f32 1.442695, %v2531_v15  ;;  %v3154_v9 = vadd.f32 %v5207_v34, %v3058_v40  ;;  %v3059_v4 = vsub.f32 0.0, %v2531_v15 }
 0x3ad   : > { %v3033_v62 = vpack.c.bf16 %v3004_v51, %v3003_v54  ;;  %v2742_v40 = vmul.f32 0.5, %v2741_v27  ;;  %vm2775_vm4 = vweird.f32 %v7380_v22 }
 0x3ae   : > { %v2604_v60 = vpop.xlane.xlu2 %2603  ;;  %v2608_v23 = vpop.xlane.xlu1 %2607  ;;  %v4497_v43 = vadd.f32 -1.0, %v3154_v9  ;;  %5210 = vpow2.f32 %v3103_v13 }
 0x3af   : > { %v7362_v14 = vpop.eup %5208  ;;  %v2471_v29 = vpop.f32.mrf.mxu1  ;;  %5212 = vrsqrt.f32 %v7374_v18  ;;  %3455 = vmatmul.bf16.gmra.mxu2 %v3033_v62  ;;  %3544 = vmatmul.bf16.gmra.mxu3 %v3033_v62  ;;  %v7384_v13 = vmax.f32 %v2604_v60, 1e-24  ;;  %v2743_v57 = vsub.f32 1.5, %v2742_v40 }
 0x3b0   : > { %v2612_v44 = vpop.xlane.xlu0 %2611  ;;  %v2750_v46 = vmul.f32 %v7362_v14, %v7339_v0  ;;  %3229 = vadd.xlane.f32.xlu2 %v4497_v43  ;;  %v7371_v36 = vadd.f32 %v2471_v29, %v7187_v49  ;;  %5214 = vrsqrt.f32 %v7380_v22  ;;  %v7393_v43 = vmax.f32 %v2608_v23, 1e-24 }
 0x3b1   : > { %5216 = vrsqrt.f32 %v7382_v30  ;;  %v7400_v29 = vmax.f32 %v2612_v44, 1e-24  ;;  %v2744_v27 = vmul.f32 %v7344_v7, %v2743_v57  ;;  %vm2756_vm12 = vweird.f32 %v7362_v14 }
 0x3b2   : > { %v2751_v42 = vmul.f32 %v7362_v14, %v2750_v46  ;;  %v2532_v5 = vsub.f32 0.0, %v7371_v36  ;;  %5218 = vrsqrt.f32 %v7384_v13  ;;  %vm7434_vm0 = vmor %vm2755_vm15, %vm2756_vm12  ;;  %vm2785_vm9 = vweird.f32 %v7384_v13 }
 0x3b3   : > { %8635 = vst [vmem:[#allocation56_spill] sm:$0xff] %v7400_v29 }
 0x3b4   : > { %v5211_v61 = vpop.eup %5210  ;;  %v2752_v37 = vmul.f32 0.5, %v2751_v42  ;;  %v3105_v6 = vmul.f32 1.442695, %v2532_v5 }
 0x3b5   : > { %v3155_v53 = vadd.f32 %v5211_v61, %v3059_v4  ;;  %v7397_v60 = vpop.eup %5212 }
 0x3b6   : > { %v2610_v34 = vpop.xlane.xlu2 %2609  ;;  %v2614_v39 = vpop.xlane.xlu1 %2613  ;;  %v2753_v15 = vsub.f32 1.5, %v2752_v37  ;;  %5220 = vpow2.f32 %v3105_v6  ;;  %v2760_v54 = vmul.f32 %v7397_v60, %v7374_v18  ;;  %v2748_v6 = vsel %vm7423_vm14, %v7344_v7, %v2744_v27 }
 0x3b7   : > { %v2474_v59 = vpop.f32.mrf.mxu1  ;;  %v7402_v10 = vmax.f32 %v2610_v34, 1e-24  ;;  %5222 = vrsqrt.f32 %v7393_v43  ;;  %v7413_v62 = vpop.eup %5214  ;;  %v3060_v7 = vsub.f32 0.0, %v2532_v5  ;;  %vm2766_vm3 = vweird.f32 %v7397_v60 }
 0x3b8   : > { %v7387_v9 = vadd.f32 %v2474_v59, %v7187_v49  ;;  %v2618_v45 = vpop.xlane.xlu0 %2617  ;;  %v2754_v42 = vmul.f32 %v7362_v14, %v2753_v15  ;;  %5224 = vrsqrt.f32 %v7400_v29  ;;  %v7419_v40 = vpop.eup %5216  ;;  %v7438_v59 = vmax.f32 %v2614_v39, 1e-24  ;;  %vm7562_vm6 = vmor %vm2765_vm2, %vm2766_vm3 }
 0x3b9   : > { %2513 = vmatmul.bf16.gmra.mxu1 %v7050_v31  ;;  %v4498_v31 = vadd.f32 -1.0, %v3155_v53  ;;  %v7417_v61 = vmax.f32 %v2618_v45, 1e-24  ;;  %5226 = vrsqrt.f32 %v7402_v10  ;;  %v7432_v16 = vpop.eup %5218  ;;  %v2761_v53 = vmul.f32 %v7397_v60, %v2760_v54 }
 0x3ba   : > { %v8472_v17 = vsub.f32 0.0, %v7387_v9  ;;  %8640 = vst [vmem:[#allocation57_spill] sm:$0xff] %v7438_v59  ;;  %v2770_v57 = vmul.f32 %v7413_v62, %v7380_v22  ;;  %v2790_v39 = vmul.f32 %v7419_v40, %v7382_v30  ;;  %v2780_v34 = vmul.f32 %v7432_v16, %v7384_v13 }
 0x3bb   : > { %3231 = vadd.xlane.f32.xlu0 %v4498_v31  ;;  %v2758_v31 = vsel %vm7434_vm0, %v7362_v14, %v2754_v42  ;;  %v8642_v50 = vsub.f32 0.0, %v7387_v9  ;;  %vm2776_vm5 = vweird.f32 %v7413_v62  ;;  %vm2786_vm8 = vweird.f32 %v7432_v16 }
 0x3bc   : > { %v3107_v23 = vmul.f32 1.442695, %v8472_v17  ;;  %v5221_v0 = vpop.eup %5220  ;;  %v3006_v14 = vmul.f32 %v2758_v31, %v7118_v32  ;;  %v2762_v17 = vmul.f32 0.5, %v2761_v53  ;;  %v2771_v31 = vmul.f32 %v7413_v62, %v2770_v57  ;;  %vm7575_vm7 = vmor %vm2775_vm4, %vm2776_vm5 }
 0x3bd   : > { %v3156_v36 = vadd.f32 %v5221_v0, %v3060_v7  ;;  %v2791_v54 = vmul.f32 %v7419_v40, %v2790_v39  ;;  %v3061_v0 = vsub.f32 0.0, %v8642_v50  ;;  %v2781_v57 = vmul.f32 %v7432_v16, %v2780_v34  ;;  %vm7677_vm12 = vmor %vm2785_vm9, %vm2786_vm8 }
 0x3be   : > { %v2616_v46 = vpop.xlane.xlu2 %2615  ;;  %v2620_v51 = vpop.xlane.xlu1 %2619  ;;  %5228 = vpow2.f32 %v3107_v23  ;;  %v2763_v24 = vsub.f32 1.5, %v2762_v17  ;;  %v2772_v34 = vmul.f32 0.5, %v2771_v31  ;;  %vm2796_vm10 = vweird.f32 %v7419_v40 }
 0x3bf   : > { %v2476_v44 = vpop.f32.mrf.mxu1  ;;  %v7446_v15 = vmax.f32 %v2616_v46, 1e-24  ;;  %v7451_v23 = vpop.eup %5222  ;;  %5230 = vrsqrt.f32 %v7417_v61  ;;  %v7458_v27 = vmax.f32 %v2620_v51, 1e-24  ;;  %v4499_v25 = vadd.f32 -1.0, %v3156_v36  ;;  %vm2797_vm13 = vmor %vm2795_vm11, %vm2796_vm10 }
 0x3c0   : > { %v7430_v37 = vadd.f32 %v2476_v44, %v7187_v49  ;;  %v2624_v45 = vpop.xlane.xlu0 %2623  ;;  %v3005_v44 = vmul.f32 %v2748_v6, %v7102_v47  ;;  %v7465_v42 = vpop.eup %5224  ;;  %5232 = vrsqrt.f32 %v7438_v59  ;;  %v7512_v17 = vmul.f32 0.5, %v2781_v57 }
 0x3c1   : > { %v7461_v46 = vmax.f32 %v2624_v45, 1e-24  ;;  %8641 = vst [vmem:[#allocation58_spill] sm:$0xff] %v7465_v42  ;;  %v7470_v51 = vpop.eup %5226  ;;  %v2800_v45 = vmul.f32 %v7451_v23, %v7393_v43  ;;  %5234 = vrsqrt.f32 %v7446_v15  ;;  %v2820_v50 = vmul.f32 %v7465_v42, %v7400_v29  ;;  %3233 = vadd.xlane.f32.xlu1 %v4499_v25 }
 0x3c2   : > { %v3034_v47 = vpack.c.bf16 %v3006_v14, %v3005_v44  ;;  %5236 = vrsqrt.f32 %v7458_v27  ;;  %v8643_v7 = vsub.f32 0.0, %v7430_v37  ;;  %v2773_v57 = vsub.f32 1.5, %v2772_v34 }
 0x3c3   : > { %5238 = vrsqrt.f32 %v7461_v46  ;;  %v2801_v39 = vmul.f32 %v7451_v23, %v2800_v45  ;;  %v7505_v45 = vmul.f32 0.5, %v2791_v54  ;;  %v2764_v35 = vmul.f32 %v7397_v60, %v2763_v24 }
 0x3c4   : > { %v5229_v6 = vpop.eup %5228  ;;  %v3109_v53 = vmul.f32 1.442695, %v8643_v7  ;;  %3460 = vmatmul.bf16.gmra.mxu2 %v3034_v47  ;;  %3549 = vmatmul.bf16.gmra.mxu3 %v3034_v47  ;;  %v2810_v7 = vmul.f32 %v7470_v51, %v7402_v10  ;;  %v8646_v20 = vsub.f32 0.0, %v7430_v37  ;;  %vm2816_vm14 = vweird.f32 %v7470_v51 }
 0x3c5   : > { %v7486_v14 = vpop.eup %5230  ;;  %v3157_v36 = vadd.f32 %v5229_v6, %v3061_v0  ;;  %v2821_v0 = vmul.f32 %v7465_v42, %v2820_v50  ;;  %v7519_v54 = vmul.f32 0.5, %v2801_v39  ;;  %vm2806_vm15 = vweird.f32 %v7451_v23 }
 0x3c6   : > { %v2622_v5 = vpop.xlane.xlu2 %2621  ;;  %v2626_v4 = vpop.xlane.xlu1 %2625  ;;  %v2850_v25 = vmul.f32 %v7486_v14, %v7417_v61  ;;  %5240 = vpow2.f32 %v3109_v53  ;;  %v2811_v53 = vmul.f32 %v7470_v51, %v2810_v7  ;;  %vm2815_vm0 = vweird.f32 %v7402_v10 }
 0x3c7   : > { %v2479_v32 = vpop.f32.mrf.mxu1  ;;  %v7491_v9 = vmax.f32 %v2622_v5, 1e-24  ;;  %v7496_v47 = vmax.f32 %v2626_v4, 1e-24  ;;  %v7498_v11 = vpop.eup %5232  ;;  %v4500_v4 = vadd.f32 -1.0, %v3157_v36  ;;  %v7535_v3 = vmul.f32 0.5, %v2821_v0 }
 0x3c8   : > { %v7484_v44 = vadd.f32 %v2479_v32, %v7187_v49  ;;  %v7503_v1 = vpop.eup %5234  ;;  %v2830_v39 = vmul.f32 %v7498_v11, %v7438_v59  ;;  %v2851_v7 = vmul.f32 %v7486_v14, %v2850_v25  ;;  %v7542_v33 = vmul.f32 0.5, %v2811_v53 }
 0x3c9   : > { %v7509_v6 = vpop.eup %5236  ;;  %5242 = vrsqrt.f32 %v7491_v9  ;;  %3235 = vadd.xlane.f32.xlu2 %v4500_v4  ;;  %v2840_v50 = vmul.f32 %v7503_v1, %v7446_v15  ;;  %8645 = vst [vmem:[#allocation59_spill] sm:$0xff] %v7535_v3  ;;  %v3062_v25 = vsub.f32 0.0, %v8646_v20  ;;  %v2774_v53 = vmul.f32 %v7413_v62, %v2773_v57  ;;  %v4709_v3 = vld [vmem:[#allocation13 + $0x28] sm:$0xff] }
 0x3ca   : > { %v7516_v55 = vpop.eup %5238  ;;  %5244 = vrsqrt.f32 %v7496_v47  ;;  %v8644_v38 = vsub.f32 0.0, %v7484_v44  ;;  %v2860_v4 = vmul.f32 %v7509_v6, %v7458_v27  ;;  %v2831_v37 = vmul.f32 %v7498_v11, %v2830_v39 }
 0x3cb   : > { %v2630_v32 = vpop.xlane.xlu0 %2629  ;;  %v2880_v41 = vmul.f32 %v7516_v55, %v7461_v46  ;;  %v2841_v0 = vmul.f32 %v7503_v1, %v2840_v50  ;;  %v2778_v22 = vsel %vm7575_vm7, %v7413_v62, %v2774_v53  ;;  %v8654_v53 = vsub.f32 0.0, %v7484_v44 }
 0x3cc   : > { %v3111_v28 = vmul.f32 1.442695, %v8644_v38  ;;  %v7539_v38 = vmax.f32 %v2630_v32, 1e-24  ;;  %v5241_v24 = vpop.eup %5240  ;;  %v7600_v62 = vmul.f32 0.5, %v2831_v37  ;;  %vm2805_vm2 = vweird.f32 %v7393_v43 }
 0x3cd   : > { %v2881_v18 = vmul.f32 %v7516_v55, %v2880_v41  ;;  %v3158_v50 = vadd.f32 %v5241_v24, %v3062_v25  ;;  %v2842_v8 = vmul.f32 0.5, %v2841_v0  ;;  %v3008_v25 = vmul.f32 %v2778_v22, %v7110_v2 }
 0x3ce   : > { %v2632_v31 = vpop.xlane.xlu1 %2631  ;;  %v2628_v5 = vpop.xlane.xlu2 %2627  ;;  %5246 = vpow2.f32 %v3111_v28  ;;  %v2861_v28 = vmul.f32 %v7509_v6, %v2860_v4  ;;  %8653 = vst [vmem:[#allocation62_spill] sm:$0xff] %v7600_v62  ;;  %vm2846_vm3 = vweird.f32 %v7503_v1  ;;  %vm2856_vm4 = vweird.f32 %v7486_v14 }
 0x3cf   : > { %v2481_v36 = vpop.f32.mrf.mxu1  ;;  %v7546_v12 = vmax.f32 %v2632_v31, 1e-24  ;;  %v7548_v56 = vpop.eup %5242  ;;  %v7554_v32 = vmax.f32 %v2628_v5, 1e-24  ;;  %v7567_v31 = vmul.f32 0.5, %v2851_v7  ;;  %5248 = vrsqrt.f32 %v7539_v38 }
 0x3d0   : > { %v7552_v34 = vadd.f32 %v2481_v36, %v7187_v49  ;;  %v7556_v29 = vpop.eup %5244  ;;  %v2768_v36 = vsel %vm7562_vm6, %v7397_v60, %v2764_v35  ;;  %v2870_v57 = vmul.f32 %v7548_v56, %v7491_v9  ;;  %v4501_v20 = vadd.f32 -1.0, %v3158_v50 }
 0x3d1   : > { %8647 = vst [vmem:[#allocation60_spill] sm:$0xff] %v7546_v12  ;;  %5250 = vrsqrt.f32 %v7546_v12  ;;  %v2890_v35 = vmul.f32 %v7556_v29, %v7496_v47  ;;  %v3007_v24 = vmul.f32 %v2768_v36, %v7099_v21  ;;  %v2862_v0 = vmul.f32 0.5, %v2861_v28 }
 0x3d2   : > { %5252 = vrsqrt.f32 %v7554_v32  ;;  %v3063_v5 = vsub.f32 0.0, %v8654_v53  ;;  %v2882_v48 = vmul.f32 0.5, %v2881_v18  ;;  %v2871_v21 = vmul.f32 %v7548_v56, %v2870_v57  ;;  %3237 = vadd.xlane.f32.xlu0 %v4501_v20  ;;  %v4710_v20 = vld [vmem:[#allocation13 + $0x30] sm:$0xff] }
 0x3d3   : > { %v2636_v26 = vpop.xlane.xlu0 %2635  ;;  %v3035_v36 = vpack.c.bf16 %v3008_v25, %v3007_v24  ;;  %v2853_v44 = vsub.f32 1.5, %v7567_v31  ;;  %v2843_v28 = vsub.f32 1.5, %v2842_v8  ;;  %v8655_v22 = vsub.f32 0.0, %v7552_v34  ;;  %3828 = vmatpush.bf16.msrb.mxu0 %v4710_v20 }
 0x3d4   : > { %v7590_v4 = vmax.f32 %v2636_v26, 1e-24  ;;  %v5247_v26 = vpop.eup %5246  ;;  %v2863_v31 = vsub.f32 1.5, %v2862_v0  ;;  %vm2845_vm5 = vweird.f32 %v7446_v15  ;;  %vm2866_vm6 = vweird.f32 %v7509_v6 }
 0x3d5   : > { %v7610_v50 = vpop.eup %5248  ;;  %3465 = vmatmul.bf16.gmra.mxu2 %v3035_v36  ;;  %3554 = vmatmul.bf16.gmra.mxu3 %v3035_v36  ;;  %v3159_v25 = vadd.f32 %v5247_v26, %v3063_v5  ;;  %v2883_v36 = vsub.f32 1.5, %v2882_v48  ;;  %v7636_v0 = vmul.f32 %v7486_v14, %v2853_v44  ;;  %vm2855_vm7 = vweird.f32 %v7417_v61 }
 0x3d6   : > { %v2638_v39 = vpop.xlane.xlu1 %2637  ;;  %v2634_v7 = vpop.xlane.xlu2 %2633  ;;  %8652 = vst [vmem:[#allocation61_spill] sm:$0xff] %v7590_v4  ;;  %5254 = vrsqrt.f32 %v7590_v4  ;;  %v2910_v48 = vmul.f32 %v7610_v50, %v7539_v38  ;;  %v7648_v62 = vmul.f32 %v7509_v6, %v2863_v31  ;;  %vm2886_vm8 = vweird.f32 %v7516_v55 }
 0x3d7   : > { %v2484_v41 = vpop.f32.mrf.mxu1  ;;  %v7604_v60 = vmax.f32 %v2638_v39, 1e-24  ;;  %v2891_v39 = vmul.f32 %v7556_v29, %v2890_v35  ;;  %v7616_v18 = vpop.eup %5250  ;;  %v7621_v24 = vmax.f32 %v2634_v7, 1e-24  ;;  %v2872_v7 = vmul.f32 0.5, %v2871_v21  ;;  %8656 = vst [vmem:[#allocation63_spill] sm:$0xff] %v7636_v0  ;;  %3829 = vmatpush.bf16.msrb.mxu0 %v4709_v3 }
 0x3d8   : > { %v7608_v2 = vadd.f32 %v2484_v41, %v7187_v49  ;;  %v3113_v41 = vmul.f32 1.442695, %v8655_v22  ;;  %v7623_v53 = vpop.eup %5252  ;;  %v2920_v21 = vmul.f32 %v7616_v18, %v7546_v12  ;;  %v4502_v26 = vadd.f32 -1.0, %v3159_v25  ;;  %8658 = vst [vmem:[#allocation65_spill] sm:$0xff] %v7648_v62  ;;  %v4708_v62 = vld [vmem:[#allocation13 + $0x20] sm:$0xff] }
 0x3d9   : > { %5256 = vrsqrt.f32 %v7604_v60  ;;  %v2892_v8 = vmul.f32 0.5, %v2891_v39  ;;  %v2900_v20 = vmul.f32 %v7623_v53, %v7554_v32  ;;  %v2873_v0 = vsub.f32 1.5, %v2872_v7 }
 0x3da   : > { %5258 = vrsqrt.f32 %v7621_v24  ;;  %v8661_v42 = vsub.f32 0.0, %v7608_v2  ;;  %3239 = vadd.xlane.f32.xlu1 %v4502_v26  ;;  %v8664_v3 = vsub.f32 0.0, %v7552_v34  ;;  %vm2865_vm9 = vweird.f32 %v7458_v27 }
 0x3db   : > { %v2642_v52 = vpop.xlane.xlu0 %2641  ;;  %5260 = vpow2.f32 %v3113_v41  ;;  %v7657_v41 = vmul.f32 %v7516_v55, %v2883_v36  ;;  %v2893_v59 = vsub.f32 1.5, %v2892_v8  ;;  %v2921_v8 = vmul.f32 %v7616_v18, %v2920_v21  ;;  %3830 = vmatpush.bf16.msrb.mxu0 %v4708_v62 }
 0x3dc   : > { %v7628_v35 = vmax.f32 %v2642_v52, 1e-24  ;;  %v7630_v22 = vpop.eup %5254  ;;  %v7639_v52 = vmul.f32 %v7503_v1, %v2843_v28  ;;  %v8659_v28 = vsub.f32 1.5, %v7512_v17  ;;  %v2911_v17 = vmul.f32 %v7610_v50, %v2910_v48 }
 0x3dd   : > { %v2940_v44 = vmul.f32 %v7630_v22, %v7590_v4  ;;  %8660 = vst [vmem:[#allocation66_spill] sm:$0xff] %v7657_v41  ;;  %v3064_v26 = vsub.f32 0.0, %v8664_v3  ;;  %v8665_v48 = vsub.f32 1.5, %v7505_v45  ;;  %v7695_v21 = vmul.f32 %v7548_v56, %v2873_v0 }
 0x3de   : > { %v2640_v37 = vpop.xlane.xlu2 %2639  ;;  %v2644_v57 = vpop.xlane.xlu1 %2643  ;;  %8657 = vst [vmem:[#allocation64_spill] sm:$0xff] %v7639_v52  ;;  %5262 = vrsqrt.f32 %v7628_v35  ;;  %v2784_v39 = vmul.f32 %v7432_v16, %v8659_v28  ;;  %v3115_v52 = vmul.f32 1.442695, %v8661_v42  ;;  %v7704_v45 = vmul.f32 0.5, %v2911_v17 }
 0x3df   : > { %v2486_v5 = vpop.f32.mrf.mxu1  ;;  %v7664_v4 = vpop.eup %5256  ;;  %v7667_v28 = vmax.f32 %v2640_v37, 1e-24  ;;  %v7669_v36 = vmax.f32 %v2644_v57, 1e-24  ;;  %v2901_v37 = vmul.f32 %v7623_v53, %v2900_v20  ;;  %v2794_v41 = vmul.f32 %v7419_v40, %v8665_v48 }
 0x3e0   : > { %v7662_v25 = vadd.f32 %v2486_v5, %v7187_v49  ;;  %v7671_v7 = vpop.eup %5258  ;;  %v2941_v5 = vmul.f32 %v7630_v22, %v2940_v44  ;;  %v2788_v13 = vsel %vm7677_vm12, %v7432_v16, %v2784_v39  ;;  %v2950_v20 = vmul.f32 %v7664_v4, %v7604_v60  ;;  %vm7801_vm12 = vmor %vm2815_vm0, %vm2816_vm14 }
 0x3e1   : > { %5264 = vrsqrt.f32 %v7667_v28  ;;  %v5261_v19 = vpop.eup %5260  ;;  %v7702_v16 = vmul.f32 %v7556_v29, %v2893_v59  ;;  %v2930_v39 = vmul.f32 %v7671_v7, %v7621_v24  ;;  %v7713_v0 = vmul.f32 0.5, %v2921_v8  ;;  %vm7821_vm14 = vmor %vm2805_vm2, %vm2806_vm15 }
 0x3e2   : > { %v2538_v57 = vsub.f32 0.0, %v7662_v25  ;;  %5266 = vpow2.f32 %v3115_v52  ;;  %v7715_v62 = vmul.f32 0.5, %v2901_v37  ;;  %v3009_v52 = vmul.f32 %v2788_v13, %v7127_v63  ;;  %vm7856_vm2 = vmor %vm2845_vm5, %vm2846_vm3 }
 0x3e3   : > { %v3208_v31 = vpop.xlane.xlu0 %3207  ;;  %8666 = vst [vmem:[#allocation67_spill] sm:$0xff] %v7702_v16  ;;  %5268 = vrsqrt.f32 %v7669_v36  ;;  %v7721_v17 = vmul.f32 0.5, %v2941_v5  ;;  %v2798_v42 = vsel %vm2797_vm13, %v7419_v40, %v2794_v41  ;;  %v3160_v48 = vadd.f32 %v5261_v19, %v3064_v26  ;;  %vm7874_vm3 = vmor %vm2855_vm7, %vm2856_vm4 }
 0x3e4   : > { %v3117_v44 = vmul.f32 1.442695, %v2538_v57  ;;  %v7699_v12 = vpop.eup %5262  ;;  %v3271_v16 = vmul.f32 0.5, %v3208_v31  ;;  %v2951_v30 = vmul.f32 %v7664_v4, %v2950_v20  ;;  %v3010_v8 = vmul.f32 %v2798_v42, %v7115_v58  ;;  %vm7894_vm7 = vmor %vm2865_vm9, %vm2866_vm6 }
 0x3e5   : > { %v2970_v59 = vmul.f32 %v7699_v12, %v7628_v35  ;;  %v2913_v5 = vsub.f32 1.5, %v7704_v45  ;;  %v2931_v40 = vmul.f32 %v7671_v7, %v2930_v39  ;;  %v4503_v19 = vadd.f32 -1.0, %v3160_v48 }
 0x3e6   : > { %v2646_v34 = vpop.xlane.xlu2 %2645  ;;  %v3210_v3 = vpop.xlane.xlu1 %3209  ;;  %5270 = vpow2.f32 %v3117_v44  ;;  %3303 = vst.msk [vmem:[%s6058_s7] sm:$0xff] %vm948_vm1, %v3271_v16  ;;  %v3036_v13 = vpack.c.bf16 %v3010_v8, %v3009_v52  ;;  %v2923_v16 = vsub.f32 1.5, %v7713_v0  ;;  %v8667_v45 = vsub.f32 0.0, %v7608_v2  ;;  %v4707_v8 = vld [vmem:[#allocation13 + $0x18] sm:$0xff] }
 0x3e7   : > { %v2489_v25 = vpop.f32.mrf.mxu1  ;;  %v7730_v63 = vpop.eup %5264  ;;  %v3272_v41 = vmul.f32 0.5, %v3210_v3  ;;  %v2971_v58 = vmul.f32 %v7699_v12, %v2970_v59  ;;  %v7741_v20 = vmax.f32 %v2646_v34, 1e-24  ;;  %v2903_v3 = vsub.f32 1.5, %v7715_v62  ;;  %3241 = vadd.xlane.f32.xlu2 %v4503_v19  ;;  %3831 = vmatpush.bf16.msrb.mxu0 %v4707_v8 }
 0x3e8   : > { %v7728_v37 = vadd.f32 %v2489_v25, %v7187_v49  ;;  %v5267_v31 = vpop.eup %5266  ;;  %v2960_v26 = vmul.f32 %v7730_v63, %v7667_v28  ;;  %v3065_v39 = vsub.f32 0.0, %v8667_v45  ;;  %v2943_v34 = vsub.f32 1.5, %v7721_v17  ;;  %3470 = vmatmul.bf16.gmra.mxu2 %v3036_v13  ;;  %3559 = vmatmul.bf16.gmra.mxu3 %v3036_v13  ;;  %v4706_v45 = vld [vmem:[#allocation13 + $0x10] sm:$0xff] }
 0x3e9   : > { %v7743_v25 = vpop.eup %5268  ;;  %3304 = vst.msk [vmem:[%s6058_s7 + $0x8] sm:$0xff] %vm948_vm1, %v3272_v41  ;;  %v7755_v42 = vmul.f32 0.5, %v2951_v30  ;;  %v3066_v48 = vsub.f32 0.0, %v2538_v57  ;;  %v7760_v19 = vmul.f32 0.5, %v2931_v40  ;;  %5272 = vrsqrt.f32 %v7741_v20 }
 0x3ea   : > { %v8505_v59 = vsub.f32 0.0, %v7728_v37  ;;  %v2961_v0 = vmul.f32 %v7730_v63, %v2960_v26  ;;  %v3161_v17 = vadd.f32 %v5267_v31, %v3065_v39  ;;  %v7766_v26 = vmul.f32 0.5, %v2971_v58 }
 0x3eb   : > { %v3214_v44 = vpop.xlane.xlu0 %3213  ;;  %v2980_v13 = vmul.f32 %v7743_v25, %v7669_v36  ;;  %vm2885_vm11 = vweird.f32 %v7461_v46  ;;  %v2953_v39 = vsub.f32 1.5, %v7755_v42  ;;  %v8669_v42 = vsub.f32 1.5, %v7542_v33  ;;  %3832 = vmatpush.bf16.msrb.mxu0 %v4706_v45  ;;  %v8694_v46 = vld [vmem:[#allocation56_spill] sm:$0xff] }
 0x3ec   : > { %v3119_v41 = vmul.f32 1.442695, %v8505_v59  ;;  %v3274_v30 = vmul.f32 0.5, %v3214_v44  ;;  %v5271_v57 = vpop.eup %5270  ;;  %v4504_v31 = vadd.f32 -1.0, %v3161_v17  ;;  %v8668_v59 = vsub.f32 1.5, %v7519_v54  ;;  %v8679_v54 = vld [vmem:[#allocation57_spill] sm:$0xff]  ;;  %vm7909_vm6 = vmor %vm2885_vm11, %vm2886_vm8 }
 0x3ed   : > { %vm2906_vm10 = vweird.f32 %v7623_v53  ;;  %v2933_v33 = vsub.f32 1.5, %v7760_v19  ;;  %vm2915_vm0 = vweird.f32 %v7539_v38  ;;  %vm2905_vm15 = vweird.f32 %v7554_v32 }
 0x3ee   : > { %v3212_v52 = vpop.xlane.xlu2 %3211  ;;  %v3216_v2 = vpop.xlane.xlu1 %3215  ;;  %5274 = vpow2.f32 %v3119_v41  ;;  %3306 = vst.msk [vmem:[%s6058_s7 + $0x18] sm:$0xff] %vm948_vm1, %v3274_v30  ;;  %v2804_v41 = vmul.f32 %v7451_v23, %v8668_v59  ;;  %3243 = vadd.xlane.f32.xlu0 %v4504_v31  ;;  %v7810_v59 = vmul.f32 %v7623_v53, %v2903_v3  ;;  %v2981_v3 = vmul.f32 %v7743_v25, %v2980_v13 }
 0x3ef   : > { %v2491_v62 = vpop.f32.mrf.mxu1  ;;  %v3273_v58 = vmul.f32 0.5, %v3212_v52  ;;  %v3275_v44 = vmul.f32 0.5, %v3216_v2  ;;  %v7789_v52 = vmul.f32 %v7610_v50, %v2913_v5  ;;  %v3162_v2 = vadd.f32 %v5271_v57, %v3066_v48  ;;  %v7836_v30 = vpop.eup %5272 }
 0x3f0   : > { %v7772_v40 = vadd.f32 %v2491_v62, %v7187_v49  ;;  %v7781_v62 = vmul.f32 0.5, %v2961_v0  ;;  %v2814_v0 = vmul.f32 %v7470_v51, %v8669_v42  ;;  %v7807_v5 = vmul.f32 %v7616_v18, %v2923_v16 }
 0x3f1   : > { %3305 = vst.msk [vmem:[%s6058_s7 + $0x10] sm:$0xff] %vm948_vm1, %v3273_v58  ;;  %v2973_v48 = vsub.f32 1.5, %v7766_v26  ;;  %v7828_v16 = vmul.f32 %v7630_v22, %v2943_v34  ;;  %v7840_v57 = vmul.f32 %v7664_v4, %v2953_v39  ;;  %v8674_v26 = vsub.f32 0.0, %v7728_v37  ;;  %v8675_v58 = vld [vmem:[#allocation60_spill] sm:$0xff] }
 0x3f2   : > { %v2540_v8 = vsub.f32 0.0, %v7772_v40  ;;  %3307 = vst.msk [vmem:[%s6058_s7 + $0x20] sm:$0xff] %vm948_vm1, %v3275_v44  ;;  %v2818_v43 = vsel %vm7801_vm12, %v7470_v51, %v2814_v0  ;;  %v2963_v34 = vsub.f32 1.5, %v7781_v62  ;;  %v2808_v45 = vsel %vm7821_vm14, %v7451_v23, %v2804_v41  ;;  %v8678_v41 = vld [vmem:[#allocation38_spill] sm:$0xff] }
 0x3f3   : > { %v3067_v13 = vsub.f32 0.0, %v8674_v26  ;;  %v4505_v44 = vadd.f32 -1.0, %v3162_v2  ;;  %vm2946_vm14 = vweird.f32 %v7630_v22  ;;  %v7862_v23 = vmul.f32 %v7671_v7, %v2933_v33  ;;  %v8687_v26 = vld [vmem:[#allocation36_spill] sm:$0xff] }
 0x3f4   : > { %v3121_v19 = vmul.f32 1.442695, %v2540_v8  ;;  %v5275_v31 = vpop.eup %5274  ;;  %vm2935_vm12 = vweird.f32 %v7621_v24  ;;  %v7866_v62 = vmul.f32 %v7699_v12, %v2973_v48  ;;  %v3012_v0 = vmul.f32 %v2818_v43, %v8678_v41  ;;  %v8683_v43 = vld [vmem:[#allocation58_spill] sm:$0xff]  ;;  %v8692_v41 = vld [vmem:[#allocation59_spill] sm:$0xff] }
 0x3f5   : > { %v3163_v2 = vadd.f32 %v5275_v31, %v3067_v13  ;;  %vm2835_vm13 = vweird.f32 %v8679_v54  ;;  %v7879_v33 = vmul.f32 0.5, %v2981_v3  ;;  %v2990_v48 = vmul.f32 %v7836_v30, %v7741_v20  ;;  %3245 = vadd.xlane.f32.xlu1 %v4505_v44  ;;  %v8688_v44 = vld [vmem:[#allocation63_spill] sm:$0xff]  ;;  %v8754_v54 = vld [vmem:[#allocation54_spill] sm:$0xff] }
 0x3f6   : > { %v3218_v17 = vpop.xlane.xlu2 %3217  ;;  %5276 = vpow2.f32 %v3121_v19  ;;  %v8682_v19 = vld [vmem:[#allocation64_spill] sm:$0xff]  ;;  %v3011_v13 = vmul.f32 %v2808_v45, %v8687_v26  ;;  %vm2955_vm9 = vweird.f32 %v7604_v60  ;;  %v7916_v45 = vmul.f32 %v7730_v63, %v2963_v34  ;;  %v8699_v26 = vld [vmem:[#allocation39_spill] sm:$0xff] }
 0x3f7   : > { %v2494_v51 = vpop.f32.mrf.mxu1  ;;  %v3276_v42 = vmul.f32 0.5, %v3218_v17  ;;  %v2848_v61 = vsel %vm7856_vm2, %v7503_v1, %v8682_v19  ;;  %v8686_v17 = vld [vmem:[#allocation61_spill] sm:$0xff]  ;;  %v2858_v1 = vsel %vm7874_vm3, %v7486_v14, %v8688_v44  ;;  %vm8695_vm11 = vweird.f32 %v7548_v56  ;;  %v8714_v19 = vld [vmem:[#allocation44_spill] sm:$0xff] }
 0x3f8   : > { %v2495_v39 = vadd.f32 %v2494_v51, %v7187_v49  ;;  %vm2945_vm5 = vweird.f32 %v8686_v17  ;;  %v4506_v51 = vadd.f32 -1.0, %v3163_v2  ;;  %v8693_v2 = vsub.f32 1.5, %v8692_v41  ;;  %v8700_v44 = vld [vmem:[#allocation65_spill] sm:$0xff] }
 0x3f9   : > { %3308 = vst.msk [vmem:[%s6058_s7 + $0x28] sm:$0xff] %vm948_vm1, %v3276_v42  ;;  %vm8696_vm3 = vweird.f32 %v7491_v9  ;;  %v3068_v34 = vsub.f32 0.0, %v2540_v8  ;;  %vm2975_vm2 = vweird.f32 %v7628_v35  ;;  %v2991_v40 = vmul.f32 %v7836_v30, %v2990_v48  ;;  %v8705_v8 = vld [vmem:[#allocation66_spill] sm:$0xff]  ;;  %v8724_v9 = vld [vmem:[#allocation45_spill] sm:$0xff] }
 0x3fa   : > { %v2541_v10 = vsub.f32 0.0, %v2495_v39  ;;  %v8689_v39 = vld [vmem:[#allocation41_spill] sm:$0xff]  ;;  %v7921_v15 = vmul.f32 %v8683_v43, %v8693_v2  ;;  %vm7928_vm4 = vmor %vm8696_vm3, %vm8695_vm11  ;;  %3247 = vadd.xlane.f32.xlu2 %v4506_v51  ;;  %vm8701_vm11 = vweird.f32 %v7556_v29  ;;  %vm8702_vm3 = vweird.f32 %v7496_v47 }
 0x3fb   : > { %v3220_v31 = vpop.xlane.xlu0 %3219  ;;  %v3015_v42 = vmul.f32 %v2848_v61, %v8689_v39  ;;  %v3037_v61 = vpack.c.bf16 %v3012_v0, %v3011_v13  ;;  %v2868_v39 = vsel %vm7894_vm7, %v7509_v6, %v8700_v44  ;;  %vm7944_vm8 = vmor %vm8702_vm3, %vm8701_vm11  ;;  %v2878_v6 = vsel %vm7928_vm4, %v7548_v56, %v7695_v21  ;;  %v8709_v21 = vld [vmem:[#allocation62_spill] sm:$0xff] }
 0x3fc   : > { %v3123_v37 = vmul.f32 1.442695, %v2541_v10  ;;  %v3277_v14 = vmul.f32 0.5, %v3220_v31  ;;  %v3016_v31 = vmul.f32 %v2858_v1, %v8699_v26  ;;  %v5277_v41 = vpop.eup %5276  ;;  %v2888_v47 = vsel %vm7909_vm6, %v7516_v55, %v8705_v8  ;;  %v4705_v1 = vld [vmem:[#allocation13 + $0x8] sm:$0xff]  ;;  %v8719_v26 = vld [vmem:[#allocation67_spill] sm:$0xff] }
 0x3fd   : > { %vm8706_vm7 = vweird.f32 %v7610_v50  ;;  %vm2965_vm3 = vweird.f32 %v7667_v28  ;;  %v2983_v48 = vsub.f32 1.5, %v7879_v33  ;;  %3475 = vmatmul.bf16.gmra.mxu2 %v3037_v61  ;;  %3564 = vmatmul.bf16.gmra.mxu3 %v3037_v61  ;;  %v8710_v3 = vsub.f32 1.5, %v8709_v21 }
 0x3fe   : > { %5278 = vpow2.f32 %v3123_v37  ;;  %3309 = vst.msk [vmem:[%s6058_s7 + $0x30] sm:$0xff] %vm948_vm1, %v3277_v14  ;;  %vm7964_vm11 = vmor %vm2915_vm0, %vm8706_vm7  ;;  %v3164_v55 = vadd.f32 %v5277_v41, %v3068_v34  ;;  %v7973_v51 = vpack.c.bf16 %v3016_v31, %v3015_v42  ;;  %v3069_v27 = vsub.f32 0.0, %v2541_v10  ;;  %v8713_v14 = vld [vmem:[#allocation42_spill] sm:$0xff]  ;;  %3833 = vmatpush.bf16.msrb.mxu0 %v4705_v1  ;;  %v4704_v34 = vld [vmem:[#allocation13] sm:$0xff] }
 0x3ff   : > { %v2496_v56 = vpop.f32.mrf.mxu1  ;;  %v2834_v13 = vmul.f32 %v7498_v11, %v8710_v3  ;;  %vm7979_vm0 = vmor %vm2905_vm15, %vm2906_vm10  ;;  %v3017_v2 = vmul.f32 %v2868_v39, %v8713_v14  ;;  %v3018_v61 = vmul.f32 %v2878_v6, %v8714_v19  ;;  %vm8715_vm4 = vweird.f32 %v7616_v18  ;;  %v8720_v31 = vld [vmem:[#allocation43_spill] sm:$0xff] }
 0x400   : > { %v2497_v37 = vadd.f32 %v2496_v56, %v7187_v49  ;;  %vm8716_vm6 = vweird.f32 %v8675_v58  ;;  %v4507_v32 = vadd.f32 -1.0, %v3164_v55  ;;  %v2898_v10 = vsel %vm7944_vm8, %v7556_v29, %v8719_v26  ;;  %v8729_v56 = vld [vmem:[#allocation46_spill] sm:$0xff] }
 0x401   : > { %vm7990_vm7 = vmor %vm8716_vm6, %vm8715_vm4  ;;  %v3019_v44 = vmul.f32 %v2888_v47, %v8720_v31  ;;  %v2908_v39 = vsel %vm7979_vm0, %v7623_v53, %v7810_v59  ;;  %vm8721_vm10 = vweird.f32 %v7671_v7  ;;  %v8011_v6 = vpack.c.bf16 %v3018_v61, %v3017_v2  ;;  %v8728_v59 = vld [vmem:[#allocation48_spill] sm:$0xff]  ;;  %v8744_v61 = vld [vmem:[#allocation49_spill] sm:$0xff] }
 0x402   : > { %vm8007_vm15 = vmor %vm2935_vm12, %vm8721_vm10  ;;  %v2542_v41 = vsub.f32 0.0, %v2497_v37  ;;  %v3020_v29 = vmul.f32 %v2898_v10, %v8724_v9  ;;  %v2918_v8 = vsel %vm7964_vm11, %v7610_v50, %v7789_v52  ;;  %vm8725_vm8 = vweird.f32 %v7498_v11  ;;  %3249 = vadd.xlane.f32.xlu0 %v4507_v32  ;;  %3834 = vmatpush.bf16.msrb.mxu0 %v4704_v34  ;;  %v8736_v37 = vld [vmem:[#allocation50_spill] sm:$0xff]  ;;  %v8747_v34 = vld [vmem:[#allocation40_spill] sm:$0xff] }
 0x403   : > { %vm8022_vm0 = vmor %vm2835_vm13, %vm8725_vm8  ;;  %v3222_v53 = vpop.xlane.xlu1 %3221  ;;  %v3021_v47 = vmul.f32 %v2908_v39, %v8728_v59  ;;  %v3022_v21 = vmul.f32 %v2918_v8, %v8729_v56  ;;  %v2928_v0 = vsel %vm7990_vm7, %v7616_v18, %v7807_v5  ;;  %v2938_v50 = vsel %vm8007_vm15, %v7671_v7, %v7862_v23  ;;  %v8735_v23 = vld [vmem:[#allocation47_spill] sm:$0xff] }
 0x404   : > { %v5279_v52 = vpop.eup %5278  ;;  %vm8040_vm13 = vmor %vm2945_vm5, %vm2946_vm14  ;;  %v2992_v3 = vmul.f32 0.5, %v2991_v40  ;;  %v3125_v55 = vmul.f32 1.442695, %v2542_v41  ;;  %v3278_v1 = vmul.f32 0.5, %v3222_v53  ;;  %v8044_v38 = vpack.c.bf16 %v3020_v29, %v3019_v44  ;;  %v8748_v44 = vld [vmem:[#allocation53_spill] sm:$0xff] }
 0x405   : > { %vm8732_vm12 = vweird.f32 %v7664_v4  ;;  %v3165_v7 = vadd.f32 %v5279_v52, %v3069_v27  ;;  %v8054_v5 = vpack.c.bf16 %v3022_v21, %v3021_v47  ;;  %v3023_v17 = vmul.f32 %v2928_v0, %v8735_v23  ;;  %v3351_v21 = vld [vmem:[%s8753_s5] sm:$0x3] }
 0x406   : > { %vm8050_vm11 = vmor %vm2955_vm9, %vm8732_vm12  ;;  %v3024_v40 = vmul.f32 %v2938_v50, %v8736_v37  ;;  %vm8737_vm14 = vweird.f32 %v8683_v43  ;;  %vm8738_vm5 = vweird.f32 %v8694_v46  ;;  %5280 = vpow2.f32 %v3125_v55  ;;  %3310 = vst.msk [vmem:[%s6058_s7 + $0x38] sm:$0xff] %vm948_vm1, %v3278_v1  ;;  %v8755_v55 = vld [vmem:[#allocation55_spill] sm:$0xff] }
 0x407   : > { %vm8062_vm4 = vmor %vm8738_vm5, %vm8737_vm14  ;;  %v2838_v60 = vsel %vm8022_vm0, %v7498_v11, %v2834_v13  ;;  %v2948_v27 = vsel %vm8040_vm13, %v7630_v22, %v7828_v16  ;;  %v2958_v46 = vsel %vm8050_vm11, %v7664_v4, %v7840_v57  ;;  %vm8741_vm9 = vweird.f32 %v7699_v12  ;;  %v2499_v11 = vpop.f32.mrf.mxu1  ;;  %v8745_v22 = vld [vmem:[#allocation51_spill] sm:$0xff] }
 0x408   : > { %vm8083_vm6 = vmor %vm2975_vm2, %vm8741_vm9  ;;  %v4508_v13 = vadd.f32 -1.0, %v3165_v7  ;;  %v8087_v19 = vpack.c.bf16 %v3024_v40, %v3023_v17  ;;  %v3025_v42 = vmul.f32 %v2948_v27, %v8744_v61  ;;  %v3026_v16 = vmul.f32 %v2958_v46, %v8745_v22 }
 0x409   : > { %vm8746_vm7 = vweird.f32 %v7730_v63  ;;  %v2828_v4 = vsel %vm8062_vm4, %v8683_v43, %v7921_v15  ;;  %v2500_v35 = vadd.f32 %v2499_v11, %v7187_v49  ;;  %v2978_v57 = vsel %vm8083_vm6, %v7699_v12, %v7866_v62  ;;  %v8749_v43 = vld [vmem:[#allocation52_spill] sm:$0xff]  ;;  %v8750_v62 = vld [vmem:[#allocation37_spill] sm:$0xff] }
 0x40a   : > { %vm2967_vm10 = vmor %vm2965_vm3, %vm8746_vm7  ;;  %v2993_v32 = vsub.f32 1.5, %v2992_v3  ;;  %v3014_v26 = vmul.f32 %v2838_v60, %v8747_v34  ;;  %3251 = vadd.xlane.f32.xlu1 %v4508_v13  ;;  %v8105_v10 = vpack.c.bf16 %v3026_v16, %v3025_v42  ;;  %v3028_v15 = vmul.f32 %v2978_v57, %v8749_v43 }
 0x40b   : > { %v2968_v28 = vsel %vm2967_vm10, %v7730_v63, %v7916_v45  ;;  %v2543_v31 = vsub.f32 0.0, %v2500_v35  ;;  %v2984_v58 = vmul.f32 %v7743_v25, %v2983_v48  ;;  %vm2986_vm2 = vweird.f32 %v7743_v25  ;;  %v3224_v29 = vpop.xlane.xlu2 %3223 }
 0x40c   : > { %v3027_v39 = vmul.f32 %v2968_v28, %v8748_v44  ;;  %v3070_v12 = vsub.f32 0.0, %v2542_v41  ;;  %v3013_v9 = vmul.f32 %v2828_v4, %v8750_v62  ;;  %v5281_v8 = vpop.eup %5280  ;;  %vm2985_vm3 = vweird.f32 %v7669_v36 }
 0x40d   : > { %v3127_v63 = vmul.f32 1.442695, %v2543_v31  ;;  %v3279_v45 = vmul.f32 0.5, %v3224_v29  ;;  %v2994_v53 = vmul.f32 %v7836_v30, %v2993_v32  ;;  %vm2996_vm15 = vweird.f32 %v7836_v30  ;;  %vm8121_vm8 = vmor %vm2985_vm3, %vm2986_vm2 }
 0x40e   : > { %v8117_v24 = vpack.c.bf16 %v3028_v15, %v3027_v39  ;;  %v3038_v33 = vpack.c.bf16 %v3014_v26, %v3013_v9  ;;  %v3166_v48 = vadd.f32 %v5281_v8, %v3070_v12  ;;  %vm2995_vm0 = vweird.f32 %v7741_v20 }
 0x40f   : > { %5282 = vpow2.f32 %v3127_v63  ;;  %3311 = vst.msk [vmem:[%s6058_s7 + $0x40] sm:$0xff] %vm948_vm1, %v3279_v45  ;;  %v2501_v36 = vpop.f32.mrf.mxu1  ;;  %v2988_v47 = vsel %vm8121_vm8, %v7743_v25, %v2984_v58  ;;  %vm2997_vm13 = vmor %vm2995_vm0, %vm2996_vm15  ;;  %v3071_v18 = vsub.f32 0.0, %v2543_v31  ;;  %v8138_v17 = vperm.slane %v3351_v21, 0 }
 0x410   : > { %3480 = vmatmul.bf16.gmra.mxu2 %v3038_v33  ;;  %3569 = vmatmul.bf16.gmra.mxu3 %v3038_v33  ;;  %v4509_v41 = vadd.f32 -1.0, %v3166_v48  ;;  %v2502_v56 = vadd.f32 %v2501_v36, %v7187_v49  ;;  %v2998_v0 = vsel %vm2997_vm13, %v7836_v30, %v2994_v53  ;;  %v3029_v3 = vmul.f32 %v2988_v47, %v8754_v54 }
 0x411   : > { %v3030_v1 = vmul.f32 %v2998_v0, %v8755_v55  ;;  %v8142_v14 = vperm.slane %v3351_v21, 1 }
 0x412   : > { %3253 = vadd.xlane.f32.xlu2 %v4509_v41  ;;  %v2544_v20 = vsub.f32 0.0, %v2502_v56  ;;  %v3446_v50 = vpop.f32.mrf.mxu2  ;;  %v3535_v52 = vpop.f32.mrf.mxu3 }
 0x413   : > { %v3226_v25 = vpop.xlane.xlu0 %3225  ;;  %v8140_v40 = vpack.c.bf16 %v3030_v1, %v3029_v3  ;;  %v3447_v46 = vadd.f32 %v3446_v50, %v8138_v17  ;;  %v3536_v11 = vadd.f32 %v3535_v52, %v8142_v14 }
 0x414   : > { %v3129_v23 = vmul.f32 1.442695, %v2544_v20  ;;  %v3280_v37 = vmul.f32 0.5, %v3226_v25  ;;  %v3072_v22 = vsub.f32 0.0, %v2544_v20 }
 0x415   : > { %v5283_v7 = vpop.eup %5282  ;;  %v3711_v26 = vmax.f32 %v3536_v11, 0.0 }
 0x416   : > { %v3167_v30 = vadd.f32 %v5283_v7, %v3071_v18  ;;  %5284 = vpow2.f32 %v3129_v23  ;;  %3312 = vst.msk [vmem:[%s6058_s7 + $0x48] sm:$0xff] %vm948_vm1, %v3280_v37 }
 0x417   : > { %v2504_v60 = vpop.f32.mrf.mxu1  ;;  %5286 = vtanh.f32 %v3447_v46 }
 0x418   : > { %v4510_v27 = vadd.f32 -1.0, %v3167_v30  ;;  %v2505_v2 = vadd.f32 %v2504_v60, %v7187_v49 }
 0x41a   : > { %3255 = vadd.xlane.f32.xlu0 %v4510_v27  ;;  %v2545_v13 = vsub.f32 0.0, %v2505_v2  ;;  %v3448_v61 = vpop.f32.mrf.mxu2  ;;  %v3537_v42 = vpop.f32.mrf.mxu3 }
 0x41b   : > { %v3449_v16 = vadd.f32 %v3448_v61, %v8138_v17  ;;  %v3538_v4 = vadd.f32 %v3537_v42, %v8142_v14  ;;  %v3228_v35 = vpop.xlane.xlu1 %3227 }
 0x41c   : > { %v5285_v57 = vpop.eup %5284  ;;  %v3131_v32 = vmul.f32 1.442695, %v2545_v13  ;;  %v3281_v34 = vmul.f32 0.5, %v3228_v35  ;;  %v3073_v8 = vsub.f32 0.0, %v2545_v13 }
 0x41d   : > { %5288 = vtanh.f32 %v3449_v16  ;;  %v3712_v28 = vmax.f32 %v3538_v4, 0.0  ;;  %v3168_v31 = vadd.f32 %v5285_v57, %v3072_v22  ;;  %v5287_v58 = vpop.eup %5286 }
 0x41e   : > { %5290 = vpow2.f32 %v3131_v32  ;;  %3313 = vst.msk [vmem:[%s6058_s7 + $0x50] sm:$0xff] %vm948_vm1, %v3281_v34 }
 0x41f   : > { %v2506_v44 = vpop.f32.mrf.mxu1  ;;  %v4511_v39 = vadd.f32 -1.0, %v3168_v31  ;;  %v3743_v43 = vpack.c.bf16 %v3712_v28, %v3711_v26 }
 0x420   : > { %3485 = vmatmul.bf16.gmra.mxu2 %v7973_v51  ;;  %3574 = vmatmul.bf16.gmra.mxu3 %v7973_v51  ;;  %v2507_v15 = vadd.f32 %v2506_v44, %v7187_v49 }
 0x421   : > { %3257 = vadd.xlane.f32.xlu1 %v4511_v39  ;;  %3835 = vmatmul.bf16.vlgmr.msrb.gmra.mxu0 %v3743_v43 }
 0x422   : > { %v2546_v12 = vsub.f32 0.0, %v2507_v15  ;;  %v3451_v62 = vpop.f32.mrf.mxu2  ;;  %v3540_v9 = vpop.f32.mrf.mxu3 }
 0x423   : > { %v5289_v29 = vpop.eup %5288  ;;  %v3230_v63 = vpop.xlane.xlu2 %3229  ;;  %v3452_v41 = vadd.f32 %v3451_v62, %v8138_v17  ;;  %v3541_v56 = vadd.f32 %v3540_v9, %v8142_v14 }
 0x424   : > { %v5291_v45 = vpop.eup %5290  ;;  %v4717_v53 = vpack.c.bf16 %v5289_v29, %v5287_v58  ;;  %v3133_v33 = vmul.f32 1.442695, %v2546_v12  ;;  %v3282_v51 = vmul.f32 0.5, %v3230_v63  ;;  %v3074_v50 = vsub.f32 0.0, %v2546_v12 }
 0x425   : > { %v3169_v48 = vadd.f32 %v5291_v45, %v3073_v8  ;;  %v3713_v1 = vmax.f32 %v3541_v56, 0.0 }
 0x426   : > { %4718 = vst [vmem:[%s6060_s11] sm:$0xff] %v4717_v53   ;;  %5292 = vpow2.f32 %v3133_v33 }
 0x427   : > { %3314 = vst.msk [vmem:[%s6058_s7 + $0x58] sm:$0xff] %vm948_vm1, %v3282_v51  ;;  %v2509_v59 = vpop.f32.mrf.mxu1  ;;  %v4512_v36 = vadd.f32 -1.0, %v3169_v48  ;;  %5294 = vtanh.f32 %v3452_v41 }
 0x428   : > { %v2510_v47 = vadd.f32 %v2509_v59, %v7187_v49 }
 0x429   : > { %3259 = vadd.xlane.f32.xlu2 %v4512_v36 }
 0x42a   : > { %v2547_v21 = vsub.f32 0.0, %v2510_v47  ;;  %v3453_v0 = vpop.f32.mrf.mxu2  ;;  %v3542_v20 = vpop.f32.mrf.mxu3 }
 0x42b   : > { %v3454_v52 = vadd.f32 %v3453_v0, %v8138_v17  ;;  %v3543_v54 = vadd.f32 %v3542_v20, %v8142_v14 }
 0x42c   : > { %v5293_v3 = vpop.eup %5292  ;;  %v3135_v55 = vmul.f32 1.442695, %v2547_v21  ;;  %v3075_v11 = vsub.f32 0.0, %v2547_v21 }
 0x42d   : > { %5296 = vtanh.f32 %v3454_v52  ;;  %v3714_v18 = vmax.f32 %v3543_v54, 0.0  ;;  %v3170_v25 = vadd.f32 %v5293_v3, %v3074_v50  ;;  %v5295_v60 = vpop.eup %5294 }
 0x42e   : > { %5298 = vpow2.f32 %v3135_v55  ;;  %v3232_v27 = vpop.xlane.xlu0 %3231 }
 0x42f   : > { %v2511_v7 = vpop.f32.mrf.mxu1  ;;  %v4513_v23 = vadd.f32 -1.0, %v3170_v25  ;;  %v3744_v37 = vpack.c.bf16 %v3714_v18, %v3713_v1  ;;  %v3283_v13 = vmul.f32 0.5, %v3232_v27 }
 0x430   : > { %3490 = vmatmul.bf16.gmra.mxu2 %v8011_v6  ;;  %3579 = vmatmul.bf16.gmra.mxu3 %v8011_v6  ;;  %v2512_v30 = vadd.f32 %v2511_v7, %v7187_v49 }
 0x431   : > { %3261 = vadd.xlane.f32.xlu0 %v4513_v23  ;;  %3840 = vmatmul.bf16.gmra.mxu0 %v3744_v37  ;;  %3315 = vst.msk [vmem:[%s6058_s7 + $0x60] sm:$0xff] %vm948_vm1, %v3283_v13 }
 0x432   : > { %v2548_v46 = vsub.f32 0.0, %v2512_v30  ;;  %v3456_v57 = vpop.f32.mrf.mxu2  ;;  %v3545_v32 = vpop.f32.mrf.mxu3 }
 0x433   : > { %v5297_v2 = vpop.eup %5296  ;;  %v3457_v43 = vadd.f32 %v3456_v57, %v8138_v17  ;;  %v3546_v62 = vadd.f32 %v3545_v32, %v8142_v14 }
 0x434   : > { %v5299_v61 = vpop.eup %5298  ;;  %v4722_v42 = vpack.c.bf16 %v5297_v2, %v5295_v60  ;;  %v3137_v22 = vmul.f32 1.442695, %v2548_v46  ;;  %v3076_v26 = vsub.f32 0.0, %v2548_v46  ;;  %v3234_v39 = vpop.xlane.xlu1 %3233 }
 0x435   : > { %v3171_v6 = vadd.f32 %v5299_v61, %v3075_v11  ;;  %v3284_v15 = vmul.f32 0.5, %v3234_v39  ;;  %v3715_v59 = vmax.f32 %v3546_v62, 0.0 }
 0x436   : > { %4794 = vst [vmem:[%s6060_s11 + $0x8] sm:$0xff] %v4722_v42   ;;  %5300 = vpow2.f32 %v3137_v22 }
 0x437   : > { %v2514_v16 = vpop.f32.mrf.mxu1  ;;  %v4514_v4 = vadd.f32 -1.0, %v3171_v6  ;;  %3316 = vst.msk [vmem:[%s6058_s7 + $0x68] sm:$0xff] %vm948_vm1, %v3284_v15 }
 0x438   : > { %v2515_v35 = vadd.f32 %v2514_v16, %v7187_v49 }
 0x439   : > { %3263 = vadd.xlane.f32.xlu1 %v4514_v4 }
 0x43a   : > { %v2549_v34 = vsub.f32 0.0, %v2515_v35  ;;  %v3458_v29 = vpop.f32.mrf.mxu2  ;;  %v3547_v8 = vpop.f32.mrf.mxu3 }
 0x43b   : > { %v3459_v63 = vadd.f32 %v3458_v29, %v8138_v17  ;;  %v3548_v45 = vadd.f32 %v3547_v8, %v8142_v14 }
 0x43c   : > { %v5301_v28 = vpop.eup %5300  ;;  %v3139_v31 = vmul.f32 1.442695, %v2549_v34  ;;  %v3077_v33 = vsub.f32 0.0, %v2549_v34 }
 0x43d   : > { %v3172_v44 = vadd.f32 %v5301_v28, %v3076_v26  ;;  %v3716_v36 = vmax.f32 %v3548_v45, 0.0 }
 0x43e   : > { %5302 = vpow2.f32 %v3139_v31 }
 0x43f   : > { %v2516_v58 = vpop.f32.mrf.mxu1  ;;  %v4515_v12 = vadd.f32 -1.0, %v3172_v44  ;;  %5304 = vtanh.f32 %v3457_v43  ;;  %v3745_v47 = vpack.c.bf16 %v3716_v36, %v3715_v59 }
 0x440   : > { %3495 = vmatmul.bf16.gmra.mxu2 %v8044_v38  ;;  %3584 = vmatmul.bf16.gmra.mxu3 %v8044_v38  ;;  %v2517_v9 = vadd.f32 %v2516_v58, %v7187_v49  ;;  %v3236_v38 = vpop.xlane.xlu2 %3235  ;;  %5306 = vtanh.f32 %v3459_v63 }
 0x441   : > { %3265 = vadd.xlane.f32.xlu2 %v4515_v12  ;;  %v3285_v51 = vmul.f32 0.5, %v3236_v38  ;;  %3845 = vmatmul.bf16.gmra.mxu0 %v3745_v47 }
 0x442   : > { %v2550_v53 = vsub.f32 0.0, %v2517_v9 }
 0x443   : > { %3317 = vst.msk [vmem:[%s6058_s7 + $0x70] sm:$0xff] %vm948_vm1, %v3285_v51 }
 0x444   : > { %v5303_v48 = vpop.eup %5302  ;;  %v3141_v49 = vmul.f32 1.442695, %v2550_v53  ;;  %v3078_v50 = vsub.f32 0.0, %v2550_v53 }
 0x445   : > { %v3173_v41 = vadd.f32 %v5303_v48, %v3077_v33  ;;  %v5305_v21 = vpop.eup %5304  ;;  %v3238_v1 = vpop.xlane.xlu0 %3237 }
 0x446   : > { %5308 = vpow2.f32 %v3141_v49  ;;  %v5307_v0 = vpop.eup %5306  ;;  %v3286_v18 = vmul.f32 0.5, %v3238_v1 }
 0x447   : > { %v4516_v56 = vadd.f32 -1.0, %v3173_v41  ;;  %v4727_v20 = vpack.c.bf16 %v5307_v0, %v5305_v21  ;;  %v3461_v54 = vpop.f32.mrf.mxu2  ;;  %v3550_v3 = vpop.f32.mrf.mxu3 }
 0x448   : > { %3318 = vst.msk [vmem:[%s6058_s7 + $0x78] sm:$0xff] %vm948_vm1, %v3286_v18  ;;  %v3462_v7 = vadd.f32 %v3461_v54, %v8138_v17  ;;  %v3551_v23 = vadd.f32 %v3550_v3, %v8142_v14 }
 0x449   : > { %3267 = vadd.xlane.f32.xlu0 %v4516_v56  ;;  %4795 = vst [vmem:[%s6060_s11 + $0x10] sm:$0xff] %v4727_v20  }
 0x44a   : > { %5310 = vtanh.f32 %v3462_v7 }
 0x44c   : > { %v5309_v52 = vpop.eup %5308 }
 0x44d   : > { %v3174_v55 = vadd.f32 %v5309_v52, %v3078_v50  ;;  %v3240_v46 = vpop.xlane.xlu1 %3239 }
 0x44e   : > { %v3287_v11 = vmul.f32 0.5, %v3240_v46 }
 0x44f   : > { %v4517_v25 = vadd.f32 -1.0, %v3174_v55  ;;  %v3463_v37 = vpop.f32.mrf.mxu2  ;;  %v3552_v30 = vpop.f32.mrf.mxu3 }
 0x450   : > { %3500 = vmatmul.bf16.gmra.mxu2 %v8054_v5  ;;  %3589 = vmatmul.bf16.gmra.mxu3 %v8054_v5  ;;  %v3464_v60 = vadd.f32 %v3463_v37, %v8138_v17  ;;  %v3553_v27 = vadd.f32 %v3552_v30, %v8142_v14  ;;  %v3717_v5 = vmax.f32 %v3551_v23, 0.0  ;;  %3319 = vst.msk [vmem:[%s6058_s7 + $0x80] sm:$0xff] %vm948_vm1, %v3287_v11  ;;  %v5311_v61 = vpop.eup %5310 }
 0x451   : > { %3269 = vadd.xlane.f32.xlu1 %v4517_v25 }
 0x452   : > { %5312 = vtanh.f32 %v3464_v60  ;;  %v3718_v2 = vmax.f32 %v3553_v27, 0.0 }
 0x454   : > { %v3746_v13 = vpack.c.bf16 %v3718_v2, %v3717_v5 }
 0x456   : > { %3850 = vmatmul.bf16.gmra.mxu0 %v3746_v13 }
 0x458   : > { %v5313_v42 = vpop.eup %5312  ;;  %v3466_v6 = vpop.f32.mrf.mxu2 }
 0x459   : > { %v4732_v22 = vpack.c.bf16 %v5313_v42, %v5311_v61  ;;  %v3555_v16 = vpop.f32.mrf.mxu3  ;;  %v3467_v57 = vadd.f32 %v3466_v6, %v8138_v17 }
 0x45a   : > { %v3242_v4 = vpop.xlane.xlu2 %3241  ;;  %v3556_v32 = vadd.f32 %v3555_v16, %v8142_v14 }
 0x45b   : > { %4796 = vst [vmem:[%s6060_s11 + $0x18] sm:$0xff] %v4732_v22   ;;  %v3288_v35 = vmul.f32 0.5, %v3242_v4  ;;  %5314 = vtanh.f32 %v3467_v57 }
 0x45c   : > { %v3719_v39 = vmax.f32 %v3556_v32, 0.0 }
 0x45d   : > { %3320 = vst.msk [vmem:[%s6058_s7 + $0x88] sm:$0xff] %vm948_vm1, %v3288_v35 }
 0x460   : > { %3505 = vmatmul.bf16.gmra.mxu2 %v8087_v19  ;;  %3594 = vmatmul.bf16.gmra.mxu3 %v8087_v19  ;;  %v3468_v26 = vpop.f32.mrf.mxu2 }
 0x461   : > { %v3244_v34 = vpop.xlane.xlu0 %3243  ;;  %v3557_v28 = vpop.f32.mrf.mxu3  ;;  %v3469_v44 = vadd.f32 %v3468_v26, %v8138_v17 }
 0x462   : > { %v3289_v31 = vmul.f32 0.5, %v3244_v34  ;;  %v3558_v19 = vadd.f32 %v3557_v28, %v8142_v14  ;;  %v5315_v62 = vpop.eup %5314  ;;  %v8242_v34 = vld [vmem:[%s8756_s14] ss:$0 sm:$0xff] }
 0x463   : > { %5316 = vtanh.f32 %v3469_v44 }
 0x464   : > { %3321 = vst.msk [vmem:[%s6058_s7 + $0x90] sm:$0xff] %vm948_vm1, %v3289_v31  ;;  %v3720_v43 = vmax.f32 %v3558_v19, 0.0 }
 0x466   : > { %v3747_v15 = vpack.c.bf16 %v3720_v43, %v3719_v39 }
 0x468   : > { %v3246_v58 = vpop.xlane.xlu1 %3245  ;;  %3855 = vmatmul.bf16.gmra.mxu0 %v3747_v15 }
 0x469   : > { %v3290_v12 = vmul.f32 0.5, %v3246_v58  ;;  %v5317_v29 = vpop.eup %5316 }
 0x46a   : > { %v4737_v63 = vpack.c.bf16 %v5317_v29, %v5315_v62 }
 0x46b   : > { %3322 = vst.msk [vmem:[%s6058_s7 + $0x98] sm:$0xff] %vm948_vm1, %v3290_v12  ;;  %v3471_v45 = vpop.f32.mrf.mxu2  ;;  %v3560_v38 = vpop.f32.mrf.mxu3 }
 0x46c   : > { %4797 = vst [vmem:[%s6060_s11 + $0x20] sm:$0xff] %v4737_v63   ;;  %v3472_v51 = vadd.f32 %v3471_v45, %v8138_v17 }
 0x46d   : > { %v3248_v9 = vpop.xlane.xlu2 %3247 }
 0x46e   : > { %v3291_v8 = vmul.f32 0.5, %v3248_v9  ;;  %5318 = vtanh.f32 %v3472_v51 }
 0x470   : > { %3510 = vmatmul.bf16.gmra.mxu2 %v8105_v10  ;;  %3599 = vmatmul.bf16.gmra.mxu3 %v8105_v10  ;;  %3323 = vst.msk [vmem:[%s6058_s7 + $0xa0] sm:$0xff] %vm948_vm1, %v3291_v8  ;;  %v3561_v10 = vadd.f32 %v3560_v38, %v8142_v14 }
 0x472   : > { %v3721_v47 = vmax.f32 %v3561_v10, 0.0 }
 0x473   : > { %v3473_v48 = vpop.f32.mrf.mxu2  ;;  %v3562_v59 = vpop.f32.mrf.mxu3 }
 0x474   : > { %v3474_v36 = vadd.f32 %v3473_v48, %v8138_v17  ;;  %v3563_v49 = vadd.f32 %v3562_v59, %v8142_v14  ;;  %v5319_v20 = vpop.eup %5318 }
 0x475   : > { %v3250_v53 = vpop.xlane.xlu0 %3249 }
 0x476   : > { %v3292_v33 = vmul.f32 0.5, %v3250_v53  ;;  %5320 = vtanh.f32 %v3474_v36  ;;  %v3722_v56 = vmax.f32 %v3563_v49, 0.0 }
 0x478   : > { %3324 = vst.msk [vmem:[%s6058_s7 + $0xa8] sm:$0xff] %vm948_vm1, %v3292_v33  ;;  %v3748_v0 = vpack.c.bf16 %v3722_v56, %v3721_v47 }
 0x47a   : > { %3860 = vmatmul.bf16.gmra.mxu0 %v3748_v0 }
 0x47c   : > { %v5321_v54 = vpop.eup %5320 }
 0x47d   : > { %v3252_v41 = vpop.xlane.xlu1 %3251  ;;  %v4742_v3 = vpack.c.bf16 %v5321_v54, %v5319_v20 }
 0x47e   : > { %v3293_v21 = vmul.f32 0.5, %v3252_v41 }
 0x47f   : > { %4798 = vst [vmem:[%s6060_s11 + $0x28] sm:$0xff] %v4742_v3  }
 0x480   : > { %3515 = vmatmul.bf16.gmra.mxu2 %v8117_v24  ;;  %3604 = vmatmul.bf16.gmra.mxu3 %v8117_v24  ;;  %3325 = vst.msk [vmem:[%s6058_s7 + $0xb0] sm:$0xff] %vm948_vm1, %v3293_v21  ;;  %v3476_v50 = vpop.f32.mrf.mxu2  ;;  %v3565_v52 = vpop.f32.mrf.mxu3 }
 0x481   : > { %v3477_v18 = vadd.f32 %v3476_v50, %v8138_v17  ;;  %v3566_v25 = vadd.f32 %v3565_v52, %v8142_v14 }
 0x483   : > { %5322 = vtanh.f32 %v3477_v18  ;;  %v3723_v60 = vmax.f32 %v3566_v25, 0.0 }
 0x485   : > { %v3254_v55 = vpop.xlane.xlu2 %3253 }
 0x486   : > { %v3294_v1 = vmul.f32 0.5, %v3254_v55 }
 0x488   : > { %3326 = vst.msk [vmem:[%s6058_s7 + $0xb8] sm:$0xff] %vm948_vm1, %v3294_v1  ;;  %v3478_v24 = vpop.f32.mrf.mxu2  ;;  %v3567_v7 = vpop.f32.mrf.mxu3 }
 0x489   : > { %v3479_v23 = vadd.f32 %v3478_v24, %v8138_v17  ;;  %v3568_v37 = vadd.f32 %v3567_v7, %v8142_v14  ;;  %v5323_v2 = vpop.eup %5322 }
 0x48b   : > { %5324 = vtanh.f32 %v3479_v23  ;;  %v3724_v27 = vmax.f32 %v3568_v37, 0.0 }
 0x48d   : > { %v3256_v30 = vpop.xlane.xlu0 %3255  ;;  %v3749_v5 = vpack.c.bf16 %v3724_v27, %v3723_v60 }
 0x48e   : > { %v3295_v46 = vmul.f32 0.5, %v3256_v30 }
 0x48f   : > { %3865 = vmatmul.bf16.gmra.mxu0 %v3749_v5 }
 0x490   : > { %3520 = vmatmul.bf16.gmra.mxu2 %v8140_v40  ;;  %3609 = vmatmul.bf16.gmra.mxu3 %v8140_v40  ;;  %3327 = vst.msk [vmem:[%s6058_s7 + $0xc0] sm:$0xff] %vm948_vm1, %v3295_v46 }
 0x491   : > { %v5325_v61 = vpop.eup %5324 }
 0x492   : > { %v4747_v42 = vpack.c.bf16 %v5325_v61, %v5323_v2 }
 0x493   : > { %v3481_v11 = vpop.f32.mrf.mxu2  ;;  %v3570_v13 = vpop.f32.mrf.mxu3 }
 0x494   : > { %v3258_v22 = vpop.xlane.xlu1 %3257  ;;  %4799 = vst [vmem:[%s6060_s11 + $0x30] sm:$0xff] %v4747_v42   ;;  %v3482_v16 = vadd.f32 %v3481_v11, %v8138_v17  ;;  %v3571_v4 = vadd.f32 %v3570_v13, %v8142_v14 }
 0x495   : > { %v3296_v6 = vmul.f32 0.5, %v3258_v22 }
 0x496   : > { %5326 = vtanh.f32 %v3482_v16  ;;  %v3725_v28 = vmax.f32 %v3571_v4, 0.0 }
 0x497   : > { %3328 = vst.msk [vmem:[%s6058_s7 + $0xc8] sm:$0xff] %vm948_vm1, %v3296_v6 }
 0x49b   : > { %v3483_v40 = vpop.f32.mrf.mxu2  ;;  %v3572_v35 = vpop.f32.mrf.mxu3 }
 0x49c   : > { %v3484_v57 = vadd.f32 %v3483_v40, %v8138_v17  ;;  %v3573_v32 = vadd.f32 %v3572_v35, %v8142_v14  ;;  %v3260_v26 = vpop.xlane.xlu2 %3259  ;;  %v5327_v15 = vpop.eup %5326 }
 0x49d   : > { %v3297_v44 = vmul.f32 0.5, %v3260_v26 }
 0x49e   : > { %5328 = vtanh.f32 %v3484_v57  ;;  %v3726_v31 = vmax.f32 %v3573_v32, 0.0  ;;  %v3836_v19 = vpop.f32.mrf.mxu0 }
 0x49f   : > { %3329 = vst.msk [vmem:[%s6058_s7 + $0xd0] sm:$0xff] %vm948_vm1, %v3297_v44  ;;  %v3837_v43 = vadd.f32 %v8242_v34, %v3836_v19 }
 0x4a0   : > { %v3750_v39 = vpack.c.bf16 %v3726_v31, %v3725_v28 }
 0x4a1   : > { %3916 = vst [vmem:[%s6062_s12] sm:$0xff] %v3837_v43 }
 0x4a2   : > { %3870 = vmatmul.bf16.gmra.mxu0 %v3750_v39 }
 0x4a3   : > { %v3486_v58 = vpop.f32.mrf.mxu2  ;;  %v3575_v12 = vpop.f32.mrf.mxu3 }
 0x4a4   : > { %v5329_v62 = vpop.eup %5328  ;;  %v3262_v29 = vpop.xlane.xlu0 %3261  ;;  %v3487_v38 = vadd.f32 %v3486_v58, %v8138_v17  ;;  %v3576_v53 = vadd.f32 %v3575_v12, %v8142_v14 }
 0x4a5   : > { %v4752_v9 = vpack.c.bf16 %v5329_v62, %v5327_v15  ;;  %v3298_v8 = vmul.f32 0.5, %v3262_v29 }
 0x4a6   : > { %v3838_v63 = vpop.f32.mrf.mxu0  ;;  %5330 = vtanh.f32 %v3487_v38  ;;  %v3727_v36 = vmax.f32 %v3576_v53, 0.0 }
 0x4a7   : > { %4800 = vst [vmem:[%s6060_s11 + $0x38] sm:$0xff] %v4752_v9   ;;  %v3839_v45 = vadd.f32 %v8242_v34, %v3838_v63 }
 0x4a8   : > { %3330 = vst.msk [vmem:[%s6058_s7 + $0xd8] sm:$0xff] %vm948_vm1, %v3298_v8 }
 0x4a9   : > { %3917 = vst [vmem:[%s6062_s12 + $0x8] sm:$0xff] %v3839_v45 }
 0x4ab   : > { %v3488_v33 = vpop.f32.mrf.mxu2  ;;  %v3577_v51 = vpop.f32.mrf.mxu3 }
 0x4ac   : > { %v3489_v10 = vadd.f32 %v3488_v33, %v8138_v17  ;;  %v3578_v48 = vadd.f32 %v3577_v51, %v8142_v14  ;;  %v3264_v59 = vpop.xlane.xlu1 %3263  ;;  %v5331_v0 = vpop.eup %5330 }
 0x4ad   : > { %v3299_v41 = vmul.f32 0.5, %v3264_v59 }
 0x4ae   : > { %5332 = vtanh.f32 %v3489_v10  ;;  %v3728_v49 = vmax.f32 %v3578_v48, 0.0  ;;  %v3841_v47 = vpop.f32.mrf.mxu0 }
 0x4af   : > { %3331 = vst.msk [vmem:[%s6058_s7 + $0xe0] sm:$0xff] %vm948_vm1, %v3299_v41  ;;  %v3842_v21 = vadd.f32 %v8242_v34, %v3841_v47 }
 0x4b0   : > { %v3751_v56 = vpack.c.bf16 %v3728_v49, %v3727_v36 }
 0x4b1   : > { %3918 = vst [vmem:[%s6062_s12 + $0x10] sm:$0xff] %v3842_v21 }
 0x4b2   : > { %3875 = vmatmul.bf16.gmra.mxu0 %v3751_v56 }
 0x4b3   : > { %v3491_v20 = vpop.f32.mrf.mxu2  ;;  %v3580_v50 = vpop.f32.mrf.mxu3 }
 0x4b4   : > { %v5333_v52 = vpop.eup %5332  ;;  %v3266_v3 = vpop.xlane.xlu2 %3265  ;;  %v3492_v25 = vadd.f32 %v3491_v20, %v8138_v17  ;;  %v3581_v24 = vadd.f32 %v3580_v50, %v8142_v14 }
 0x4b5   : > { %v4757_v54 = vpack.c.bf16 %v5333_v52, %v5331_v0  ;;  %v3300_v55 = vmul.f32 0.5, %v3266_v3 }
 0x4b6   : > { %v3843_v1 = vpop.f32.mrf.mxu0  ;;  %5334 = vtanh.f32 %v3492_v25  ;;  %v3729_v27 = vmax.f32 %v3581_v24, 0.0 }
 0x4b7   : > { %4801 = vst [vmem:[%s6060_s11 + $0x40] sm:$0xff] %v4757_v54   ;;  %v3844_v18 = vadd.f32 %v8242_v34, %v3843_v1 }
 0x4b8   : > { %3332 = vst.msk [vmem:[%s6058_s7 + $0xe8] sm:$0xff] %vm948_vm1, %v3300_v55 }
 0x4b9   : > { %3919 = vst [vmem:[%s6062_s12 + $0x18] sm:$0xff] %v3844_v18 }
 0x4bb   : > { %v3493_v7 = vpop.f32.mrf.mxu2  ;;  %v3582_v23 = vpop.f32.mrf.mxu3 }
 0x4bc   : > { %v3494_v37 = vadd.f32 %v3493_v7, %v8138_v17  ;;  %v3583_v30 = vadd.f32 %v3582_v23, %v8142_v14  ;;  %v3268_v60 = vpop.xlane.xlu0 %3267  ;;  %v5335_v11 = vpop.eup %5334 }
 0x4bd   : > { %v3301_v5 = vmul.f32 0.5, %v3268_v60 }
 0x4be   : > { %5336 = vtanh.f32 %v3494_v37  ;;  %v3730_v46 = vmax.f32 %v3583_v30, 0.0  ;;  %v3846_v16 = vpop.f32.mrf.mxu0 }
 0x4bf   : > { %3333 = vst.msk [vmem:[%s6058_s7 + $0xf0] sm:$0xff] %vm948_vm1, %v3301_v5  ;;  %v3847_v40 = vadd.f32 %v8242_v34, %v3846_v16 }
 0x4c0   : > { %v3752_v2 = vpack.c.bf16 %v3730_v46, %v3729_v27 }
 0x4c1   : > { %3920 = vst [vmem:[%s6062_s12 + $0x20] sm:$0xff] %v3847_v40 }
 0x4c2   : > { %3880 = vmatmul.bf16.gmra.mxu0 %v3752_v2 }
 0x4c3   : > { %v3496_v13 = vpop.f32.mrf.mxu2  ;;  %v3585_v61 = vpop.f32.mrf.mxu3 }
 0x4c4   : > { %v5337_v42 = vpop.eup %5336  ;;  %v3270_v6 = vpop.xlane.xlu1 %3269  ;;  %v3497_v35 = vadd.f32 %v3496_v13, %v8138_v17  ;;  %v3586_v57 = vadd.f32 %v3585_v61, %v8142_v14 }
 0x4c5   : > { %v4762_v22 = vpack.c.bf16 %v5337_v42, %v5335_v11  ;;  %v3302_v4 = vmul.f32 0.5, %v3270_v6 }
 0x4c6   : > { %5338 = vtanh.f32 %v3497_v35  ;;  %v3731_v44 = vmax.f32 %v3586_v57, 0.0  ;;  %v3848_v39 = vpop.f32.mrf.mxu0 }
 0x4c7   : > { %4802 = vst [vmem:[%s6060_s11 + $0x48] sm:$0xff] %v4762_v22   ;;  %v3849_v43 = vadd.f32 %v8242_v34, %v3848_v39 }
 0x4c8   : > { %3334 = vst.msk [vmem:[%s6058_s7 + $0xf8] sm:$0xff] %vm948_vm1, %v3302_v4 }
 0x4c9   : > { %3921 = vst [vmem:[%s6062_s12 + $0x28] sm:$0xff] %v3849_v43 }
 0x4cb   : > { %v3498_v32 = vpop.f32.mrf.mxu2  ;;  %v3587_v26 = vpop.f32.mrf.mxu3 }
 0x4cc   : > { %v3499_v28 = vadd.f32 %v3498_v32, %v8138_v17  ;;  %v3588_v31 = vadd.f32 %v3587_v26, %v8142_v14  ;;  %v5339_v58 = vpop.eup %5338 }
 0x4ce   : > { %5340 = vtanh.f32 %v3499_v28  ;;  %v3732_v19 = vmax.f32 %v3588_v31, 0.0 }
 0x4d0   : > { %v3753_v15 = vpack.c.bf16 %v3732_v19, %v3731_v44 }
 0x4d2   : > { %3885 = vmatmul.bf16.gmra.mxu0 %v3753_v15 }
 0x4d3   : > { %v3501_v12 = vpop.f32.mrf.mxu2  ;;  %v3590_v62 = vpop.f32.mrf.mxu3 }
 0x4d4   : > { %v5341_v9 = vpop.eup %5340  ;;  %v3502_v8 = vadd.f32 %v3501_v12, %v8138_v17  ;;  %v3851_v63 = vpop.f32.mrf.mxu0  ;;  %v3591_v45 = vadd.f32 %v3590_v62, %v8142_v14 }
 0x4d5   : > { %v4767_v29 = vpack.c.bf16 %v5341_v9, %v5339_v58  ;;  %v3852_v38 = vadd.f32 %v8242_v34, %v3851_v63 }
 0x4d6   : > { %5342 = vtanh.f32 %v3502_v8  ;;  %v3733_v48 = vmax.f32 %v3591_v45, 0.0 }
 0x4d7   : > { %4803 = vst [vmem:[%s6060_s11 + $0x50] sm:$0xff] %v4767_v29  }
 0x4d8   : > { %3922 = vst [vmem:[%s6062_s12 + $0x30] sm:$0xff] %v3852_v38 }
 0x4db   : > { %v3503_v53 = vpop.f32.mrf.mxu2  ;;  %v3592_v33 = vpop.f32.mrf.mxu3 }
 0x4dc   : > { %v3504_v51 = vadd.f32 %v3503_v53, %v8138_v17  ;;  %v3593_v10 = vadd.f32 %v3592_v33, %v8142_v14  ;;  %v3853_v49 = vpop.f32.mrf.mxu0  ;;  %v5343_v47 = vpop.eup %5342 }
 0x4dd   : > { %v3854_v41 = vadd.f32 %v8242_v34, %v3853_v49 }
 0x4de   : > { %5344 = vtanh.f32 %v3504_v51  ;;  %v3734_v59 = vmax.f32 %v3593_v10, 0.0 }
 0x4df   : > { %3923 = vst [vmem:[%s6062_s12 + $0x38] sm:$0xff] %v3854_v41 }
 0x4e0   : > { %v3754_v36 = vpack.c.bf16 %v3734_v59, %v3733_v48 }
 0x4e2   : > { %3890 = vmatmul.bf16.gmra.mxu0 %v3754_v36 }
 0x4e3   : > { %v3506_v56 = vpop.f32.mrf.mxu2  ;;  %v3595_v21 = vpop.f32.mrf.mxu3 }
 0x4e4   : > { %v5345_v0 = vpop.eup %5344  ;;  %v3507_v50 = vadd.f32 %v3506_v56, %v8138_v17  ;;  %v3596_v52 = vadd.f32 %v3595_v21, %v8142_v14 }
 0x4e5   : > { %v4772_v20 = vpack.c.bf16 %v5345_v0, %v5343_v47  ;;  %v3856_v24 = vpop.f32.mrf.mxu0 }
 0x4e6   : > { %5346 = vtanh.f32 %v3507_v50  ;;  %v3735_v18 = vmax.f32 %v3596_v52, 0.0  ;;  %v3857_v7 = vadd.f32 %v8242_v34, %v3856_v24 }
 0x4e7   : > { %4804 = vst [vmem:[%s6060_s11 + $0x58] sm:$0xff] %v4772_v20  }
 0x4e8   : > { %3924 = vst [vmem:[%s6062_s12 + $0x40] sm:$0xff] %v3857_v7 }
 0x4eb   : > { %v3508_v54 = vpop.f32.mrf.mxu2  ;;  %v3597_v3 = vpop.f32.mrf.mxu3 }
 0x4ec   : > { %v3509_v55 = vadd.f32 %v3508_v54, %v8138_v17  ;;  %v3598_v1 = vadd.f32 %v3597_v3, %v8142_v14  ;;  %v5347_v37 = vpop.eup %5346 }
 0x4ed   : > { %v3858_v5 = vpop.f32.mrf.mxu0 }
 0x4ee   : > { %5348 = vtanh.f32 %v3509_v55  ;;  %v3736_v25 = vmax.f32 %v3598_v1, 0.0  ;;  %v3859_v2 = vadd.f32 %v8242_v34, %v3858_v5 }
 0x4f0   : > { %v3755_v23 = vpack.c.bf16 %v3736_v25, %v3735_v18  ;;  %3925 = vst [vmem:[%s6062_s12 + $0x48] sm:$0xff] %v3859_v2 }
 0x4f2   : > { %3895 = vmatmul.bf16.gmra.mxu0 %v3755_v23 }
 0x4f3   : > { %v3511_v30 = vpop.f32.mrf.mxu2  ;;  %v3600_v60 = vpop.f32.mrf.mxu3 }
 0x4f4   : > { %v5349_v27 = vpop.eup %5348  ;;  %v3512_v11 = vadd.f32 %v3511_v30, %v8138_v17  ;;  %v3601_v13 = vadd.f32 %v3600_v60, %v8142_v14 }
 0x4f5   : > { %v4777_v46 = vpack.c.bf16 %v5349_v27, %v5347_v37 }
 0x4f6   : > { %5350 = vtanh.f32 %v3512_v11  ;;  %v3737_v16 = vmax.f32 %v3601_v13, 0.0 }
 0x4f7   : > { %4805 = vst [vmem:[%s6060_s11 + $0x60] sm:$0xff] %v4777_v46   ;;  %v3861_v40 = vpop.f32.mrf.mxu0 }
 0x4f8   : > { %v3862_v57 = vadd.f32 %v8242_v34, %v3861_v40 }
 0x4fa   : > { %3926 = vst [vmem:[%s6062_s12 + $0x50] sm:$0xff] %v3862_v57 }
 0x4fb   : > { %v3513_v61 = vpop.f32.mrf.mxu2  ;;  %v3602_v42 = vpop.f32.mrf.mxu3 }
 0x4fc   : > { %v3514_v22 = vadd.f32 %v3513_v61, %v8138_v17  ;;  %v3603_v6 = vadd.f32 %v3602_v42, %v8142_v14  ;;  %v5351_v32 = vpop.eup %5350 }
 0x4fe   : > { %5352 = vtanh.f32 %v3514_v22  ;;  %v3738_v4 = vmax.f32 %v3603_v6, 0.0 }
 0x4ff   : > { %v3863_v19 = vpop.f32.mrf.mxu0 }
 0x500   : > { %v3756_v35 = vpack.c.bf16 %v3738_v4, %v3737_v16  ;;  %v3864_v39 = vadd.f32 %v8242_v34, %v3863_v19 }
 0x502   : > { %3900 = vmatmul.bf16.gmra.mxu0 %v3756_v35  ;;  %3927 = vst [vmem:[%s6062_s12 + $0x58] sm:$0xff] %v3864_v39 }
 0x503   : > { %v3516_v26 = vpop.f32.mrf.mxu2  ;;  %v3605_v28 = vpop.f32.mrf.mxu3 }
 0x504   : > { %v5353_v31 = vpop.eup %5352  ;;  %v3517_v43 = vadd.f32 %v3516_v26, %v8138_v17  ;;  %v3606_v15 = vadd.f32 %v3605_v28, %v8142_v14 }
 0x505   : > { %v4782_v44 = vpack.c.bf16 %v5353_v31, %v5351_v32 }
 0x506   : > { %5354 = vtanh.f32 %v3517_v43  ;;  %v3739_v29 = vmax.f32 %v3606_v15, 0.0 }
 0x507   : > { %4806 = vst [vmem:[%s6060_s11 + $0x68] sm:$0xff] %v4782_v44  }
 0x50b   : > { %v3518_v58 = vpop.f32.mrf.mxu2  ;;  %v3607_v12 = vpop.f32.mrf.mxu3 }
 0x50c   : > { %v3519_v62 = vadd.f32 %v3518_v58, %v8138_v17  ;;  %v3608_v9 = vadd.f32 %v3607_v12, %v8142_v14  ;;  %v3866_v63 = vpop.f32.mrf.mxu0  ;;  %v5355_v53 = vpop.eup %5354 }
 0x50d   : > { %v3867_v38 = vadd.f32 %v8242_v34, %v3866_v63 }
 0x50e   : > { %5356 = vtanh.f32 %v3519_v62  ;;  %v3740_v8 = vmax.f32 %v3608_v9, 0.0 }
 0x50f   : > { %3928 = vst [vmem:[%s6062_s12 + $0x60] sm:$0xff] %v3867_v38 }
 0x510   : > { %v3757_v45 = vpack.c.bf16 %v3740_v8, %v3739_v29 }
 0x512   : > { %3905 = vmatmul.bf16.gmra.mxu0 %v3757_v45 }
 0x513   : > { %v3521_v33 = vpop.f32.mrf.mxu2  ;;  %v3610_v51 = vpop.f32.mrf.mxu3 }
 0x514   : > { %v5357_v10 = vpop.eup %5356  ;;  %v3868_v59 = vpop.f32.mrf.mxu0  ;;  %v3522_v49 = vadd.f32 %v3521_v33, %v8138_v17  ;;  %v3611_v41 = vadd.f32 %v3610_v51, %v8142_v14 }
 0x515   : > { %v4787_v48 = vpack.c.bf16 %v5357_v10, %v5355_v53  ;;  %v3869_v36 = vadd.f32 %v8242_v34, %v3868_v59 }
 0x516   : > { %5358 = vtanh.f32 %v3522_v49  ;;  %v3741_v20 = vmax.f32 %v3611_v41, 0.0 }
 0x517   : > { %4807 = vst [vmem:[%s6060_s11 + $0x70] sm:$0xff] %v4787_v48  }
 0x518   : > { %3929 = vst [vmem:[%s6062_s12 + $0x68] sm:$0xff] %v3869_v36 }
 0x51b   : > { %v3523_v47 = vpop.f32.mrf.mxu2  ;;  %v3612_v56 = vpop.f32.mrf.mxu3 }
 0x51c   : > { %v3524_v21 = vadd.f32 %v3523_v47, %v8138_v17  ;;  %v3613_v0 = vadd.f32 %v3612_v56, %v8142_v14  ;;  %v5359_v55 = vpop.eup %5358 }
 0x51e   : > { %5360 = vtanh.f32 %v3524_v21  ;;  %v3742_v50 = vmax.f32 %v3613_v0, 0.0 }
 0x51f   : > { %v3871_v52 = vpop.f32.mrf.mxu0 }
 0x520   : > { %v3758_v54 = vpack.c.bf16 %v3742_v50, %v3741_v20  ;;  %v3872_v3 = vadd.f32 %v8242_v34, %v3871_v52 }
 0x522   : > { %3930 = vst [vmem:[%s6062_s12 + $0x70] sm:$0xff] %v3872_v3  ;;  %3910 = vmatmul.bf16.gmra.mxu0 %v3758_v54 }
 0x524   : > { %v5361_v1 = vpop.eup %5360 }
 0x525   : > { %v4792_v18 = vpack.c.bf16 %v5361_v1, %v5359_v55 }
 0x527   : > { %4808 = vst [vmem:[%s6060_s11 + $0x78] sm:$0xff] %v4792_v18   ;;  %v3873_v17 = vpop.f32.mrf.mxu0 }
 0x528   : > { %v3874_v14 = vadd.f32 %v8242_v34, %v3873_v17 }
 0x52a   : > { %3931 = vst [vmem:[%s6062_s12 + $0x78] sm:$0xff] %v3874_v14 }
 0x52f   : > { %v3876_v25 = vpop.f32.mrf.mxu0 }
 0x530   : > { %v3877_v24 = vadd.f32 %v8242_v34, %v3876_v25 }
 0x532   : > { %3932 = vst [vmem:[%s6062_s12 + $0x80] sm:$0xff] %v3877_v24 }
 0x537   : > { %v3878_v7 = vpop.f32.mrf.mxu0 }
 0x538   : > { %v3879_v23 = vadd.f32 %v8242_v34, %v3878_v7 }
 0x53a   : > { %3933 = vst [vmem:[%s6062_s12 + $0x88] sm:$0xff] %v3879_v23 }
 0x53f   : > { %v3881_v37 = vpop.f32.mrf.mxu0 }
 0x540   : > { %v3882_v30 = vadd.f32 %v8242_v34, %v3881_v37 }
 0x542   : > { %3934 = vst [vmem:[%s6062_s12 + $0x90] sm:$0xff] %v3882_v30 }
 0x547   : > { %v3883_v60 = vpop.f32.mrf.mxu0 }
 0x548   : > { %v3884_v27 = vadd.f32 %v8242_v34, %v3883_v60 }
 0x54a   : > { %3935 = vst [vmem:[%s6062_s12 + $0x98] sm:$0xff] %v3884_v27 }
 0x54f   : > { %v3886_v46 = vpop.f32.mrf.mxu0 }
 0x550   : > { %v3887_v5 = vadd.f32 %v8242_v34, %v3886_v46 }
 0x552   : > { %3936 = vst [vmem:[%s6062_s12 + $0xa0] sm:$0xff] %v3887_v5 }
 0x557   : > { %v3888_v2 = vpop.f32.mrf.mxu0 }
 0x558   : > { %v3889_v11 = vadd.f32 %v8242_v34, %v3888_v2 }
 0x55a   : > { %3937 = vst [vmem:[%s6062_s12 + $0xa8] sm:$0xff] %v3889_v11 }
 0x55f   : > { %v3891_v13 = vpop.f32.mrf.mxu0 }
 0x560   : > { %v3892_v61 = vadd.f32 %v8242_v34, %v3891_v13 }
 0x562   : > { %3938 = vst [vmem:[%s6062_s12 + $0xb0] sm:$0xff] %v3892_v61 }
 0x567   : > { %v3893_v42 = vpop.f32.mrf.mxu0 }
 0x568   : > { %v3894_v22 = vadd.f32 %v8242_v34, %v3893_v42 }
 0x56a   : > { %3939 = vst [vmem:[%s6062_s12 + $0xb8] sm:$0xff] %v3894_v22 }
 0x56f   : > { %v3896_v6 = vpop.f32.mrf.mxu0 }
 0x570   : > { %v3897_v16 = vadd.f32 %v8242_v34, %v3896_v6 }
 0x572   : > { %3940 = vst [vmem:[%s6062_s12 + $0xc0] sm:$0xff] %v3897_v16 }
 0x577   : > { %v3898_v4 = vpop.f32.mrf.mxu0 }
 0x578   : > { %v3899_v40 = vadd.f32 %v8242_v34, %v3898_v4 }
 0x57a   : > { %3941 = vst [vmem:[%s6062_s12 + $0xc8] sm:$0xff] %v3899_v40 }
 0x57f   : > { %v3901_v35 = vpop.f32.mrf.mxu0 }
 0x580   : > { %v3902_v57 = vadd.f32 %v8242_v34, %v3901_v35 }
 0x582   : > { %3942 = vst [vmem:[%s6062_s12 + $0xd0] sm:$0xff] %v3902_v57 }
 0x587   : > { %v3903_v32 = vpop.f32.mrf.mxu0 }
 0x588   : > { %v3904_v26 = vadd.f32 %v8242_v34, %v3903_v32 }
 0x58a   : > { %3943 = vst [vmem:[%s6062_s12 + $0xd8] sm:$0xff] %v3904_v26 }
 0x58f   : > { %v3906_v28 = vpop.f32.mrf.mxu0 }
 0x590   : > { %v3907_v31 = vadd.f32 %v8242_v34, %v3906_v28 }
 0x592   : > { %3944 = vst [vmem:[%s6062_s12 + $0xe0] sm:$0xff] %v3907_v31 }
 0x597   : > { %v3908_v44 = vpop.f32.mrf.mxu0 }
 0x598   : > { %v3909_v19 = vadd.f32 %v8242_v34, %v3908_v44 }
 0x59a   : > { %3945 = vst [vmem:[%s6062_s12 + $0xe8] sm:$0xff] %v3909_v19 }
 0x59f   : > { %v3911_v39 = vpop.f32.mrf.mxu0 }
 0x5a0   : > { %v3912_v43 = vadd.f32 %v8242_v34, %v3911_v39 }
 0x5a2   : > { %3946 = vst [vmem:[%s6062_s12 + $0xf0] sm:$0xff] %v3912_v43 }
 0x5a7   : > { %v3913_v15 = vpop.f32.mrf.mxu0 }
 0x5a8   : > { %v3914_v58 = vadd.f32 %v8242_v34, %v3913_v15 }
 0x5aa   : > { %3947 = vst [vmem:[%s6062_s12 + $0xf8] sm:$0xff] %v3914_v58 }
 0x5ab PF: > { %s8757_s20 = sld [smem:[#allocation28_spill]]  ;;  %s3971_s7 = sshll.u32 %s6060_s11, 4  ;;  %s3972_s7 = int_to_ptr.vmem [resolvable:$true] %s3971_s7 }
 0x5ac   : > { %s8759_s2 = sld [smem:[#allocation76_spill]]  ;;  %s3949_s29 = scalar_lea.sflag [#allocation6], %s6050_s15 }
 0x5b1   : > { %s4712_s13 = sshll.u32 %s8757_s20, 7 }
 0x5b2   : > { %s3970_s9 = scalar_lea.hbm %s8759_s2, %s4712_s13  ;;  %s5562_s16 = scalar_lea.hbm %s8759_s2, 256 }
 0x5b3   : > { %s3973_s25 = sshll.u32 %s3970_s9, 4  ;;  %s3974_s25 = int_to_ptr.hbm [resolvable:$true] %s3973_s25 }
 0x5b4   : > { %s5556_s6 = sshra.s32 %s3974_s25, 4  ;;  %s5557_s6 = int_to_ptr.hbm [resolvable:$true] %s5556_s6 }
 0x5b5   : > { %s5558_s26 = scalar_lea.hbm %s5557_s6, 128  ;;  %p5563_p0 = scmp.lt.s32.totalorder %s5557_s6, %s8759_s2 }
 0x5b6   : > { %p5559_p13 = scmp.ne.s32.totalorder %s5557_s6, %s5558_s26  ;;  %p5564_p3 = scmp.lt.s32.totalorder %s5562_s16, %s5558_s26 }
 0x5b8   : > { %p5560_p7 = pnand %p5559_p13, %p5903_p8  ;;  %p5565_p5 = por %p5564_p3, %p5563_p0 }
 0x5ba   : > { %p5561_p10 = pneg %p5560_p7 }
 0x5bc   : > { %p5566_p9 = pnand %p5565_p5, %p5561_p10 }
 0x5be   : > { %5569 = shalt.err (!%p5566_p9)
}
 0x5bf   : > { %s5749_s11 = smov 64   ;;  %s5750_s3 = smov 4  }
 0x5c0   : > { %4869 = dma.vmem_to_hbm [thread:$0]  (%p5903_p8), %s3972_s7, 2048, %s3974_s25, %s3949_s29, %s5749_s11, %s5749_s11, %s5750_s3  }
 0x5c1   : > { %s4713_s14 = sshll.u32 %s8757_s20, 8  ;;  %s3988_s13 = sshll.u32 %s6062_s12, 4  ;;  %s3989_s13 = int_to_ptr.vmem [resolvable:$true] %s3988_s13 }
 0x5c2   : > { %s8760_s9 = sld [smem:[#allocation77_spill]]  ;;  %s3954_s26 = scalar_lea.sflag [#allocation17], %s6050_s15 }
 0x5c8   : > { %s3987_s10 = scalar_lea.hbm %s8760_s9, %s4713_s14  ;;  %s5590_s20 = scalar_lea.hbm %s8760_s9, 512 }
 0x5c9   : > { %s3990_s6 = sshll.u32 %s3987_s10, 4  ;;  %s3991_s6 = int_to_ptr.hbm [resolvable:$true] %s3990_s6 }
 0x5ca   : > { %s5584_s0 = sshra.s32 %s3991_s6, 4  ;;  %s5585_s0 = int_to_ptr.hbm [resolvable:$true] %s5584_s0 }
 0x5cb   : > { %s5586_s16 = scalar_lea.hbm %s5585_s0, 256  ;;  %p5591_p1 = scmp.lt.s32.totalorder %s5585_s0, %s8760_s9 }
 0x5cc   : > { %p5587_p11 = scmp.ne.s32.totalorder %s5585_s0, %s5586_s16  ;;  %p5592_p6 = scmp.lt.s32.totalorder %s5590_s20, %s5586_s16 }
 0x5ce   : > { %p5588_p2 = pnand %p5587_p11, %p5903_p8  ;;  %p5593_p13 = por %p5592_p6, %p5591_p1 }
 0x5d0   : > { %p5589_p4 = pneg %p5588_p2 }
 0x5d2   : > { %p5594_p7 = pnand %p5593_p13, %p5589_p4 }
 0x5d4   : > { %5597 = shalt.err (!%p5594_p7)
}
 0x5d5   : > { %s5751_s15 = smov 128   ;;  %s5752_s25 = smov 8  }
 0x5d6   : > { %4870 = dma.vmem_to_hbm [thread:$0]  (%p5903_p8), %s3989_s13, 4096, %s3991_s6, %s3954_s26, %s5751_s15, %s5751_s15, %s5752_s25  }
 0x5d7 PF: > { %s8761_s29 = sld [smem:[#allocation25_spill]]  ;;  %p4909_p10 = scmp.ge.s32.totalorder %s5736_s30, 2 }
 0x5d9   : > { %p4894_p0 = pnand %p4909_p10, %p5909_p12 }
 0x5db   : > { %p4895_p3 = pneg %p4894_p0 }
 0x5dd   : > { %s4009_s3 = sand.u32 1, %s8761_s29  }
 0x5de   : > { %s4010_s14 = scalar_lea.sflag [#allocation6], %s4009_s3 }
 0x5df   : > { %5675 = dma.done.wait (%p4895_p3), %s4010_s14, 2048  }
 0x5e0   : > { %5677 = vsyncadd (%p4895_p3), %s4010_s14, 4294965248  ;;  %s4020_s4 = scalar_lea.sflag [#allocation17], %s4009_s3 }
 0x5e1   : > { %5679 = dma.done.wait (%p4895_p3), %s4020_s4, 4096  }
 0x5e2   : > { %5681 = vsyncadd (%p4895_p3), %s4020_s4, 4294963200  ;;  %s36_s30 = sadd.s32 1, %s5736_s30   ;;  %s8764_s13 = sld [smem:[#allocation34_spill]] }
 0x5e3   : > { %p8398_p5 = scmp.ge.s32.totalorder %s36_s30, 6   ;;  %s8765_s10 = sld [smem:[#allocation26_spill]] }
 0x5e4   : > { %s8766_s25 = sld [smem:[#allocation35_spill]]  ;;  %s8770_s17 = smov %s5688_s18 }
 0x5e5   : > { %s8767_s6 = sld [smem:[#allocation29_spill]]  ;;  %s8771_s18 = smov %s5692_s19 }
 0x5e6   : > { %s8768_s0 = sld [smem:[#allocation32_spill]]  ;;  %s8773_s20 = smov %s5700_s21 }
 0x5e7   : > { %s8769_s29 = sld [smem:[#allocation33_spill]]  ;;  %s8774_s21 = smov %s5704_s22 }
 0x5e8   : > { %s8772_s19 = smov %s8764_s13  ;;  %s8775_s22 = smov %s6006_s27 }
 0x5e9   : > { %s8776_s23 = smov %s5712_s24  ;;  %s8777_s24 = smov %s8765_s10 }
 0x5ea   : > { %s8778_s26 = smov %s5728_s28  ;;  %35 = sbr.rel (!%p8398_p5) target bundleno = 28 (0x1c), region = 167 }
 0x5eb   : > { %s8779_s27 = smov %s8767_s6 }
 0x5ec   : > { %s8780_s28 = smov %s8768_s0 }
 0x5ef   :  { %4034 = vsyncpa [#allocation5], 1 }
 0x5f0   :  { %4036 = vsyncpa [#allocation5 + $0x1], 1 }
 0x5f1   :  { %4037 = vsyncpa [#allocation8], 1 }
 0x5f2   :  { %4039 = vsyncpa [#allocation8 + $0x1], 1 }
 0x5f3   :  { %4040 = vsyncpa [#allocation11], 1 }
 0x5f4   :  { %4041 = vsyncpa [#allocation14], 1 }
 0x5f5   :  { %4042 = vsyncpa [#allocation6], 1 }
 0x5f6   :  { %4044 = vsyncpa [#allocation6 + $0x1], 1 }
 0x5f7   :  { %4045 = vsyncpa [#allocation17], 1 }
 0x5f8   :  { %4047 = vsyncpa [#allocation17 + $0x1], 1 }

</bundles_post_ra>
